<compile_context>
chip_gen: v5e
topology: v5e:2x2
jax: 0.10.0
libtpu: 0.0.40
codegen_flags: <defaults>
</compile_context>

<pallas_src>
import functools
import math
import numpy as np

import jax
import jax.numpy as jnp
from jax.experimental import pallas as pl
from jax.experimental.pallas import tpu as pltpu


# ----------------------------------------------------------------------------
# tiling helpers
# ----------------------------------------------------------------------------

def _row_tile(M, row_bytes, target_bytes=2 << 20):
    """Row-block size: ~target_bytes per block, multiple of 8, divides M,
    and >= 2 grid steps when possible (megacore / v7x friendliness)."""
    if M % 8 != 0:
        return M                       # tiny/awkward M -> single full block
    tgt = max(8, int(target_bytes) // max(int(row_bytes), 1))
    if M >= 16:
        tgt = min(tgt, M // 2)         # guarantee >= 2 grid steps
    tgt = min(tgt, M)
    tm = max(8, (tgt // 8) * 8)
    while tm > 8 and M % tm:
        tm -= 8
    return tm


def _pick_chunk(R, S, cap=512):
    """Attention window-chunk rows: multiple of S and 8, divides R, <= cap,
    >= 2 chunks when possible."""
    base = (S * 8) // math.gcd(S, 8)
    limit = min(cap, R)
    if R >= 2 * base:
        limit = min(limit, R // 2)
    limit -= limit % base
    n = limit
    while n >= base:
        if R % n == 0:
            return n
        n -= base
    return R


# ----------------------------------------------------------------------------
# Pallas kernels
# ----------------------------------------------------------------------------

def _ln_map_kernel(x_ref, g_ref, b_ref, w_ref, wb_ref, o_ref):
    """Fused LayerNorm (eps=1e-5) + mapping Linear. bf16 matmul, f32 accum,
    bf16 output (halves HBM bytes of the widest intermediate)."""
    x = x_ref[...]
    mu = jnp.mean(x, axis=-1, keepdims=True)
    xc = x - mu
    var = jnp.mean(xc * xc, axis=-1, keepdims=True)
    xn = xc * jax.lax.rsqrt(var + 1e-5) * g_ref[...] + b_ref[...]
    y = jnp.dot(xn.astype(jnp.bfloat16), w_ref[...],
                preferred_element_type=jnp.float32) + wb_ref[...]
    o_ref[...] = y.astype(o_ref.dtype)


def ln_map(x, gamma, beta, w, b):
    M, C = x.shape
    O = w.shape[1]
    TM = _row_tile(M, C * 4 + O * 2)
    return pl.pallas_call(
        _ln_map_kernel,
        out_shape=jax.ShapeDtypeStruct((M, O), jnp.bfloat16),
        grid=(M // TM,),
        in_specs=[
            pl.BlockSpec((TM, C), lambda i: (i, 0)),
            pl.BlockSpec((1, C), lambda i: (0, 0)),
            pl.BlockSpec((1, C), lambda i: (0, 0)),
            pl.BlockSpec((C, O), lambda i: (0, 0)),
            pl.BlockSpec((1, O), lambda i: (0, 0)),
        ],
        out_specs=pl.BlockSpec((TM, O), lambda i: (i, 0)),
        compiler_params=pltpu.CompilerParams(dimension_semantics=("parallel",)),
    )(x, gamma, beta, w, b)


def _attn_kernel(xw_ref, wqkv_ref, bqkv_ref, bias_ref, wc_ref, o_ref, *,
                 heads, hd, scale):
    """One (branch, window-chunk) per grid step.

    All windows of the chunk form one [N, Ca] slab.  One fused QKV matmul, one
    fused output projection.  Per head, the N rows attend through a single
    [N, N] score matrix whose precomputed bias is block-diagonal (off-window
    entries = -1e30), which reproduces per-window softmax exactly while keeping
    the VPU/EUP softmax path 128-lane dense and the MXU pushes near full width.
    wc is pre-folded with alpha_attn * attn_proj * proj-slice, so the output is
    this chunk's contribution to the block projection (bias folded elsewhere)."""
    x = xw_ref[0]                                             # [N, Ca] bf16
    Ca = heads * hd
    qkv = (jnp.dot(x, wqkv_ref[0], preferred_element_type=jnp.float32)
           + bqkv_ref[0])                                     # [N, 3*Ca] f32
    ctxs = []
    for h in range(heads):
        q = qkv[:, h * hd:(h + 1) * hd] * scale
        k = qkv[:, Ca + h * hd:Ca + (h + 1) * hd]
        v = qkv[:, 2 * Ca + h * hd:2 * Ca + (h + 1) * hd]
        att = jax.lax.dot_general(
            q.astype(jnp.bfloat16), k.astype(jnp.bfloat16),
            dimension_numbers=(((1,), (1,)), ((), ())),
            preferred_element_type=jnp.float32)               # [N, N]
        att = att + bias_ref[0, h]
        att = att - jnp.max(att, axis=-1, keepdims=True)
        e = jnp.exp(att)
        p = e * pl.reciprocal(jnp.sum(e, axis=-1, keepdims=True), approx=True)
        ctxs.append(jnp.dot(p.astype(jnp.bfloat16), v.astype(jnp.bfloat16),
                            preferred_element_type=jnp.float32))
    ctx = ctxs[0] if heads == 1 else jnp.concatenate(ctxs, axis=-1)  # [N, Ca]
    o_ref[0] = jnp.dot(ctx.astype(jnp.bfloat16), wc_ref[0],
                       preferred_element_type=jnp.float32).astype(o_ref.dtype)


def fused_window_attention(xw, wqkv, bqkv, bias, wc, *, heads, hd, scale,
                           chunk, out_c):
    G, R, Ca = xw.shape
    N = chunk
    kern = functools.partial(_attn_kernel, heads=heads, hd=hd, scale=scale)
    return pl.pallas_call(
        kern,
        out_shape=jax.ShapeDtypeStruct((G, R, out_c), jnp.bfloat16),
        grid=(G, R // N),
        in_specs=[
            pl.BlockSpec((1, N, Ca), lambda g, c: (g, c, 0)),
            pl.BlockSpec((1, Ca, 3 * Ca), lambda g, c: (g, 0, 0)),
            pl.BlockSpec((1, 1, 3 * Ca), lambda g, c: (g, 0, 0)),
            pl.BlockSpec((1, heads, N, N), lambda g, c: (g, 0, 0, 0)),
            pl.BlockSpec((1, Ca, out_c), lambda g, c: (g, 0, 0)),
        ],
        out_specs=pl.BlockSpec((1, N, out_c), lambda g, c: (g, c, 0)),
        compiler_params=pltpu.CompilerParams(
            dimension_semantics=("parallel", "parallel")),
    )(xw, wqkv, bqkv, bias, wc)


def _final_kernel(skip_ref, a0_ref, a1_ref, a2_ref, a3_ref, zg_ref, xc_ref,
                  pg_ref, wt_ref, crow_ref, lng_ref, lnb_ref,
                  w1_ref, b1_ref, w2_ref, b2_ref, o_ref):
    """Branch-contribution sum (attention pre-projected; G-Conv / T-Conv
    projected here) + folded biases + residual, then norm_2 + MLP + residual."""
    y = (skip_ref[...]
         + a0_ref[...].astype(jnp.float32) + a1_ref[...].astype(jnp.float32)
         + a2_ref[...].astype(jnp.float32) + a3_ref[...].astype(jnp.float32)
         + crow_ref[...])
    y = y + jnp.dot(zg_ref[...], pg_ref[...], preferred_element_type=jnp.float32)
    y = y + jnp.dot(xc_ref[...], wt_ref[...], preferred_element_type=jnp.float32)
    mu = jnp.mean(y, axis=-1, keepdims=True)
    yc = y - mu
    var = jnp.mean(yc * yc, axis=-1, keepdims=True)
    yn = yc * jax.lax.rsqrt(var + 1e-5) * lng_ref[...] + lnb_ref[...]
    h = jnp.dot(yn.astype(jnp.bfloat16), w1_ref[...],
                preferred_element_type=jnp.float32) + b1_ref[...]
    # TODO(synk): tanh GELU (EUP path) instead of the exact erf GELU of
    # nn.GELU(); ~1e-3 max deviation, chosen per the v5e VALU-pressure review.
    h = jax.nn.gelu(h, approximate=True)
    z = jnp.dot(h.astype(jnp.bfloat16), w2_ref[...],
                preferred_element_type=jnp.float32) + b2_ref[...]
    o_ref[...] = y + z


def final_fuse(skip, a_contrib, zg, xc, arrs):
    M, C = skip.shape
    Cq = zg.shape[1]
    KC = xc.shape[1]
    H = arrs["fc1_w"].shape[1]
    row_bytes = C * 4 + 4 * C * 2 + Cq * 2 + KC * 2 + C * 4
    TM = _row_tile(M, row_bytes)

    def row(c):
        return pl.BlockSpec((TM, c), lambda i: (i, 0))

    def full(r, c):
        return pl.BlockSpec((r, c), lambda i: (0, 0))

    return pl.pallas_call(
        _final_kernel,
        out_shape=jax.ShapeDtypeStruct((M, C), jnp.float32),
        grid=(M // TM,),
        in_specs=[row(C), row(C), row(C), row(C), row(C), row(Cq), row(KC),
                  full(Cq, C), full(KC, C), full(1, C), full(1, C), full(1, C),
                  full(C, H), full(1, H), full(H, C), full(1, C)],
        out_specs=row(C),
        compiler_params=pltpu.CompilerParams(dimension_semantics=("parallel",)),
    )(skip, a_contrib[0], a_contrib[1], a_contrib[2], a_contrib[3], zg, xc,
      arrs["pg"], arrs["wt"], arrs["crow"], arrs["ln2_g"], arrs["ln2_b"],
      arrs["fc1_w"], arrs["fc1_b"], arrs["fc2_w"], arrs["fc2_b"])


# ----------------------------------------------------------------------------
# Glue: channels-last partitions (type_*_partition / reverse equivalents)
# ----------------------------------------------------------------------------

def part_1(x, ps):
    B, T, V, C = x.shape; N, L = ps
    x = x.reshape(B, T // N, N, V // L, L, C).transpose(0, 1, 3, 2, 4, 5)
    return x.reshape(-1, N * L, C)


def rev_1(p, B, T, V, ps):
    N, L = ps; C = p.shape[-1]
    x = p.reshape(B, T // N, V // L, N, L, C).transpose(0, 1, 3, 2, 4, 5)
    return x.reshape(B, T, V, C)


def part_2(x, ps):
    B, T, V, C = x.shape; N, K = ps
    x = x.reshape(B, T // N, N, K, V // K, C).transpose(0, 1, 4, 2, 3, 5)
    return x.reshape(-1, N * K, C)


def rev_2(p, B, T, V, ps):
    N, K = ps; C = p.shape[-1]
    x = p.reshape(B, T // N, V // K, N, K, C).transpose(0, 1, 3, 4, 2, 5)
    return x.reshape(B, T, V, C)


def part_3(x, ps):
    B, T, V, C = x.shape; M, L = ps
    x = x.reshape(B, M, T // M, V // L, L, C).transpose(0, 2, 3, 1, 4, 5)
    return x.reshape(-1, M * L, C)


def rev_3(p, B, T, V, ps):
    M, L = ps; C = p.shape[-1]
    x = p.reshape(B, T // M, V // L, M, L, C).transpose(0, 3, 1, 2, 4, 5)
    return x.reshape(B, T, V, C)


def part_4(x, ps):
    B, T, V, C = x.shape; M, K = ps
    x = x.reshape(B, M, T // M, K, V // K, C).transpose(0, 2, 4, 1, 3, 5)
    return x.reshape(-1, M * K, C)


def rev_4(p, B, T, V, ps):
    M, K = ps; C = p.shape[-1]
    x = p.reshape(B, T // M, V // K, M, K, C).transpose(0, 3, 1, 4, 2, 5)
    return x.reshape(B, T, V, C)


# ----------------------------------------------------------------------------
# Glue: relative position bias, dynamic partition MLP, temporal im2col
# ----------------------------------------------------------------------------

def _rel_index_1d(t):
    c = np.arange(t)
    return (c[:, None] - c[None, :]) + (t - 1)


def build_bias_type13(table, pt, pv):
    # TODO(synk): original `view(-1, -1, num_heads)` is invalid PyTorch; implement
    # the intended broadcast of the temporal bias over spatial window positions.
    idx = _rel_index_1d(pt)
    h = table.shape[-1]
    b = table[idx.reshape(-1)].reshape(pt, pt, h)
    b = np.broadcast_to(b[:, None, :, None, :], (pt, pv, pt, pv, h))
    S = pt * pv
    return np.transpose(np.asarray(b).reshape(S, S, h), (2, 0, 1))  # [heads,S,S]


def build_bias_type24(table, pt, pv):
    idx = _rel_index_1d(pt)
    h = table.shape[-1]
    b = table[idx.reshape(-1)].reshape(pt, pt, pv, pv, h)
    b = np.transpose(b, (0, 2, 1, 3, 4))
    S = pt * pv
    return np.transpose(b.reshape(S, S, h), (2, 0, 1))              # [heads,S,S]


def blockdiag_bias(bias_hss, N, neg=-1e30):
    """Tile a per-window [heads, S, S] bias into a block-diagonal [heads, N, N]
    bias whose off-diagonal blocks are -1e30 (acts as the per-window mask)."""
    h, S, _ = bias_hss.shape
    reps = N // S
    tiled = np.tile(bias_hss, (1, reps, reps))
    mask = np.kron(np.eye(reps, dtype=bool), np.ones((S, S), dtype=bool))
    return np.where(mask[None], tiled, neg).astype(np.float32)


def dynamic_partition_size(T, V, pmlp):
    """DynamicPartitionMLP forward (host-side numpy; sizes must be static)."""
    feat = np.array([float(T), float(V)], np.float32)
    h = np.maximum(pmlp["w1"] @ feat + pmlp["b1"], 0.0)
    o = pmlp["w2"] @ h + pmlp["b2"]
    o = np.maximum(o, 0.0)
    o = np.clip(o, 1.0, np.array([pmlp["max_t"], pmlp["max_v"]], np.float32))
    o = np.round(o)
    return int(o[0]), int(o[1])


def im2col_time(x_cl, K):
    """x_cl: [B, T, V, Cc] (bf16) -> [B*T*V, K*Cc]; columns are k-major,
    matching the flattened grouped Conv2d((K,1)) tap matrix."""
    B, T, V, Cc = x_cl.shape
    pad = (K - 1) // 2
    xp = jnp.pad(x_cl, ((0, 0), (pad, pad), (0, 0), (0, 0)))
    xc = jnp.concatenate([xp[:, k:k + T] for k in range(K)], axis=-1)
    return xc.reshape(B * T * V, K * Cc)


# ----------------------------------------------------------------------------
# Parameters (deterministic, synthetic)
# ----------------------------------------------------------------------------

def init_params(key, C, T, V, num_heads, kernel_size, mlp_ratio=4.0):
    ks = jax.random.split(key, 24)

    def nrm(k, shape, std=0.02):
        return std * jax.random.normal(k, shape, jnp.float32)

    p = {}
    p["ln1_g"] = jnp.ones((C,), jnp.float32)
    p["ln1_b"] = jnp.zeros((C,), jnp.float32)
    p["map_w"] = nrm(ks[0], (C, 2 * C))
    p["map_b"] = jnp.zeros((2 * C,), jnp.float32)

    n_g = num_heads // 4
    p["gconv"] = nrm(ks[1], (n_g, V, V))

    # tconv: Conv2d(C//4, C//4, (K,1), groups=n_g) -> per-tap block-diag matrices
    Cc = C // 4
    cpg = Cc // n_g
    w_conv = np.asarray(nrm(ks[2], (Cc, cpg, kernel_size)))
    taps = np.zeros((kernel_size, Cc, Cc), np.float32)
    for g in range(n_g):
        for o in range(cpg):
            for ci in range(cpg):
                taps[:, g * cpg + ci, g * cpg + o] = w_conv[g * cpg + o, ci, :]
    p["tconv_w_taps"] = jnp.asarray(taps)
    p["tconv_b"] = jnp.zeros((Cc,), jnp.float32)

    # TODO(synk): DynamicPartitionMLP init chosen deterministically (zero weights,
    # output bias = 2) so the predicted partition sizes (2, 2) divide T and V.
    hidden = 64
    p["part_mlp"] = []
    for _ in range(4):
        p["part_mlp"].append(dict(
            w1=np.zeros((hidden, 2), np.float32), b1=np.zeros((hidden,), np.float32),
            w2=np.zeros((2, hidden), np.float32), b2=np.array([2.0, 2.0], np.float32),
            max_t=4.0, max_v=4.0))

    heads = max(num_heads // 8, 1)
    # TODO(synk): original passes in_channels//8 to MSA but feeds 3C/8-wide chunks;
    # use Ca = 3C/8 so the qkv / attn_proj shapes type-check.
    Ca = 3 * C // 8
    kidx = 3
    for i in range(4):
        pt, pv = dynamic_partition_size(T, V, p["part_mlp"][i])
        p[f"attn{i}_wqkv"] = nrm(ks[kidx], (Ca, 3 * Ca)); kidx += 1
        p[f"attn{i}_bqkv"] = jnp.zeros((3 * Ca,), jnp.float32)
        p[f"attn{i}_wproj"] = nrm(ks[kidx], (Ca, Ca)); kidx += 1
        p[f"attn{i}_bproj"] = jnp.zeros((Ca,), jnp.float32)
        # TODO(synk): original re-randomizes its (stale-shaped) bias tables every
        # forward; here tables get the runtime-partition shapes, fixed init.
        if i in (0, 2):
            p[f"attn{i}_bias_table"] = nrm(ks[kidx], (2 * pt - 1, heads)); kidx += 1
        else:
            p[f"attn{i}_bias_table"] = nrm(ks[kidx], (2 * pt - 1, pv, pv, heads)); kidx += 1

    # TODO(synk): concatenated features have 2C channels (C/2 conv + 4*3C/8 attn);
    # original proj is Linear(C, C) which cannot consume them -> use Linear(2C, C).
    p["proj_w"] = nrm(ks[kidx], (2 * C, C)); kidx += 1
    p["proj_b"] = jnp.zeros((C,), jnp.float32)
    p["ln2_g"] = jnp.ones((C,), jnp.float32)
    p["ln2_b"] = jnp.zeros((C,), jnp.float32)
    H = int(mlp_ratio * C)
    p["fc1_w"] = nrm(ks[kidx], (C, H)); kidx += 1
    p["fc1_b"] = jnp.zeros((H,), jnp.float32)
    p["fc2_w"] = nrm(ks[kidx], (H, C)); kidx += 1
    p["fc2_b"] = jnp.zeros((C,), jnp.float32)
    p["alpha_attn"] = jnp.ones((4,), jnp.float32)
    p["alpha_gconv"] = jnp.ones((1,), jnp.float32)
    p["alpha_tconv"] = jnp.ones((1,), jnp.float32)
    return p


# ----------------------------------------------------------------------------
# Host-side preparation: static sizes, grouping, folded weights / biases.
# Runs ONCE outside the jitted forward (perf-review item: no per-call folds).
# ----------------------------------------------------------------------------

def prepare_block(params, B, T, V, C, num_heads, kernel_size):
    Cq = C // 4
    Ca = 3 * C // 8
    heads = max(num_heads // 8, 1)
    assert Ca % heads == 0
    hd = Ca // heads
    n_g = num_heads // 4
    K = kernel_size
    M = B * T * V

    if params["gconv"].shape[-1] != V:
        raise ValueError(
            f"gconv dimension {params['gconv'].shape[-1]} does not match V={V}")

    P = np.asarray(params["proj_w"], np.float32)            # [2C, C]
    P_g, P_t = P[:Cq], P[Cq:2 * Cq]
    a_attn = np.asarray(params["alpha_attn"], np.float32)
    a_g = float(np.asarray(params["alpha_gconv"])[0])
    a_t = float(np.asarray(params["alpha_tconv"])[0])

    arrs = {
        "ln1_g": params["ln1_g"].reshape(1, C),
        "ln1_b": params["ln1_b"].reshape(1, C),
        "map_w": params["map_w"].astype(jnp.bfloat16),
        "map_b": params["map_b"].reshape(1, 2 * C),
        "adj": params["gconv"].astype(jnp.bfloat16),         # [n_g, V, V]
        "pg": jnp.asarray(a_g * P_g, jnp.bfloat16),          # [Cq, C]
        "wt": jnp.asarray(
            np.asarray(params["tconv_w_taps"]).reshape(K * Cq, Cq) @ (a_t * P_t),
            jnp.bfloat16),                                   # [K*Cq, C]
        "ln2_g": params["ln2_g"].reshape(1, C),
        "ln2_b": params["ln2_b"].reshape(1, C),
        "fc1_w": params["fc1_w"].astype(jnp.bfloat16),
        "fc1_b": params["fc1_b"].reshape(1, -1),
        "fc2_w": params["fc2_w"].astype(jnp.bfloat16),
        "fc2_b": params["fc2_b"].reshape(1, C),
    }

    # all per-row constant bias terms folded into one row vector
    crow = (np.asarray(params["proj_b"], np.float32)
            + a_t * (np.asarray(params["tconv_b"], np.float32) @ P_t))

    sizes, per_branch = [], []
    for i in range(4):
        pt, pv = dynamic_partition_size(T, V, params["part_mlp"][i])
        if T % pt != 0 or V % pv != 0:
            raise ValueError(
                f"Partition sizes {(pt, pv)} do not divide T={T} or V={V}")
        sizes.append((pt, pv))
        P_ai = P[2 * Cq + i * Ca: 2 * Cq + (i + 1) * Ca]      # [Ca, C]
        wqkv = np.asarray(params[f"attn{i}_wqkv"], np.float32)
        bqkv = np.asarray(params[f"attn{i}_bqkv"], np.float32)
        wproj = np.asarray(params[f"attn{i}_wproj"], np.float32)
        bproj = np.asarray(params[f"attn{i}_bproj"], np.float32)
        crow = crow + a_attn[i] * (bproj @ P_ai)
        wc = a_attn[i] * (wproj @ P_ai)                       # [Ca, C]
        table = np.asarray(params[f"attn{i}_bias_table"], np.float32)
        if i in (0, 2):
            bias = build_bias_type13(table, pt, pv)
        else:
            bias = build_bias_type24(table, pt, pv)           # [heads, S, S]
        per_branch.append(dict(wqkv=wqkv, bqkv=bqkv, wc=wc, bias=bias))
    arrs["crow"] = jnp.asarray(crow.reshape(1, C), jnp.float32)

    # group branches by window size S; pick a row-chunk N per group
    group_map = {}
    for i in range(4):
        S = sizes[i][0] * sizes[i][1]
        group_map.setdefault(S, []).append(i)
    groups = []
    for gk, (S, idxs) in enumerate(sorted(group_map.items())):
        N = _pick_chunk(M, S)
        arrs[f"g{gk}_wqkv"] = jnp.asarray(
            np.stack([per_branch[i]["wqkv"] for i in idxs]), jnp.bfloat16)
        arrs[f"g{gk}_bqkv"] = jnp.asarray(
            np.stack([per_branch[i]["bqkv"] for i in idxs]).reshape(
                len(idxs), 1, 3 * Ca), jnp.float32)
        arrs[f"g{gk}_wc"] = jnp.asarray(
            np.stack([per_branch[i]["wc"] for i in idxs]), jnp.bfloat16)
        arrs[f"g{gk}_bias"] = jnp.asarray(
            np.stack([blockdiag_bias(per_branch[i]["bias"], N) for i in idxs]),
            jnp.float32)
        groups.append(dict(S=S, N=N, idxs=idxs))

    static = dict(sizes=sizes, groups=groups, heads=heads, hd=hd, Ca=Ca, Cq=Cq,
                  n_g=n_g, K=K, scale=float(heads) ** -0.5)
    return static, arrs


# ----------------------------------------------------------------------------
# SkateFormerBlock forward
# ----------------------------------------------------------------------------

def skateformer_block_forward(x, arrs, static, *, B, C, T, V):
    """x: [B, C, T, V] (PyTorch NCHW).  Returns [B, C, T, V] float32."""
    M = B * T * V
    Cq, Ca, K, n_g = static["Cq"], static["Ca"], static["K"], static["n_g"]

    x_cl = jnp.transpose(x, (0, 2, 3, 1))                    # [B, T, V, C]
    skip = x_cl.reshape(M, C)

    # ---- norm_1 + mapping (fused kernel, bf16 output) ----
    f = ln_map(skip, arrs["ln1_g"], arrs["ln1_b"], arrs["map_w"], arrs["map_b"])
    f4 = f.reshape(B, T, V, 2 * C)                           # bf16

    # ---- G-Conv adjacency: tiny per-group [V, V] einsum (bf16); the [Cq, C]
    # proj matmul lives in the final fused kernel (no dense adjacency x proj
    # fold, per the review).
    # TODO(synk): the adjacency einsum stays in XLA; it could move in-kernel.
    cpg = Cq // n_g
    fg = f4[..., :Cq]
    zs = [jnp.einsum('btuc,vu->btvc', fg[..., g * cpg:(g + 1) * cpg],
                     arrs["adj"][g], preferred_element_type=jnp.float32)
          for g in range(n_g)]
    zg = jnp.concatenate(zs, axis=-1).astype(jnp.bfloat16).reshape(M, Cq)

    # ---- T-Conv im2col (bf16); conv matmul lives in the final fused kernel ----
    xc = im2col_time(f4[..., Cq:2 * Cq], K)                  # [M, K*Cq] bf16

    # ---- partition-attention branches, grouped by window size ----
    part_fns = [part_1, part_2, part_3, part_4]
    rev_fns = [rev_1, rev_2, rev_3, rev_4]
    a_contrib = [None] * 4
    for gk, grp in enumerate(static["groups"]):
        idxs = grp["idxs"]
        xw = jnp.stack(
            [part_fns[i](f4[..., 2 * Cq + i * Ca: 2 * Cq + (i + 1) * Ca],
                         static["sizes"][i]).reshape(M, Ca) for i in idxs],
            axis=0)                                          # [G, M, Ca] bf16
        out = fused_window_attention(
            xw, arrs[f"g{gk}_wqkv"], arrs[f"g{gk}_bqkv"], arrs[f"g{gk}_bias"],
            arrs[f"g{gk}_wc"], heads=static["heads"], hd=static["hd"],
            scale=static["scale"], chunk=grp["N"], out_c=C)
        for j, i in enumerate(idxs):
            a_contrib[i] = rev_fns[i](out[j], B, T, V,
                                      static["sizes"][i]).reshape(M, C)

    # ---- fused: branch sum + proj matmuls + residual + norm_2 + MLP + residual
    out2 = final_fuse(skip, a_contrib, zg, xc, arrs)
    return jnp.transpose(out2.reshape(B, T, V, C), (0, 3, 1, 2))


# ----------------------------------------------------------------------------

if __name__ == "__main__":
    B, C, T, V = 2, 32, 8, 16          # in_channels=32, num_points=V=16
    num_heads, kernel_size = 8, 7

    root = jax.random.PRNGKey(0)
    kx, kp = jax.random.split(root)
    x = jax.random.normal(kx, (B, C, T, V), jnp.float32)
    params = init_params(kp, C, T, V, num_heads, kernel_size)

    static, arrs = prepare_block(params, B, T, V, C, num_heads, kernel_size)

    fwd = jax.jit(lambda inp, a: skateformer_block_forward(
        inp, a, static, B=B, C=C, T=T, V=V))
    out = jax.block_until_ready(fwd(x, arrs))
    assert out.shape == (B, C, T, V) and out.dtype == jnp.float32
    assert bool(jnp.all(jnp.isfinite(out)))
    print("KERNEL_OK")
</pallas_src>

<mosaic_0001>
module attributes {stable_mosaic.version = 11 : i64} {
  func.func @_ln_map_kernel(%arg0: i32, %arg1: memref<128x32xf32, #tpu.memory_space<vmem>>, %arg2: memref<1x32xf32, #tpu.memory_space<vmem>>, %arg3: memref<1x32xf32, #tpu.memory_space<vmem>>, %arg4: memref<32x64xbf16, #tpu.memory_space<vmem>>, %arg5: memref<1x64xf32, #tpu.memory_space<vmem>>, %arg6: memref<128x64xbf16, #tpu.memory_space<vmem>>) attributes {dimension_semantics = [#tpu.dimension_semantics<parallel>], iteration_bounds = array<i64: 2>, scalar_prefetch = 0 : i64, scratch_operands = 0 : i64, tpu.core_type = #tpu.core_type<tc>, window_params = [{transform_indices = @transform_0, window_bounds = array<i64: 128, 32>}, {pipeline_mode = #tpu.pipeline_mode<synchronous>, transform_indices = @transform_1, window_bounds = array<i64: 1, 32>}, {pipeline_mode = #tpu.pipeline_mode<synchronous>, transform_indices = @transform_2, window_bounds = array<i64: 1, 32>}, {pipeline_mode = #tpu.pipeline_mode<synchronous>, transform_indices = @transform_3, window_bounds = array<i64: 32, 64>}, {pipeline_mode = #tpu.pipeline_mode<synchronous>, transform_indices = @transform_4, window_bounds = array<i64: 1, 64>}, {transform_indices = @transform_5, window_bounds = array<i64: 128, 64>}]} {
    %c0 = arith.constant 0 : index
    %c0_0 = arith.constant 0 : index
    %0 = vector.load %arg1[%c0, %c0_0] : memref<128x32xf32, #tpu.memory_space<vmem>>, vector<128x32xf32>
    %cst = arith.constant dense<0.000000e+00> : vector<128xf32>
    %1 = vector.multi_reduction <add>, %0, %cst [1] : vector<128x32xf32> to vector<128xf32>
    %2 = vector.shape_cast %1 : vector<128xf32> to vector<128x1xf32>
    %cst_1 = arith.constant 3.200000e+01 : f32
    %3 = vector.broadcast %cst_1 : f32 to vector<128x1xf32>
    %4 = arith.divf %2, %3 : vector<128x1xf32>
    %5 = vector.broadcast %4 : vector<128x1xf32> to vector<128x32xf32>
    %6 = arith.subf %0, %5 : vector<128x32xf32>
    %7 = arith.mulf %6, %6 : vector<128x32xf32>
    %cst_2 = arith.constant dense<0.000000e+00> : vector<128xf32>
    %8 = vector.multi_reduction <add>, %7, %cst_2 [1] : vector<128x32xf32> to vector<128xf32>
    %9 = vector.shape_cast %8 : vector<128xf32> to vector<128x1xf32>
    %cst_3 = arith.constant 3.200000e+01 : f32
    %10 = vector.broadcast %cst_3 : f32 to vector<128x1xf32>
    %11 = arith.divf %9, %10 : vector<128x1xf32>
    %cst_4 = arith.constant 9.99999974E-6 : f32
    %12 = vector.broadcast %cst_4 : f32 to vector<128x1xf32>
    %13 = arith.addf %11, %12 : vector<128x1xf32>
    %14 = math.rsqrt %13 : vector<128x1xf32>
    %15 = vector.broadcast %14 : vector<128x1xf32> to vector<128x32xf32>
    %16 = arith.mulf %6, %15 : vector<128x32xf32>
    %c0_5 = arith.constant 0 : index
    %c0_6 = arith.constant 0 : index
    %17 = vector.load %arg2[%c0_5, %c0_6] : memref<1x32xf32, #tpu.memory_space<vmem>>, vector<1x32xf32>
    %18 = vector.broadcast %17 : vector<1x32xf32> to vector<128x32xf32>
    %19 = arith.mulf %16, %18 : vector<128x32xf32>
    %c0_7 = arith.constant 0 : index
    %c0_8 = arith.constant 0 : index
    %20 = vector.load %arg3[%c0_7, %c0_8] : memref<1x32xf32, #tpu.memory_space<vmem>>, vector<1x32xf32>
    %21 = vector.broadcast %20 : vector<1x32xf32> to vector<128x32xf32>
    %22 = arith.addf %19, %21 : vector<128x32xf32>
    %23 = arith.truncf %22 : vector<128x32xf32> to vector<128x32xbf16>
    %c0_9 = arith.constant 0 : index
    %c0_10 = arith.constant 0 : index
    %24 = vector.load %arg4[%c0_9, %c0_10] : memref<32x64xbf16, #tpu.memory_space<vmem>>, vector<32x64xbf16>
    %cst_11 = arith.constant dense<0.000000e+00> : vector<128x64xf32>
    %25 = tpu.matmul %23, %24, %cst_11 {dimension_numbers = #tpu.dot_dimension_numbers<[1], [0], [0], [1], [0, 0, 1, 1], [], []>} : vector<128x32xbf16>, vector<32x64xbf16>, vector<128x64xf32> -> vector<128x64xf32>
    %c0_12 = arith.constant 0 : index
    %c0_13 = arith.constant 0 : index
    %26 = vector.load %arg5[%c0_12, %c0_13] : memref<1x64xf32, #tpu.memory_space<vmem>>, vector<1x64xf32>
    %27 = vector.broadcast %26 : vector<1x64xf32> to vector<128x64xf32>
    %28 = arith.addf %25, %27 : vector<128x64xf32>
    %29 = arith.truncf %28 : vector<128x64xf32> to vector<128x64xbf16>
    %c0_14 = arith.constant 0 : index
    %c0_15 = arith.constant 0 : index
    %30 = vector.load %arg6[%c0_14, %c0_15] : memref<128x64xbf16, #tpu.memory_space<vmem>>, vector<128x64xbf16>
    tpu.vector_store %arg6[%c0_14, %c0_15], %29 {strides = array<i32>} : memref<128x64xbf16, #tpu.memory_space<vmem>>, vector<128x64xbf16>,
    return
  }
  func.func @transform_0(%arg0: i32) -> (i32, i32) {
    %c0_i32 = arith.constant 0 : i32
    %c0_i32_0 = arith.constant 0 : i32
    return %arg0, %c0_i32 : i32, i32
  }
  func.func @transform_1(%arg0: i32) -> (i32, i32) {
    %c0_i32 = arith.constant 0 : i32
    %c0_i32_0 = arith.constant 0 : i32
    %c0_i32_1 = arith.constant 0 : i32
    return %c0_i32, %c0_i32_0 : i32, i32
  }
  func.func @transform_2(%arg0: i32) -> (i32, i32) {
    %c0_i32 = arith.constant 0 : i32
    %c0_i32_0 = arith.constant 0 : i32
    %c0_i32_1 = arith.constant 0 : i32
    return %c0_i32, %c0_i32_0 : i32, i32
  }
  func.func @transform_3(%arg0: i32) -> (i32, i32) {
    %c0_i32 = arith.constant 0 : i32
    %c0_i32_0 = arith.constant 0 : i32
    %c0_i32_1 = arith.constant 0 : i32
    return %c0_i32, %c0_i32_0 : i32, i32
  }
  func.func @transform_4(%arg0: i32) -> (i32, i32) {
    %c0_i32 = arith.constant 0 : i32
    %c0_i32_0 = arith.constant 0 : i32
    %c0_i32_1 = arith.constant 0 : i32
    return %c0_i32, %c0_i32_0 : i32, i32
  }
  func.func @transform_5(%arg0: i32) -> (i32, i32) {
    %c0_i32 = arith.constant 0 : i32
    %c0_i32_0 = arith.constant 0 : i32
    return %arg0, %c0_i32 : i32, i32
  }
}

module attributes {stable_mosaic.version = 11 : i64} {
  func.func @_attn_kernel(%arg0: i32, %arg1: i32, %arg2: memref<1x128x12xbf16, #tpu.memory_space<vmem>>, %arg3: memref<1x12x36xbf16, #tpu.memory_space<vmem>>, %arg4: memref<1x1x36xf32, #tpu.memory_space<vmem>>, %arg5: memref<1x1x128x128xf32, #tpu.memory_space<vmem>>, %arg6: memref<1x12x32xbf16, #tpu.memory_space<vmem>>, %arg7: memref<1x128x32xbf16, #tpu.memory_space<vmem>>) attributes {dimension_semantics = [#tpu.dimension_semantics<parallel>, #tpu.dimension_semantics<parallel>], iteration_bounds = array<i64: 4, 2>, scalar_prefetch = 0 : i64, scratch_operands = 0 : i64, tpu.core_type = #tpu.core_type<tc>, window_params = [{transform_indices = @transform_0, window_bounds = array<i64: 1, 128, 12>}, {transform_indices = @transform_1, window_bounds = array<i64: 1, 12, 36>}, {transform_indices = @transform_2, window_bounds = array<i64: 1, 1, 36>}, {transform_indices = @transform_3, window_bounds = array<i64: 1, 1, 128, 128>}, {transform_indices = @transform_4, window_bounds = array<i64: 1, 12, 32>}, {transform_indices = @transform_5, window_bounds = array<i64: 1, 128, 32>}]} {
    %c0 = arith.constant 0 : index
    %c0_0 = arith.constant 0 : index
    %c0_1 = arith.constant 0 : index
    %0 = vector.load %arg2[%c0, %c0_0, %c0_1] : memref<1x128x12xbf16, #tpu.memory_space<vmem>>, vector<1x128x12xbf16>
    %1 = vector.shape_cast %0 : vector<1x128x12xbf16> to vector<128x12xbf16>
    %c0_2 = arith.constant 0 : index
    %c0_3 = arith.constant 0 : index
    %c0_4 = arith.constant 0 : index
    %2 = vector.load %arg3[%c0_2, %c0_3, %c0_4] : memref<1x12x36xbf16, #tpu.memory_space<vmem>>, vector<1x12x36xbf16>
    %3 = vector.shape_cast %2 : vector<1x12x36xbf16> to vector<12x36xbf16>
    %cst = arith.constant dense<0.000000e+00> : vector<128x36xf32>
    %4 = tpu.matmul %1, %3, %cst {dimension_numbers = #tpu.dot_dimension_numbers<[1], [0], [0], [1], [0, 0, 1, 1], [], []>} : vector<128x12xbf16>, vector<12x36xbf16>, vector<128x36xf32> -> vector<128x36xf32>
    %c0_5 = arith.constant 0 : index
    %c0_6 = arith.constant 0 : index
    %c0_7 = arith.constant 0 : index
    %5 = vector.load %arg4[%c0_5, %c0_6, %c0_7] : memref<1x1x36xf32, #tpu.memory_space<vmem>>, vector<1x1x36xf32>
    %6 = vector.shape_cast %5 : vector<1x1x36xf32> to vector<1x36xf32>
    %7 = vector.broadcast %6 : vector<1x36xf32> to vector<128x36xf32>
    %8 = arith.addf %4, %7 : vector<128x36xf32>
    %9 = vector.extract_strided_slice %8 {offsets = [0, 0], sizes = [128, 12], strides = [1, 1]} : vector<128x36xf32> to vector<128x12xf32>
    %cst_8 = arith.constant 1.000000e+00 : f32
    %10 = vector.broadcast %cst_8 : f32 to vector<128x12xf32>
    %11 = arith.mulf %9, %10 : vector<128x12xf32>
    %12 = vector.extract_strided_slice %8 {offsets = [0, 12], sizes = [128, 12], strides = [1, 1]} : vector<128x36xf32> to vector<128x12xf32>
    %13 = vector.extract_strided_slice %8 {offsets = [0, 24], sizes = [128, 12], strides = [1, 1]} : vector<128x36xf32> to vector<128x12xf32>
    %14 = arith.truncf %11 : vector<128x12xf32> to vector<128x12xbf16>
    %15 = arith.truncf %12 : vector<128x12xf32> to vector<128x12xbf16>
    %cst_9 = arith.constant dense<0.000000e+00> : vector<128x128xf32>
    %16 = tpu.matmul %14, %15, %cst_9 {dimension_numbers = #tpu.dot_dimension_numbers<[1], [1], [0], [0], [0, 0, 1, 0], [], []>} : vector<128x12xbf16>, vector<128x12xbf16>, vector<128x128xf32> -> vector<128x128xf32>
    %c0_10 = arith.constant 0 : index
    %c0_11 = arith.constant 0 : index
    %c0_12 = arith.constant 0 : index
    %c0_13 = arith.constant 0 : index
    %17 = vector.load %arg5[%c0_10, %c0_11, %c0_12, %c0_13] : memref<1x1x128x128xf32, #tpu.memory_space<vmem>>, vector<1x1x128x128xf32>
    %18 = vector.shape_cast %17 : vector<1x1x128x128xf32> to vector<128x128xf32>
    %19 = arith.addf %16, %18 : vector<128x128xf32>
    %cst_14 = arith.constant dense<0xFF800000> : vector<128xf32>
    %20 = vector.multi_reduction <maximumf>, %19, %cst_14 [1] : vector<128x128xf32> to vector<128xf32>
    %21 = vector.shape_cast %20 : vector<128xf32> to vector<128x1xf32>
    %22 = vector.broadcast %21 : vector<128x1xf32> to vector<128x128xf32>
    %23 = arith.subf %19, %22 : vector<128x128xf32>
    %24 = math.exp %23 : vector<128x128xf32>
    %cst_15 = arith.constant dense<0.000000e+00> : vector<128xf32>
    %25 = vector.multi_reduction <add>, %24, %cst_15 [1] : vector<128x128xf32> to vector<128xf32>
    %26 = vector.shape_cast %25 : vector<128xf32> to vector<128x1xf32>
    %27 = tpu.reciprocal %26 {approx = true} : vector<128x1xf32> -> vector<128x1xf32>
    %28 = vector.broadcast %27 : vector<128x1xf32> to vector<128x128xf32>
    %29 = arith.mulf %24, %28 : vector<128x128xf32>
    %30 = arith.truncf %29 : vector<128x128xf32> to vector<128x128xbf16>
    %31 = arith.truncf %13 : vector<128x12xf32> to vector<128x12xbf16>
    %cst_16 = arith.constant dense<0.000000e+00> : vector<128x12xf32>
    %32 = tpu.matmul %30, %31, %cst_16 {dimension_numbers = #tpu.dot_dimension_numbers<[1], [0], [0], [1], [0, 0, 1, 1], [], []>} : vector<128x128xbf16>, vector<128x12xbf16>, vector<128x12xf32> -> vector<128x12xf32>
    %33 = arith.truncf %32 : vector<128x12xf32> to vector<128x12xbf16>
    %c0_17 = arith.constant 0 : index
    %c0_18 = arith.constant 0 : index
    %c0_19 = arith.constant 0 : index
    %34 = vector.load %arg6[%c0_17, %c0_18, %c0_19] : memref<1x12x32xbf16, #tpu.memory_space<vmem>>, vector<1x12x32xbf16>
    %35 = vector.shape_cast %34 : vector<1x12x32xbf16> to vector<12x32xbf16>
    %cst_20 = arith.constant dense<0.000000e+00> : vector<128x32xf32>
    %36 = tpu.matmul %33, %35, %cst_20 {dimension_numbers = #tpu.dot_dimension_numbers<[1], [0], [0], [1], [0, 0, 1, 1], [], []>} : vector<128x12xbf16>, vector<12x32xbf16>, vector<128x32xf32> -> vector<128x32xf32>
    %37 = arith.truncf %36 : vector<128x32xf32> to vector<128x32xbf16>
    %c0_21 = arith.constant 0 : index
    %c0_22 = arith.constant 0 : index
    %c0_23 = arith.constant 0 : index
    %38 = vector.load %arg7[%c0_21, %c0_22, %c0_23] : memref<1x128x32xbf16, #tpu.memory_space<vmem>>, vector<1x128x32xbf16>
    %39 = vector.shape_cast %38 : vector<1x128x32xbf16> to vector<128x32xbf16>
    %40 = vector.shape_cast %37 : vector<128x32xbf16> to vector<1x128x32xbf16>
    tpu.vector_store %arg7[%c0_21, %c0_22, %c0_23], %40 {strides = array<i32>} : memref<1x128x32xbf16, #tpu.memory_space<vmem>>, vector<1x128x32xbf16>,
    return
  }
  func.func @transform_0(%arg0: i32, %arg1: i32) -> (i32, i32, i32) {
    %c0_i32 = arith.constant 0 : i32
    %c0_i32_0 = arith.constant 0 : i32
    return %arg0, %arg1, %c0_i32 : i32, i32, i32
  }
  func.func @transform_1(%arg0: i32, %arg1: i32) -> (i32, i32, i32) {
    %c0_i32 = arith.constant 0 : i32
    %c0_i32_0 = arith.constant 0 : i32
    %c0_i32_1 = arith.constant 0 : i32
    return %arg0, %c0_i32, %c0_i32_0 : i32, i32, i32
  }
  func.func @transform_2(%arg0: i32, %arg1: i32) -> (i32, i32, i32) {
    %c0_i32 = arith.constant 0 : i32
    %c0_i32_0 = arith.constant 0 : i32
    %c0_i32_1 = arith.constant 0 : i32
    return %arg0, %c0_i32, %c0_i32_0 : i32, i32, i32
  }
  func.func @transform_3(%arg0: i32, %arg1: i32) -> (i32, i32, i32, i32) {
    %c0_i32 = arith.constant 0 : i32
    %c0_i32_0 = arith.constant 0 : i32
    %c0_i32_1 = arith.constant 0 : i32
    %c0_i32_2 = arith.constant 0 : i32
    return %arg0, %c0_i32, %c0_i32_0, %c0_i32_1 : i32, i32, i32, i32
  }
  func.func @transform_4(%arg0: i32, %arg1: i32) -> (i32, i32, i32) {
    %c0_i32 = arith.constant 0 : i32
    %c0_i32_0 = arith.constant 0 : i32
    %c0_i32_1 = arith.constant 0 : i32
    return %arg0, %c0_i32, %c0_i32_0 : i32, i32, i32
  }
  func.func @transform_5(%arg0: i32, %arg1: i32) -> (i32, i32, i32) {
    %c0_i32 = arith.constant 0 : i32
    %c0_i32_0 = arith.constant 0 : i32
    return %arg0, %arg1, %c0_i32 : i32, i32, i32
  }
}

module attributes {stable_mosaic.version = 11 : i64} {
  func.func @_final_kernel(%arg0: i32, %arg1: memref<128x32xf32, #tpu.memory_space<vmem>>, %arg2: memref<128x32xbf16, #tpu.memory_space<vmem>>, %arg3: memref<128x32xbf16, #tpu.memory_space<vmem>>, %arg4: memref<128x32xbf16, #tpu.memory_space<vmem>>, %arg5: memref<128x32xbf16, #tpu.memory_space<vmem>>, %arg6: memref<128x8xbf16, #tpu.memory_space<vmem>>, %arg7: memref<128x56xbf16, #tpu.memory_space<vmem>>, %arg8: memref<8x32xbf16, #tpu.memory_space<vmem>>, %arg9: memref<56x32xbf16, #tpu.memory_space<vmem>>, %arg10: memref<1x32xf32, #tpu.memory_space<vmem>>, %arg11: memref<1x32xf32, #tpu.memory_space<vmem>>, %arg12: memref<1x32xf32, #tpu.memory_space<vmem>>, %arg13: memref<32x128xbf16, #tpu.memory_space<vmem>>, %arg14: memref<1x128xf32, #tpu.memory_space<vmem>>, %arg15: memref<128x32xbf16, #tpu.memory_space<vmem>>, %arg16: memref<1x32xf32, #tpu.memory_space<vmem>>, %arg17: memref<128x32xf32, #tpu.memory_space<vmem>>) attributes {dimension_semantics = [#tpu.dimension_semantics<parallel>], iteration_bounds = array<i64: 2>, scalar_prefetch = 0 : i64, scratch_operands = 0 : i64, tpu.core_type = #tpu.core_type<tc>, window_params = [{transform_indices = @transform_0, window_bounds = array<i64: 128, 32>}, {transform_indices = @transform_1, window_bounds = array<i64: 128, 32>}, {transform_indices = @transform_2, window_bounds = array<i64: 128, 32>}, {transform_indices = @transform_3, window_bounds = array<i64: 128, 32>}, {transform_indices = @transform_4, window_bounds = array<i64: 128, 32>}, {transform_indices = @transform_5, window_bounds = array<i64: 128, 8>}, {transform_indices = @transform_6, window_bounds = array<i64: 128, 56>}, {pipeline_mode = #tpu.pipeline_mode<synchronous>, transform_indices = @transform_7, window_bounds = array<i64: 8, 32>}, {pipeline_mode = #tpu.pipeline_mode<synchronous>, transform_indices = @transform_8, window_bounds = array<i64: 56, 32>}, {pipeline_mode = #tpu.pipeline_mode<synchronous>, transform_indices = @transform_9, window_bounds = array<i64: 1, 32>}, {pipeline_mode = #tpu.pipeline_mode<synchronous>, transform_indices = @transform_10, window_bounds = array<i64: 1, 32>}, {pipeline_mode = #tpu.pipeline_mode<synchronous>, transform_indices = @transform_11, window_bounds = array<i64: 1, 32>}, {pipeline_mode = #tpu.pipeline_mode<synchronous>, transform_indices = @transform_12, window_bounds = array<i64: 32, 128>}, {pipeline_mode = #tpu.pipeline_mode<synchronous>, transform_indices = @transform_13, window_bounds = array<i64: 1, 128>}, {pipeline_mode = #tpu.pipeline_mode<synchronous>, transform_indices = @transform_14, window_bounds = array<i64: 128, 32>}, {pipeline_mode = #tpu.pipeline_mode<synchronous>, transform_indices = @transform_15, window_bounds = array<i64: 1, 32>}, {transform_indices = @transform_16, window_bounds = array<i64: 128, 32>}]} {
    %c0 = arith.constant 0 : index
    %c0_0 = arith.constant 0 : index
    %0 = vector.load %arg1[%c0, %c0_0] : memref<128x32xf32, #tpu.memory_space<vmem>>, vector<128x32xf32>
    %c0_1 = arith.constant 0 : index
    %c0_2 = arith.constant 0 : index
    %1 = vector.load %arg2[%c0_1, %c0_2] : memref<128x32xbf16, #tpu.memory_space<vmem>>, vector<128x32xbf16>
    %2 = arith.extf %1 : vector<128x32xbf16> to vector<128x32xf32>
    %3 = arith.addf %0, %2 : vector<128x32xf32>
    %c0_3 = arith.constant 0 : index
    %c0_4 = arith.constant 0 : index
    %4 = vector.load %arg3[%c0_3, %c0_4] : memref<128x32xbf16, #tpu.memory_space<vmem>>, vector<128x32xbf16>
    %5 = arith.extf %4 : vector<128x32xbf16> to vector<128x32xf32>
    %6 = arith.addf %3, %5 : vector<128x32xf32>
    %c0_5 = arith.constant 0 : index
    %c0_6 = arith.constant 0 : index
    %7 = vector.load %arg4[%c0_5, %c0_6] : memref<128x32xbf16, #tpu.memory_space<vmem>>, vector<128x32xbf16>
    %8 = arith.extf %7 : vector<128x32xbf16> to vector<128x32xf32>
    %9 = arith.addf %6, %8 : vector<128x32xf32>
    %c0_7 = arith.constant 0 : index
    %c0_8 = arith.constant 0 : index
    %10 = vector.load %arg5[%c0_7, %c0_8] : memref<128x32xbf16, #tpu.memory_space<vmem>>, vector<128x32xbf16>
    %11 = arith.extf %10 : vector<128x32xbf16> to vector<128x32xf32>
    %12 = arith.addf %9, %11 : vector<128x32xf32>
    %c0_9 = arith.constant 0 : index
    %c0_10 = arith.constant 0 : index
    %13 = vector.load %arg10[%c0_9, %c0_10] : memref<1x32xf32, #tpu.memory_space<vmem>>, vector<1x32xf32>
    %14 = vector.broadcast %13 : vector<1x32xf32> to vector<128x32xf32>
    %15 = arith.addf %12, %14 : vector<128x32xf32>
    %c0_11 = arith.constant 0 : index
    %c0_12 = arith.constant 0 : index
    %16 = vector.load %arg6[%c0_11, %c0_12] : memref<128x8xbf16, #tpu.memory_space<vmem>>, vector<128x8xbf16>
    %c0_13 = arith.constant 0 : index
    %c0_14 = arith.constant 0 : index
    %17 = vector.load %arg8[%c0_13, %c0_14] : memref<8x32xbf16, #tpu.memory_space<vmem>>, vector<8x32xbf16>
    %cst = arith.constant dense<0.000000e+00> : vector<128x32xf32>
    %18 = tpu.matmul %16, %17, %cst {dimension_numbers = #tpu.dot_dimension_numbers<[1], [0], [0], [1], [0, 0, 1, 1], [], []>} : vector<128x8xbf16>, vector<8x32xbf16>, vector<128x32xf32> -> vector<128x32xf32>
    %19 = arith.addf %15, %18 : vector<128x32xf32>
    %c0_15 = arith.constant 0 : index
    %c0_16 = arith.constant 0 : index
    %20 = vector.load %arg7[%c0_15, %c0_16] : memref<128x56xbf16, #tpu.memory_space<vmem>>, vector<128x56xbf16>
    %c0_17 = arith.constant 0 : index
    %c0_18 = arith.constant 0 : index
    %21 = vector.load %arg9[%c0_17, %c0_18] : memref<56x32xbf16, #tpu.memory_space<vmem>>, vector<56x32xbf16>
    %cst_19 = arith.constant dense<0.000000e+00> : vector<128x32xf32>
    %22 = tpu.matmul %20, %21, %cst_19 {dimension_numbers = #tpu.dot_dimension_numbers<[1], [0], [0], [1], [0, 0, 1, 1], [], []>} : vector<128x56xbf16>, vector<56x32xbf16>, vector<128x32xf32> -> vector<128x32xf32>
    %23 = arith.addf %19, %22 : vector<128x32xf32>
    %cst_20 = arith.constant dense<0.000000e+00> : vector<128xf32>
    %24 = vector.multi_reduction <add>, %23, %cst_20 [1] : vector<128x32xf32> to vector<128xf32>
    %25 = vector.shape_cast %24 : vector<128xf32> to vector<128x1xf32>
    %cst_21 = arith.constant 3.200000e+01 : f32
    %26 = vector.broadcast %cst_21 : f32 to vector<128x1xf32>
    %27 = arith.divf %25, %26 : vector<128x1xf32>
    %28 = vector.broadcast %27 : vector<128x1xf32> to vector<128x32xf32>
    %29 = arith.subf %23, %28 : vector<128x32xf32>
    %30 = arith.mulf %29, %29 : vector<128x32xf32>
    %cst_22 = arith.constant dense<0.000000e+00> : vector<128xf32>
    %31 = vector.multi_reduction <add>, %30, %cst_22 [1] : vector<128x32xf32> to vector<128xf32>
    %32 = vector.shape_cast %31 : vector<128xf32> to vector<128x1xf32>
    %cst_23 = arith.constant 3.200000e+01 : f32
    %33 = vector.broadcast %cst_23 : f32 to vector<128x1xf32>
    %34 = arith.divf %32, %33 : vector<128x1xf32>
    %cst_24 = arith.constant 9.99999974E-6 : f32
    %35 = vector.broadcast %cst_24 : f32 to vector<128x1xf32>
    %36 = arith.addf %34, %35 : vector<128x1xf32>
    %37 = math.rsqrt %36 : vector<128x1xf32>
    %38 = vector.broadcast %37 : vector<128x1xf32> to vector<128x32xf32>
    %39 = arith.mulf %29, %38 : vector<128x32xf32>
    %c0_25 = arith.constant 0 : index
    %c0_26 = arith.constant 0 : index
    %40 = vector.load %arg11[%c0_25, %c0_26] : memref<1x32xf32, #tpu.memory_space<vmem>>, vector<1x32xf32>
    %41 = vector.broadcast %40 : vector<1x32xf32> to vector<128x32xf32>
    %42 = arith.mulf %39, %41 : vector<128x32xf32>
    %c0_27 = arith.constant 0 : index
    %c0_28 = arith.constant 0 : index
    %43 = vector.load %arg12[%c0_27, %c0_28] : memref<1x32xf32, #tpu.memory_space<vmem>>, vector<1x32xf32>
    %44 = vector.broadcast %43 : vector<1x32xf32> to vector<128x32xf32>
    %45 = arith.addf %42, %44 : vector<128x32xf32>
    %46 = arith.truncf %45 : vector<128x32xf32> to vector<128x32xbf16>
    %c0_29 = arith.constant 0 : index
    %c0_30 = arith.constant 0 : index
    %47 = vector.load %arg13[%c0_29, %c0_30] : memref<32x128xbf16, #tpu.memory_space<vmem>>, vector<32x128xbf16>
    %cst_31 = arith.constant dense<0.000000e+00> : vector<128x128xf32>
    %48 = tpu.matmul %46, %47, %cst_31 {dimension_numbers = #tpu.dot_dimension_numbers<[1], [0], [0], [1], [0, 0, 1, 1], [], []>} : vector<128x32xbf16>, vector<32x128xbf16>, vector<128x128xf32> -> vector<128x128xf32>
    %c0_32 = arith.constant 0 : index
    %c0_33 = arith.constant 0 : index
    %49 = vector.load %arg14[%c0_32, %c0_33] : memref<1x128xf32, #tpu.memory_space<vmem>>, vector<1x128xf32>
    %50 = vector.broadcast %49 : vector<1x128xf32> to vector<128x128xf32>
    %51 = arith.addf %48, %50 : vector<128x128xf32>
    %52 = arith.mulf %51, %51 : vector<128x128xf32>
    %53 = arith.mulf %51, %52 : vector<128x128xf32>
    %cst_34 = arith.constant 4.471500e-02 : f32
    %54 = vector.broadcast %cst_34 : f32 to vector<128x128xf32>
    %55 = arith.mulf %54, %53 : vector<128x128xf32>
    %56 = arith.addf %51, %55 : vector<128x128xf32>
    %cst_35 = arith.constant 0.797884583 : f32
    %57 = vector.broadcast %cst_35 : f32 to vector<128x128xf32>
    %58 = arith.mulf %57, %56 : vector<128x128xf32>
    %59 = math.tanh %58 : vector<128x128xf32>
    %cst_36 = arith.constant 1.000000e+00 : f32
    %60 = vector.broadcast %cst_36 : f32 to vector<128x128xf32>
    %61 = arith.addf %60, %59 : vector<128x128xf32>
    %cst_37 = arith.constant 5.000000e-01 : f32
    %62 = vector.broadcast %cst_37 : f32 to vector<128x128xf32>
    %63 = arith.mulf %62, %61 : vector<128x128xf32>
    %64 = arith.mulf %51, %63 : vector<128x128xf32>
    %65 = arith.truncf %64 : vector<128x128xf32> to vector<128x128xbf16>
    %c0_38 = arith.constant 0 : index
    %c0_39 = arith.constant 0 : index
    %66 = vector.load %arg15[%c0_38, %c0_39] : memref<128x32xbf16, #tpu.memory_space<vmem>>, vector<128x32xbf16>
    %cst_40 = arith.constant dense<0.000000e+00> : vector<128x32xf32>
    %67 = tpu.matmul %65, %66, %cst_40 {dimension_numbers = #tpu.dot_dimension_numbers<[1], [0], [0], [1], [0, 0, 1, 1], [], []>} : vector<128x128xbf16>, vector<128x32xbf16>, vector<128x32xf32> -> vector<128x32xf32>
    %c0_41 = arith.constant 0 : index
    %c0_42 = arith.constant 0 : index
    %68 = vector.load %arg16[%c0_41, %c0_42] : memref<1x32xf32, #tpu.memory_space<vmem>>, vector<1x32xf32>
    %69 = vector.broadcast %68 : vector<1x32xf32> to vector<128x32xf32>
    %70 = arith.addf %67, %69 : vector<128x32xf32>
    %71 = arith.addf %23, %70 : vector<128x32xf32>
    %c0_43 = arith.constant 0 : index
    %c0_44 = arith.constant 0 : index
    %72 = vector.load %arg17[%c0_43, %c0_44] : memref<128x32xf32, #tpu.memory_space<vmem>>, vector<128x32xf32>
    tpu.vector_store %arg17[%c0_43, %c0_44], %71 {strides = array<i32>} : memref<128x32xf32, #tpu.memory_space<vmem>>, vector<128x32xf32>,
    return
  }
  func.func @transform_0(%arg0: i32) -> (i32, i32) {
    %c0_i32 = arith.constant 0 : i32
    %c0_i32_0 = arith.constant 0 : i32
    return %arg0, %c0_i32 : i32, i32
  }
  func.func @transform_1(%arg0: i32) -> (i32, i32) {
    %c0_i32 = arith.constant 0 : i32
    %c0_i32_0 = arith.constant 0 : i32
    return %arg0, %c0_i32 : i32, i32
  }
  func.func @transform_2(%arg0: i32) -> (i32, i32) {
    %c0_i32 = arith.constant 0 : i32
    %c0_i32_0 = arith.constant 0 : i32
    return %arg0, %c0_i32 : i32, i32
  }
  func.func @transform_3(%arg0: i32) -> (i32, i32) {
    %c0_i32 = arith.constant 0 : i32
    %c0_i32_0 = arith.constant 0 : i32
    return %arg0, %c0_i32 : i32, i32
  }
  func.func @transform_4(%arg0: i32) -> (i32, i32) {
    %c0_i32 = arith.constant 0 : i32
    %c0_i32_0 = arith.constant 0 : i32
    return %arg0, %c0_i32 : i32, i32
  }
  func.func @transform_5(%arg0: i32) -> (i32, i32) {
    %c0_i32 = arith.constant 0 : i32
    %c0_i32_0 = arith.constant 0 : i32
    return %arg0, %c0_i32 : i32, i32
  }
  func.func @transform_6(%arg0: i32) -> (i32, i32) {
    %c0_i32 = arith.constant 0 : i32
    %c0_i32_0 = arith.constant 0 : i32
    return %arg0, %c0_i32 : i32, i32
  }
  func.func @transform_7(%arg0: i32) -> (i32, i32) {
    %c0_i32 = arith.constant 0 : i32
    %c0_i32_0 = arith.constant 0 : i32
    %c0_i32_1 = arith.constant 0 : i32
    return %c0_i32, %c0_i32_0 : i32, i32
  }
  func.func @transform_8(%arg0: i32) -> (i32, i32) {
    %c0_i32 = arith.constant 0 : i32
    %c0_i32_0 = arith.constant 0 : i32
    %c0_i32_1 = arith.constant 0 : i32
    return %c0_i32, %c0_i32_0 : i32, i32
  }
  func.func @transform_9(%arg0: i32) -> (i32, i32) {
    %c0_i32 = arith.constant 0 : i32
    %c0_i32_0 = arith.constant 0 : i32
    %c0_i32_1 = arith.constant 0 : i32
    return %c0_i32, %c0_i32_0 : i32, i32
  }
  func.func @transform_10(%arg0: i32) -> (i32, i32) {
    %c0_i32 = arith.constant 0 : i32
    %c0_i32_0 = arith.constant 0 : i32
    %c0_i32_1 = arith.constant 0 : i32
    return %c0_i32, %c0_i32_0 : i32, i32
  }
  func.func @transform_11(%arg0: i32) -> (i32, i32) {
    %c0_i32 = arith.constant 0 : i32
    %c0_i32_0 = arith.constant 0 : i32
    %c0_i32_1 = arith.constant 0 : i32
    return %c0_i32, %c0_i32_0 : i32, i32
  }
  func.func @transform_12(%arg0: i32) -> (i32, i32) {
    %c0_i32 = arith.constant 0 : i32
    %c0_i32_0 = arith.constant 0 : i32
    %c0_i32_1 = arith.constant 0 : i32
    return %c0_i32, %c0_i32_0 : i32, i32
  }
  func.func @transform_13(%arg0: i32) -> (i32, i32) {
    %c0_i32 = arith.constant 0 : i32
    %c0_i32_0 = arith.constant 0 : i32
    %c0_i32_1 = arith.constant 0 : i32
    return %c0_i32, %c0_i32_0 : i32, i32
  }
  func.func @transform_14(%arg0: i32) -> (i32, i32) {
    %c0_i32 = arith.constant 0 : i32
    %c0_i32_0 = arith.constant 0 : i32
    %c0_i32_1 = arith.constant 0 : i32
    return %c0_i32, %c0_i32_0 : i32, i32
  }
  func.func @transform_15(%arg0: i32) -> (i32, i32) {
    %c0_i32 = arith.constant 0 : i32
    %c0_i32_0 = arith.constant 0 : i32
    %c0_i32_1 = arith.constant 0 : i32
    return %c0_i32, %c0_i32_0 : i32, i32
  }
  func.func @transform_16(%arg0: i32) -> (i32, i32) {
    %c0_i32 = arith.constant 0 : i32
    %c0_i32_0 = arith.constant 0 : i32
    return %arg0, %c0_i32 : i32, i32
  }
}

</mosaic_0001>

<bundles_post_ra>
// kernel: _lambda_.3
= control target key start
LH: loop header
LB: loop body
LE: loop exit
PB: predicated region body
PF: predicated region fallthrough
CT: control target
= control target key end

     0   :  { %10 = vsyncpa [#allocation3], 0  ;;  %s1854_s0 = inlined_call_operand.hbm [shape: f32[256,32], index: 0, kind: input, shape index: {}]   ;;  %s1855_s1 = inlined_call_operand.vmem [shape: f32[1,32], index: 1, kind: input, shape index: {}]   ;;  %s1856_s2 = inlined_call_operand.vmem [shape: f32[1,32], index: 2, kind: input, shape index: {}]   ;;  %s1857_s3 = inlined_call_operand.hbm [shape: bf16[32,64], index: 3, kind: input, shape index: {}]   ;;  %s1858_s4 = inlined_call_operand.vmem [shape: f32[1,64], index: 4, kind: input, shape index: {}]   ;;  %s1859_s5 = inlined_call_operand.vmem [shape: bf16[256,64], index: 5, kind: output, shape index: {}]  }
   0x1   :  { %12 = vsyncpa [#allocation3 + $0x1], 0 }
   0x2   :  { %13 = vsyncpa [#allocation5], 0  ;;  %s1162_s18 = smov 0   ;;  %s1164_s19 = smov 0  }
   0x3   :  { %s1166_s20 = smov 0   ;;  %s1168_s21 = smov 0  }
   0x4 LB: > { %s894_s22 = sadd.s32 4294967295, %s1124_s21   ;;  %p39_p0 = scmp.ne.s32.totalorder %s1116_s19, %s1112_s18  ;;  %s1124_s21 = sphi %s1168_s21, %s1885_s21   ;;  %s1120_s20 = sphi %s1166_s20, %s1884_s20   ;;  %s1116_s19 = sphi %s1164_s19, %s1883_s19   ;;  %s1112_s18 = sphi %s1162_s18, %s1882_s18  }
   0x5   : > { %p1184_p1 = scmp.eq.s32.totalorder %s894_s22, 0  ;;  %p896_p2 = scmp.ge.s32.totalorder %s1124_s21, 1 }
   0x6   : > { %p160_p3 = scmp.lt.s32.totalorder %s1124_s21, 3  ;;  %s177_s27 = sshll.u32 %s1857_s3, 4  ;;  %s178_s27 = int_to_ptr.hbm [resolvable:$true] %s177_s27 }
   0x7   : > { %p1192_p4 = por %p1184_p1, %p39_p0  ;;  %s1126_s29 = smov [#allocation4]  }
   0x8   : > { %p1199_p5 = pnand %p896_p2, %p160_p3  ;;  %s179_s30 = sshll.u32 %s1126_s29, 4  ;;  %s180_s30 = int_to_ptr.vmem [resolvable:$true] %s179_s30 }
   0x9   : > { %s1208_s6 = sadd.s32 1, %s1124_s21   ;;  %s1127_s7 = smov 64  }
   0xa   : > { %p940_p6 = pneg %p1199_p5  ;;  %s1128_s8 = smov 4  }
   0xb   : > { %s23_s9 = ssub.s32 %s1124_s21, %s1208_s6  ;;  %s26_s10 = sadd.s32 1, %s1120_s20 }
   0xc   : > { %p941_p7 = pnand %p940_p6, %p1184_p1  ;;  %p24_p8 = scmp.eq.s32.totalorder %s23_s9, 0 }
   0xd   : > { %p33_p9 = scmp.ne.s32.totalorder %s1120_s20, %s1116_s19  ;;  %p34_p10 = scmp.eq.s32.totalorder %s1124_s21, 0 }
   0xe   : > { %943 = dma.hbm_to_vmem [thread:$0]  (!%p941_p7), %s178_s27, 256, %s180_s30, [#allocation5], %s1127_s7, %s1127_s7, %s1128_s8  }
   0xf   : > { %p949_p11 = scmp.lt.s32.totalorder %s1124_s21, 2  ;;  %p35_p12 = por %p34_p10, %p33_p9 }
  0x10   : > { %s1218_s11 = scalar_select %p24_p8, %s1120_s20, %s26_s10  }
  0x11   : > { %s196_s12 = sand.u32 1, %s1120_s20   ;;  %s925_s14 = sshll.u32 %s1124_s21, 7 }
  0x12   : > { %s899_s13 = sshll.u32 %s196_s12, 7  ;;  %s205_s17 = scalar_lea.hbm %s1854_s0, %s925_s14 }
  0x13   : > { %s200_s18 = scalar_lea.vmem [#allocation2], %s899_s13  ;;  %s206_s26 = sshll.u32 %s205_s17, 4  ;;  %s207_s26 = int_to_ptr.hbm [resolvable:$true] %s206_s26 }
  0x14   : > { %s208_s25 = sshll.u32 %s200_s18, 4  ;;  %p1225_p13 = pnand %p949_p11, %p35_p12  ;;  %s209_s25 = int_to_ptr.vmem [resolvable:$true] %s208_s25 }
  0x15   : > { %s197_s29 = scalar_lea.sflag [#allocation3], %s196_s12  ;;  %s1056_s30 = sshra.s32 %s207_s26, 4  ;;  %s1057_s30 = int_to_ptr.hbm [resolvable:$true] %s1056_s30 }
  0x16   : > { %s1058_s7 = scalar_lea.hbm %s1057_s30, 128  ;;  %p1060_p2 = pneg %p1225_p13 }
  0x17   : > { %p1059_p0 = scmp.ne.s32.totalorder %s1057_s30, %s1058_s7  ;;  %s1063_s10 = scalar_lea.hbm %s1854_s0, 256 }
  0x18   : > { %p1064_p7 = scmp.lt.s32.totalorder %s1057_s30, %s1854_s0  ;;  %p1065_p8 = scmp.lt.s32.totalorder %s1063_s10, %s1058_s7 }
  0x19   : > { %p1061_p3 = pnand %p1060_p2, %p1059_p0 }
  0x1a   : > { %p1066_p9 = por %p1065_p8, %p1064_p7 }
  0x1b   : > { %p1062_p6 = pneg %p1061_p3 }
  0x1d   : > { %p1067_p10 = pnand %p1066_p9, %p1062_p6 }
  0x1f   : > { %1070 = shalt.err (!%p1067_p10)
}
  0x20   : > { %s1129_s12 = smov 128   ;;  %s1130_s15 = smov 8  }
  0x21   : > { %947 = dma.hbm_to_vmem [thread:$0]  (!%p1225_p13), %s207_s26, 2048, %s209_s25, %s197_s29, %s1129_s12, %s1129_s12, %s1130_s15  }
  0x22   : > { %220 = sbr.rel (%p1199_p5) target bundleno = 500 (0x1f4), region = 40  ;;  %s222_s16 = sand.u32 (!%p1199_p5), 1, %s1116_s19  }
  0x23   : > { %s903_s17 = sshll.u32 (!%p1199_p5), %s222_s16, 7  ;;  %s223_s18 = scalar_lea.sflag (!%p1199_p5), [#allocation3], %s222_s16 }
  0x24   : > { %s1242_s8 = scalar_lea.vmem (!%p1199_p5), [#allocation2], %s903_s17 }
  0x27   : > { %1103 = dma.done.wait (%p1192_p4), %s223_s18, 2048  }
  0x28   : > { %1105 = vsyncadd (%p1192_p4), %s223_s18, 4294965248 }
  0x29   : > { %1107 = dma.done.wait (%p1184_p1), [#allocation5], 256  }
  0x2a   : > { %1109 = vsyncadd (%p1184_p1), [#allocation5], 4294967040  ;;  %vm283_vm0 = vcmask 261120   ;;  %v279_v0 = vld [vmem:[%s1242_s8 + $0x60] sm:$0xff]  ;;  %v1262_v6 = vld [vmem:[%s1242_s8 + $0x68] sm:$0xff]  ;;  %v1131_v32 = vmov 32.0  }
  0x2b   : > { %v275_v1 = vld [vmem:[%s1242_s8 + $0x40] sm:$0xff]  ;;  %v320_v3 = vsel %vm283_vm0, %v279_v0, 0.0  ;;  %v1265_v7 = vld [vmem:[%s1242_s8 + $0x48] sm:$0xff]  ;;  %v323_v9 = vsel %vm283_vm0, %v1262_v6, 0.0  ;;  %v1283_v14 = vld [vmem:[%s1242_s8 + $0x50] sm:$0xff]  ;;  %992 = vrcp.f32 %v1131_v32  ;;  %s905_s26 = sshll.u32 %s894_s22, 4 }
  0x2c   : > { %v1255_v2 = vld [vmem:[%s1242_s8] sm:$0xff]  ;;  %v308_v4 = vsel %vm283_vm0, %v275_v1, 0.0  ;;  %321 = vadd.xlane.f32.xlu1 %v320_v3  ;;  %v1268_v8 = vld [vmem:[%s1242_s8 + $0x8] sm:$0xff]  ;;  %v311_v10 = vsel %vm283_vm0, %v1265_v7, 0.0  ;;  %v314_v17 = vsel %vm283_vm0, %v1283_v14, 0.0  ;;  %v1292_v18 = vld [vmem:[%s1242_s8 + $0x58] sm:$0xff] }
  0x2d   : > { %v284_v5 = vsel %vm283_vm0, %v1255_v2, 0.0  ;;  %309 = vadd.xlane.f32.xlu0 %v308_v4  ;;  %v287_v11 = vsel %vm283_vm0, %v1268_v8, 0.0  ;;  %v1277_v12 = vld [vmem:[%s1242_s8 + $0x20] sm:$0xff]  ;;  %v1280_v13 = vld [vmem:[%s1242_s8 + $0x28] sm:$0xff]  ;;  %v1295_v19 = vld [vmem:[%s1242_s8 + $0x70] sm:$0xff]  ;;  %v317_v21 = vsel %vm283_vm0, %v1292_v18, 0.0 }
  0x2e   : > { %285 = vadd.xlane.f32.xlu2 %v284_v5  ;;  %v296_v15 = vsel %vm283_vm0, %v1277_v12, 0.0  ;;  %v299_v16 = vsel %vm283_vm0, %v1280_v13, 0.0  ;;  %v1298_v20 = vld [vmem:[%s1242_s8 + $0x78] sm:$0xff]  ;;  %v326_v22 = vsel %vm283_vm0, %v1295_v19, 0.0  ;;  %v1307_v24 = vld [vmem:[%s1242_s8 + $0x10] sm:$0xff]  ;;  %p261_p1 = scmp.lt.s32.totalorder %s905_s26, 31 }
  0x2f   : > { %v329_v23 = vsel %vm283_vm0, %v1298_v20, 0.0  ;;  %v1310_v25 = vld [vmem:[%s1242_s8 + $0x18] sm:$0xff]  ;;  %v1313_v26 = vld [vmem:[%s1242_s8 + $0x30] sm:$0xff]  ;;  %v290_v27 = vsel %vm283_vm0, %v1307_v24, 0.0 }
  0x30   : > { %v293_v28 = vsel %vm283_vm0, %v1310_v25, 0.0  ;;  %v302_v29 = vsel %vm283_vm0, %v1313_v26, 0.0  ;;  %v1322_v30 = vld [vmem:[%s1242_s8 + $0x38] sm:$0xff]  ;;  %s1887_s26 = smov (!%p261_p1, %s905_s26), 31 }
  0x31   : > { %v305_v31 = vsel %vm283_vm0, %v1322_v30, 0.0  ;;  %v993_v33 = vpop.eup %992  ;;  %s906_s30 = sshll.u32 %s1887_s26, 2 }
  0x32   : > { %v333_v34 = vmul.f32 32.0, %v993_v33  ;;  %vm337_vm1 = vweird.f32 %v993_v33  ;;  %s1792_s10 = scalar_lea.vmem %s1859_s5, %s906_s30 }
  0x34   : > { %324 = vadd.xlane.f32.xlu1 %v323_v9  ;;  %v334_v35 = vsub.f32 1.0, %v333_v34 }
  0x35   : > { %312 = vadd.xlane.f32.xlu0 %v311_v10 }
  0x36   : > { %288 = vadd.xlane.f32.xlu2 %v287_v11  ;;  %v335_v36 = vmul.f32 %v993_v33, %v334_v35 }
  0x38   : > { %v336_v37 = vadd.f32 %v993_v33, %v335_v36 }
  0x3a   : > { %v1326_v38 = vsel %vm337_vm1, %v993_v33, %v336_v37 }
  0x3c   : > { %300 = vadd.xlane.f32.xlu1 %v299_v16 }
  0x3d   : > { %297 = vadd.xlane.f32.xlu0 %v296_v15 }
  0x3e   : > { %315 = vadd.xlane.f32.xlu2 %v314_v17 }
  0x44   : > { %327 = vadd.xlane.f32.xlu1 %v326_v22 }
  0x45   : > { %318 = vadd.xlane.f32.xlu0 %v317_v21 }
  0x46   : > { %330 = vadd.xlane.f32.xlu2 %v329_v23 }
  0x4c   : > { %294 = vadd.xlane.f32.xlu1 %v293_v28 }
  0x4d   : > { %291 = vadd.xlane.f32.xlu0 %v290_v27 }
  0x4e   : > { %303 = vadd.xlane.f32.xlu2 %v302_v29 }
  0x55   : > { %306 = vadd.xlane.f32.xlu0 %v305_v31 }
  0x9f   : > { %v322_v39 = vpop.xlane.xlu1 %321 }
  0xa0   : > { %v310_v40 = vpop.xlane.xlu0 %309  ;;  %v351_v41 = vmul.f32 %v1326_v38, %v322_v39 }
  0xa1   : > { %v347_v42 = vmul.f32 %v1326_v38, %v310_v40  ;;  %v286_v43 = vpop.xlane.xlu2 %285 }
  0xa2   : > { %v1330_v44 = vsub.f32 %v279_v0, %v351_v41  ;;  %v339_v56 = vmul.f32 %v1326_v38, %v286_v43 }
  0xa3   : > { %v1332_v45 = vsub.f32 %v275_v1, %v347_v42 }
  0xa4   : > { %v383_v47 = vmul.f32 %v1330_v44, %v1330_v44  ;;  %v1360_v63 = vsub.f32 %v1255_v2, %v339_v56 }
  0xa5   : > { %v379_v46 = vmul.f32 %v1332_v45, %v1332_v45 }
  0xa6   : > { %v423_v49 = vsel %vm283_vm0, %v383_v47, 0.0  ;;  %v371_v10 = vmul.f32 %v1360_v63, %v1360_v63 }
  0xa7   : > { %v411_v48 = vsel %vm283_vm0, %v379_v46, 0.0  ;;  %v325_v50 = vpop.xlane.xlu1 %324  ;;  %424 = vadd.xlane.f32.xlu0 %v423_v49 }
  0xa8   : > { %v313_v51 = vpop.xlane.xlu0 %312  ;;  %412 = vadd.xlane.f32.xlu1 %v411_v48  ;;  %v352_v52 = vmul.f32 %v1326_v38, %v325_v50 }
  0xa9   : > { %v348_v53 = vmul.f32 %v1326_v38, %v313_v51  ;;  %v289_v54 = vpop.xlane.xlu2 %288 }
  0xaa   : > { %v340_v55 = vmul.f32 %v1326_v38, %v289_v54  ;;  %v1345_v57 = vsub.f32 %v1262_v6, %v352_v52 }
  0xab   : > { %v1348_v58 = vsub.f32 %v1265_v7, %v348_v53 }
  0xac   : > { %v1351_v59 = vsub.f32 %v1268_v8, %v340_v55  ;;  %v384_v60 = vmul.f32 %v1345_v57, %v1345_v57 }
  0xad   : > { %v380_v61 = vmul.f32 %v1348_v58, %v1348_v58 }
  0xae   : > { %v372_v62 = vmul.f32 %v1351_v59, %v1351_v59  ;;  %v426_v0 = vsel %vm283_vm0, %v384_v60, 0.0 }
  0xaf   : > { %v414_v1 = vsel %vm283_vm0, %v380_v61, 0.0  ;;  %v301_v5 = vpop.xlane.xlu1 %300 }
  0xb0   : > { %v298_v3 = vpop.xlane.xlu0 %297  ;;  %427 = vadd.xlane.f32.xlu1 %v426_v0  ;;  %415 = vadd.xlane.f32.xlu2 %v414_v1  ;;  %v390_v4 = vsel %vm283_vm0, %v372_v62, 0.0  ;;  %v344_v8 = vmul.f32 %v1326_v38, %v301_v5 }
  0xb1   : > { %v343_v6 = vmul.f32 %v1326_v38, %v298_v3  ;;  %391 = vadd.xlane.f32.xlu0 %v390_v4  ;;  %v316_v7 = vpop.xlane.xlu2 %315 }
  0xb2   : > { %v349_v9 = vmul.f32 %v1326_v38, %v316_v7  ;;  %v1377_v15 = vsub.f32 %v1280_v13, %v344_v8 }
  0xb3   : > { %v1369_v2 = vsub.f32 %v1277_v12, %v343_v6  ;;  %v387_v12 = vsel %vm283_vm0, %v371_v10, 0.0 }
  0xb4   : > { %v1374_v11 = vsub.f32 %v1283_v14, %v349_v9  ;;  %v376_v29 = vmul.f32 %v1377_v15, %v1377_v15 }
  0xb5   : > { %v375_v16 = vmul.f32 %v1369_v2, %v1369_v2 }
  0xb6   : > { %v381_v17 = vmul.f32 %v1374_v11, %v1374_v11  ;;  %v402_v36 = vsel %vm283_vm0, %v376_v29, 0.0 }
  0xb7   : > { %v399_v21 = vsel %vm283_vm0, %v375_v16, 0.0  ;;  %v328_v14 = vpop.xlane.xlu1 %327 }
  0xb8   : > { %v319_v22 = vpop.xlane.xlu0 %318  ;;  %400 = vadd.xlane.f32.xlu1 %v399_v21  ;;  %388 = vadd.xlane.f32.xlu2 %v387_v12  ;;  %v417_v23 = vsel %vm283_vm0, %v381_v17, 0.0  ;;  %v353_v28 = vmul.f32 %v1326_v38, %v328_v14  ;;  %v926_v17 = vld [vmem:[#allocation4] sm:$0xff] }
  0xb9   : > { %v350_v27 = vmul.f32 %v1326_v38, %v319_v22  ;;  %418 = vadd.xlane.f32.xlu0 %v417_v23  ;;  %v331_v13 = vpop.xlane.xlu2 %330 }
  0xba   : > { %v354_v31 = vmul.f32 %v1326_v38, %v331_v13  ;;  %v1398_v34 = vsub.f32 %v1295_v19, %v353_v28 }
  0xbb   : > { %v1392_v32 = vsub.f32 %v1292_v18, %v350_v27 }
  0xbc   : > { %v1395_v33 = vsub.f32 %v1298_v20, %v354_v31  ;;  %v385_v43 = vmul.f32 %v1398_v34, %v1398_v34 }
  0xbd   : > { %v382_v35 = vmul.f32 %v1392_v32, %v1392_v32 }
  0xbe   : > { %v386_v37 = vmul.f32 %v1395_v33, %v1395_v33  ;;  %v429_v51 = vsel %vm283_vm0, %v385_v43, 0.0 }
  0xbf   : > { %v420_v39 = vsel %vm283_vm0, %v382_v35, 0.0  ;;  %v295_v20 = vpop.xlane.xlu1 %294 }
  0xc0   : > { %421 = vadd.xlane.f32.xlu1 %v420_v39  ;;  %v292_v40 = vpop.xlane.xlu0 %291  ;;  %403 = vadd.xlane.f32.xlu2 %v402_v36  ;;  %v432_v18 = vsel %vm283_vm0, %v386_v37, 0.0  ;;  %v342_v42 = vmul.f32 %v1326_v38, %v295_v20 }
  0xc1   : > { %v341_v41 = vmul.f32 %v1326_v38, %v292_v40  ;;  %433 = vadd.xlane.f32.xlu0 %v432_v18  ;;  %v304_v19 = vpop.xlane.xlu2 %303 }
  0xc2   : > { %v345_v46 = vmul.f32 %v1326_v38, %v304_v19  ;;  %v1419_v49 = vsub.f32 %v1310_v25, %v342_v42 }
  0xc3   : > { %v1413_v47 = vsub.f32 %v1307_v24, %v341_v41 }
  0xc4   : > { %v1416_v48 = vsub.f32 %v1313_v26, %v345_v46  ;;  %v374_v25 = vmul.f32 %v1419_v49, %v1419_v49 }
  0xc5   : > { %v373_v50 = vmul.f32 %v1413_v47, %v1413_v47 }
  0xc6   : > { %v377_v52 = vmul.f32 %v1416_v48, %v1416_v48  ;;  %v396_v60 = vsel %vm283_vm0, %v374_v25, 0.0 }
  0xc7   : > { %v393_v53 = vsel %vm283_vm0, %v373_v50, 0.0 }
  0xc8   : > { %394 = vadd.xlane.f32.xlu1 %v393_v53  ;;  %v307_v54 = vpop.xlane.xlu0 %306  ;;  %430 = vadd.xlane.f32.xlu2 %v429_v51  ;;  %v405_v24 = vsel %vm283_vm0, %v377_v52, 0.0 }
  0xc9   : > { %v346_v26 = vmul.f32 %v1326_v38, %v307_v54  ;;  %406 = vadd.xlane.f32.xlu0 %v405_v24 }
  0xcb   : > { %v1432_v55 = vsub.f32 %v1322_v30, %v346_v26  ;;  %v927_v30 = vld [vmem:[#allocation4 + $0x8] sm:$0xff] }
  0xcc   : > { %929 = vmatpush.bf16.msra.mxu2 %v927_v30  ;;  %930 = vmatpush.bf16.msra.mxu3 %v927_v30 }
  0xcd   : > { %v378_v56 = vmul.f32 %v1432_v55, %v1432_v55  ;;  %741 = vmatpush.bf16.msra.mxu0 %v927_v30  ;;  %928 = vmatpush.bf16.msra.mxu1 %v927_v30 }
  0xcf   : > { %v408_v61 = vsel %vm283_vm0, %v378_v56, 0.0 }
  0xd0   : > { %409 = vadd.xlane.f32.xlu1 %v408_v61  ;;  %397 = vadd.xlane.f32.xlu2 %v396_v60 }
  0xd1   : > { %932 = vmatpush.bf16.msra.mxu2 %v926_v17  ;;  %933 = vmatpush.bf16.msra.mxu3 %v926_v17 }
  0xd2   : > { %742 = vmatpush.bf16.msra.mxu0 %v926_v17  ;;  %931 = vmatpush.bf16.msra.mxu1 %v926_v17 }
 0x11a   : > { %v425_v0 = vpop.xlane.xlu0 %424 }
 0x11b   : > { %v413_v62 = vpop.xlane.xlu1 %412  ;;  %v447_v3 = vmul.f32 %v425_v0, %v1326_v38 }
 0x11c   : > { %v443_v1 = vmul.f32 %v413_v62, %v1326_v38 }
 0x11d   : > { %v463_v5 = vadd.f32 1e-05, %v447_v3 }
 0x11e   : > { %v459_v4 = vadd.f32 1e-05, %v443_v1 }
 0x11f   : > { %vm593_vm6 = vweird.f32 %v463_v5 }
 0x120   : > { %994 = vrsqrt.f32 %v459_v4  ;;  %vm553_vm4 = vweird.f32 %v459_v4 }
 0x121   : > { %996 = vrsqrt.f32 %v463_v5 }
 0x123   : > { %v428_v6 = vpop.xlane.xlu1 %427  ;;  %v416_v7 = vpop.xlane.xlu2 %415 }
 0x124   : > { %v448_v8 = vmul.f32 %v428_v6, %v1326_v38  ;;  %v392_v9 = vpop.xlane.xlu0 %391  ;;  %v444_v10 = vmul.f32 %v416_v7, %v1326_v38 }
 0x125   : > { %v436_v16 = vmul.f32 %v392_v9, %v1326_v38 }
 0x126   : > { %v1443_v21 = vpop.eup %994  ;;  %v1445_v12 = vadd.f32 1e-05, %v448_v8  ;;  %v1447_v22 = vadd.f32 1e-05, %v444_v10 }
 0x127   : > { %v1449_v23 = vpop.eup %996  ;;  %v548_v14 = vmul.f32 %v1443_v21, %v459_v4  ;;  %v1452_v27 = vadd.f32 1e-05, %v436_v16  ;;  %vm554_vm2 = vweird.f32 %v1443_v21 }
 0x128   : > { %v588_v13 = vmul.f32 %v1449_v23, %v463_v5  ;;  %998 = vrsqrt.f32 %v1445_v12  ;;  %vm594_vm3 = vweird.f32 %v1449_v23  ;;  %vm1486_vm5 = vmor %vm553_vm4, %vm554_vm2  ;;  %vm603_vm8 = vweird.f32 %v1445_v12 }
 0x129   : > { %v549_v28 = vmul.f32 %v1443_v21, %v548_v14  ;;  %1000 = vrsqrt.f32 %v1452_v27  ;;  %vm1493_vm7 = vmor %vm593_vm6, %vm594_vm3  ;;  %vm483_vm9 = vweird.f32 %v1452_v27  ;;  %vm563_vm11 = vweird.f32 %v1447_v22 }
 0x12a   : > { %v589_v29 = vmul.f32 %v1449_v23, %v588_v13  ;;  %1002 = vrsqrt.f32 %v1447_v22 }
 0x12b   : > { %v550_v31 = vmul.f32 0.5, %v549_v28  ;;  %v401_v35 = vpop.xlane.xlu1 %400  ;;  %v389_v36 = vpop.xlane.xlu2 %388 }
 0x12c   : > { %v590_v37 = vmul.f32 0.5, %v589_v29  ;;  %v439_v39 = vmul.f32 %v401_v35, %v1326_v38  ;;  %v419_v40 = vpop.xlane.xlu0 %418  ;;  %v435_v18 = vmul.f32 %v389_v36, %v1326_v38 }
 0x12d   : > { %v551_v20 = vsub.f32 1.5, %v550_v31  ;;  %v445_v41 = vmul.f32 %v419_v40, %v1326_v38  ;;  %v1522_v31 = vld [vmem:[%s1855_s1] ss:$0 sm:$0xff] }
 0x12e   : > { %v1463_v19 = vpop.eup %998  ;;  %v591_v42 = vsub.f32 1.5, %v590_v37  ;;  %v1466_v43 = vadd.f32 1e-05, %v439_v39  ;;  %v1475_v52 = vadd.f32 1e-05, %v435_v18 }
 0x12f   : > { %v1468_v46 = vpop.eup %1000  ;;  %v598_v50 = vmul.f32 %v1463_v19, %v1445_v12  ;;  %v1473_v51 = vadd.f32 1e-05, %v445_v41  ;;  %v552_v54 = vmul.f32 %v1443_v21, %v551_v20  ;;  %vm604_vm12 = vweird.f32 %v1463_v19 }
 0x130   : > { %v1003_v53 = vpop.eup %1002  ;;  %v592_v24 = vmul.f32 %v1449_v23, %v591_v42  ;;  %v478_v26 = vmul.f32 %v1468_v46, %v1452_v27  ;;  %1004 = vrsqrt.f32 %v1466_v43  ;;  %vm484_vm14 = vweird.f32 %v1468_v46  ;;  %vm1556_vm2 = vmor %vm603_vm8, %vm604_vm12 }
 0x131   : > { %v599_v25 = vmul.f32 %v1463_v19, %v598_v50  ;;  %v558_v56 = vmul.f32 %v1003_v53, %v1447_v22  ;;  %1006 = vrsqrt.f32 %v1473_v51  ;;  %v556_v30 = vsel %vm1486_vm5, %v1443_v21, %v552_v54  ;;  %vm1578_vm5 = vmor %vm483_vm9, %vm484_vm14 }
 0x132   : > { %v479_v61 = vmul.f32 %v1468_v46, %v478_v26  ;;  %v596_v5 = vsel %vm1493_vm7, %v1449_v23, %v592_v24  ;;  %1008 = vrsqrt.f32 %v1475_v52  ;;  %vm564_vm10 = vweird.f32 %v1003_v53 }
 0x133   : > { %v600_v0 = vmul.f32 0.5, %v599_v25  ;;  %v559_v1 = vmul.f32 %v1003_v53, %v558_v56  ;;  %v422_v3 = vpop.xlane.xlu1 %421  ;;  %v404_v4 = vpop.xlane.xlu2 %403  ;;  %v635_v13 = vmul.f32 %v556_v30, %v1332_v45  ;;  %v639_v28 = vmul.f32 %v596_v5, %v1330_v44  ;;  %vm565_vm13 = vmor %vm563_vm11, %vm564_vm10 }
 0x134   : > { %v434_v6 = vpop.xlane.xlu0 %433  ;;  %v480_v7 = vmul.f32 0.5, %v479_v61  ;;  %v446_v9 = vmul.f32 %v422_v3, %v1326_v38  ;;  %v440_v21 = vmul.f32 %v404_v4, %v1326_v38  ;;  %vm513_vm15 = vweird.f32 %v1466_v43 }
 0x135   : > { %v560_v8 = vmul.f32 0.5, %v559_v1  ;;  %v450_v10 = vmul.f32 %v434_v6, %v1326_v38  ;;  %v601_v17 = vsub.f32 1.5, %v600_v0  ;;  %vm573_vm1 = vweird.f32 %v1473_v51 }
 0x136   : > { %v1507_v16 = vpop.eup %1004  ;;  %v1517_v29 = vadd.f32 1e-05, %v446_v9  ;;  %v481_v36 = vsub.f32 1.5, %v480_v7  ;;  %v1536_v18 = vadd.f32 1e-05, %v440_v21  ;;  %v655_v25 = vmul.f32 %v1522_v31, %v635_v13 }
 0x137   : > { %v561_v14 = vsub.f32 1.5, %v560_v8  ;;  %v508_v23 = vmul.f32 %v1507_v16, %v1466_v43  ;;  %v1524_v35 = vpop.eup %1006  ;;  %v1527_v40 = vadd.f32 1e-05, %v450_v10  ;;  %v602_v44 = vmul.f32 %v1463_v19, %v601_v17 }
 0x138   : > { %v1529_v45 = vpop.eup %1008  ;;  %v568_v22 = vmul.f32 %v1524_v35, %v1473_v51  ;;  %1010 = vrsqrt.f32 %v1517_v29  ;;  %v1561_v56 = vmul.f32 %v1468_v46, %v481_v36  ;;  %vm473_vm3 = vweird.f32 %v1475_v52 }
 0x139   : > { %v562_v37 = vmul.f32 %v1003_v53, %v561_v14  ;;  %v509_v39 = vmul.f32 %v1507_v16, %v508_v23  ;;  %v468_v42 = vmul.f32 %v1529_v45, %v1475_v52  ;;  %1012 = vrsqrt.f32 %v1527_v40 }
 0x13a   : > { %v569_v54 = vmul.f32 %v1524_v35, %v568_v22  ;;  %v659_v62 = vmul.f32 %v1522_v31, %v639_v28  ;;  %v606_v12 = vsel %vm1556_vm2, %v1463_v19, %v602_v44  ;;  %1014 = vrsqrt.f32 %v1536_v18 }
 0x13b   : > { %v566_v20 = vsel %vm565_vm13, %v1003_v53, %v562_v37  ;;  %v510_v41 = vmul.f32 0.5, %v509_v39  ;;  %v395_v24 = vpop.xlane.xlu1 %394  ;;  %v1550_v53 = vld [vmem:[%s1856_s2] ss:$0 sm:$0xff]  ;;  %v469_v60 = vmul.f32 %v1529_v45, %v468_v42  ;;  %v431_v61 = vpop.xlane.xlu2 %430  ;;  %vm514_vm4 = vweird.f32 %v1507_v16 }
 0x13c   : > { %v636_v50 = vmul.f32 %v566_v20, %v1348_v58  ;;  %v407_v26 = vpop.xlane.xlu0 %406  ;;  %v570_v1 = vmul.f32 0.5, %v569_v54  ;;  %v437_v4 = vmul.f32 %v395_v24, %v1326_v38  ;;  %v449_v6 = vmul.f32 %v431_v61, %v1326_v38  ;;  %vm1620_vm9 = vmor %vm513_vm15, %vm514_vm4 }
 0x13d   : > { %v511_v0 = vsub.f32 1.5, %v510_v41  ;;  %v470_v3 = vmul.f32 0.5, %v469_v60  ;;  %v441_v30 = vmul.f32 %v407_v26, %v1326_v38  ;;  %v675_v8 = vadd.f32 %v1550_v53, %v655_v25 }
 0x13e   : > { %v571_v19 = vsub.f32 1.5, %v570_v1  ;;  %v656_v7 = vmul.f32 %v1522_v31, %v636_v50  ;;  %v640_v9 = vmul.f32 %v606_v12, %v1345_v57  ;;  %v486_v10 = vsel %vm1578_vm5, %v1468_v46, %v1561_v56  ;;  %v1592_v21 = vpop.eup %1010 }
 0x13f   : > { %v471_v17 = vsub.f32 1.5, %v470_v3  ;;  %v1590_v27 = vadd.f32 1e-05, %v437_v4  ;;  %v1595_v14 = vmul.f32 %v1507_v16, %v511_v0  ;;  %vm574_vm6 = vweird.f32 %v1524_v35  ;;  %v1601_v57 = vpop.eup %1012 }
 0x140   : > { %vm474_vm7 = vweird.f32 %v1529_v45  ;;  %v1599_v23 = vadd.f32 1e-05, %v441_v30  ;;  %v578_v28 = vmul.f32 %v1592_v21, %v1517_v29  ;;  %v1607_v36 = vadd.f32 1e-05, %v449_v6  ;;  %v1609_v37 = vpop.eup %1014  ;;  %vm1649_vm14 = vmor %vm573_vm1, %vm574_vm6 }
 0x141   : > { %v472_v13 = vmul.f32 %v1529_v45, %v471_v17  ;;  %1016 = vrsqrt.f32 %v1590_v27  ;;  %v572_v39 = vmul.f32 %v1524_v35, %v571_v19  ;;  %vm583_vm8 = vweird.f32 %v1517_v29  ;;  %vm1638_vm12 = vmor %vm473_vm3, %vm474_vm7 }
 0x142   : > { %v618_v44 = vmul.f32 %v1601_v57, %v1527_v40  ;;  %v676_v22 = vadd.f32 %v1550_v53, %v656_v7  ;;  %v579_v41 = vmul.f32 %v1592_v21, %v578_v28  ;;  %vm623_vm10 = vweird.f32 %v1527_v40 }
 0x143   : > { %v518_v42 = vmul.f32 %v1609_v37, %v1536_v18  ;;  %vm523_vm11 = vweird.f32 %v1536_v18  ;;  %v660_v50 = vmul.f32 %v1522_v31, %v640_v9  ;;  %v516_v43 = vsel %vm1620_vm9, %v1507_v16, %v1595_v14  ;;  %v410_v26 = vpop.xlane.xlu1 %409  ;;  %v398_v60 = vpop.xlane.xlu2 %397 }
 0x144   : > { %vm584_vm13 = vweird.f32 %v1592_v21  ;;  %v619_v24 = vmul.f32 %v1601_v57, %v618_v44  ;;  %1018 = vrsqrt.f32 %v1599_v23  ;;  %v476_v52 = vsel %vm1638_vm12, %v1529_v45, %v472_v13 }
 0x145   : > { %v580_v25 = vmul.f32 0.5, %v579_v41  ;;  %v519_v58 = vmul.f32 %v1609_v37, %v518_v42  ;;  %1020 = vrsqrt.f32 %v1607_v36  ;;  %v576_v61 = vsel %vm1649_vm14, %v1524_v35, %v572_v39  ;;  %vm1679_vm1 = vmor %vm583_vm8, %vm584_vm13 }
 0x146   : > { %v620_v12 = vmul.f32 0.5, %v619_v24  ;;  %v687_v51 = vpack.c.bf16 %v676_v22, %v675_v8  ;;  %v679_v0 = vadd.f32 %v1550_v53, %v659_v62  ;;  %v680_v45 = vadd.f32 %v1550_v53, %v660_v50 }
 0x147   : > { %v1662_v1 = vpop.eup %1016  ;;  %v581_v3 = vsub.f32 1.5, %v580_v25  ;;  %v520_v4 = vmul.f32 0.5, %v519_v58  ;;  %v442_v30 = vmul.f32 %v410_v26, %v1326_v38  ;;  %v627_v19 = vmul.f32 %v476_v52, %v1360_v63 }
 0x148   : > { %v621_v6 = vsub.f32 1.5, %v620_v12  ;;  %v488_v7 = vmul.f32 %v1662_v1, %v1590_v27  ;;  %919 = vmatmul.msk.bf16.vlgmr.msra.gmra.mxu2 %vm283_vm0, %v687_v51  ;;  %v438_v35 = vmul.f32 %v398_v60, %v1326_v38  ;;  %vm524_vm15 = vweird.f32 %v1609_v37 }
 0x149   : > { %v582_v62 = vmul.f32 %v1592_v21, %v581_v3  ;;  %v521_v8 = vsub.f32 1.5, %v520_v4  ;;  %v689_v9 = vpack.c.bf16 %v680_v45, %v679_v0  ;;  %vm624_vm2 = vweird.f32 %v1601_v57  ;;  %vm525_vm3 = vmor %vm523_vm11, %vm524_vm15 }
 0x14a   : > { %v1673_v17 = vpop.eup %1018  ;;  %v622_v14 = vmul.f32 %v1601_v57, %v621_v6  ;;  %v489_v38 = vmul.f32 %v1662_v1, %v488_v7  ;;  %v1686_v13 = vadd.f32 1e-05, %v442_v30  ;;  %v1695_v22 = vadd.f32 1e-05, %v438_v35  ;;  %vm1718_vm4 = vmor %vm623_vm10, %vm624_vm2 }
 0x14b   : > { %v1021_v28 = vpop.eup %1020  ;;  %v586_v39 = vsel %vm1679_vm1, %v1592_v21, %v582_v62  ;;  %v522_v44 = vmul.f32 %v1609_v37, %v521_v8  ;;  %v528_v29 = vmul.f32 %v1673_v17, %v1599_v23  ;;  %921 = vmatmul.msk.bf16.vlgmr.msra.gmra.mxu3 %vm283_vm0, %v689_v9  ;;  %v628_v20 = vmul.f32 %v486_v10, %v1351_v59 }
 0x14c   : > { %v631_v41 = vmul.f32 %v516_v43, %v1369_v2  ;;  %v608_v21 = vmul.f32 %v1021_v28, %v1607_v36  ;;  %v647_v42 = vmul.f32 %v1522_v31, %v627_v19  ;;  %v637_v50 = vmul.f32 %v576_v61, %v1374_v11 }
 0x14d   : > { %v638_v54 = vmul.f32 %v586_v39, %v1392_v32  ;;  %v526_v5 = vsel %vm525_vm3, %v1609_v37, %v522_v44  ;;  %v529_v46 = vmul.f32 %v1673_v17, %v528_v29  ;;  %v490_v18 = vmul.f32 0.5, %v489_v38 }
 0x14e   : > { %v632_v2 = vmul.f32 %v526_v5, %v1377_v15  ;;  %v609_v56 = vmul.f32 %v1021_v28, %v608_v21  ;;  %1022 = vrsqrt.f32 %v1686_v13  ;;  %v626_v11 = vsel %vm1718_vm4, %v1601_v57, %v622_v14 }
 0x14f   : > { %v530_v32 = vmul.f32 0.5, %v529_v46  ;;  %vm533_vm5 = vweird.f32 %v1599_v23  ;;  %1024 = vrsqrt.f32 %v1695_v22  ;;  %vm614_vm6 = vweird.f32 %v1021_v28 }
 0x150   : > { %v610_v40 = vmul.f32 0.5, %v609_v56  ;;  %v648_v10 = vmul.f32 %v1522_v31, %v628_v20  ;;  %v667_v37 = vadd.f32 %v1550_v53, %v647_v42  ;;  %v651_v43 = vmul.f32 %v1522_v31, %v631_v41 }
 0x151   : > { %v531_v15 = vsub.f32 1.5, %v530_v32  ;;  %v652_v24 = vmul.f32 %v1522_v31, %v632_v2  ;;  %v657_v26 = vmul.f32 %v1522_v31, %v637_v50  ;;  %v491_v16 = vsub.f32 1.5, %v490_v18 }
 0x152   : > { %v611_v57 = vsub.f32 1.5, %v610_v40  ;;  %v668_v52 = vadd.f32 %v1550_v53, %v648_v10  ;;  %v658_v25 = vmul.f32 %v1522_v31, %v638_v54  ;;  %v642_v58 = vmul.f32 %v626_v11, %v1395_v33 }
 0x153   : > { %vm613_vm7 = vweird.f32 %v1607_v36  ;;  %v671_v60 = vadd.f32 %v1550_v53, %v651_v43  ;;  %v672_v61 = vadd.f32 %v1550_v53, %v652_v24  ;;  %vm534_vm8 = vweird.f32 %v1673_v17 }
 0x154   : > { %v1023_v12 = vpop.eup %1022  ;;  %v612_v51 = vmul.f32 %v1021_v28, %v611_v57  ;;  %v683_v0 = vpack.c.bf16 %v668_v52, %v667_v37  ;;  %v678_v3 = vadd.f32 %v1550_v53, %v658_v25  ;;  %v532_v45 = vmul.f32 %v1673_v17, %v531_v15  ;;  %vm615_vm9 = vmor %vm613_vm7, %vm614_vm6 }
 0x155   : > { %v1025_v4 = vpop.eup %1024  ;;  %v538_v33 = vmul.f32 %v1023_v12, %v1686_v13  ;;  %v685_v30 = vpack.c.bf16 %v672_v61, %v671_v60  ;;  %v677_v36 = vadd.f32 %v1550_v53, %v657_v26  ;;  %v492_v19 = vmul.f32 %v1662_v1, %v491_v16  ;;  %vm535_vm12 = vmor %vm533_vm5, %vm534_vm8 }
 0x156   : > { %vm494_vm10 = vweird.f32 %v1662_v1  ;;  %v616_v6 = vsel %vm615_vm9, %v1021_v28, %v612_v51  ;;  %v498_v7 = vmul.f32 %v1025_v4, %v1695_v22  ;;  %915 = vmatmul.msk.bf16.vlgmr.msra.gmra.mxu0 %vm283_vm0, %v683_v0  ;;  %v662_v9 = vmul.f32 %v1522_v31, %v642_v58 }
 0x157   : > { %v641_v35 = vmul.f32 %v616_v6, %v1398_v34  ;;  %v539_v62 = vmul.f32 %v1023_v12, %v538_v33  ;;  %917 = vmatmul.msk.bf16.vlgmr.msra.gmra.mxu1 %vm283_vm0, %v685_v30  ;;  %v688_v8 = vpack.c.bf16 %v678_v3, %v677_v36  ;;  %vm493_vm11 = vweird.f32 %v1590_v27 }
 0x158   : > { %v499_v63 = vmul.f32 %v1025_v4, %v498_v7  ;;  %vm495_vm13 = vmor %vm493_vm11, %vm494_vm10  ;;  %v536_v14 = vsel %vm535_vm12, %v1673_v17, %v532_v45  ;;  %vm544_vm14 = vweird.f32 %v1023_v12  ;;  %v682_v29 = vadd.f32 %v1550_v53, %v662_v9 }
 0x159   : > { %v540_v38 = vmul.f32 0.5, %v539_v62  ;;  %920 = vmatmul.msk.bf16.gmra.mxu2 %vm283_vm0, %v688_v8  ;;  %v661_v34 = vmul.f32 %v1522_v31, %v641_v35  ;;  %v496_v28 = vsel %vm495_vm13, %v1662_v1, %v492_v19  ;;  %v633_v23 = vmul.f32 %v536_v14, %v1416_v48 }
 0x15a   : > { %v500_v39 = vmul.f32 0.5, %v499_v63  ;;  %vm504_vm15 = vweird.f32 %v1025_v4  ;;  %v629_v17 = vmul.f32 %v496_v28, %v1413_v47  ;;  %vm543_vm1 = vweird.f32 %v1686_v13 }
 0x15b   : > { %v541_v44 = vsub.f32 1.5, %v540_v38  ;;  %v681_v27 = vadd.f32 %v1550_v53, %v661_v34  ;;  %vm545_vm2 = vmor %vm543_vm1, %vm544_vm14  ;;  %vm503_vm3 = vweird.f32 %v1695_v22  ;;  %v653_v54 = vmul.f32 %v1522_v31, %v633_v23 }
 0x15c   : > { %v501_v20 = vsub.f32 1.5, %v500_v39  ;;  %vm505_vm4 = vmor %vm503_vm3, %vm504_vm15  ;;  %v649_v5 = vmul.f32 %v1522_v31, %v629_v17 }
 0x15d   : > { %v542_v41 = vmul.f32 %v1023_v12, %v541_v44  ;;  %v690_v21 = vpack.c.bf16 %v682_v29, %v681_v27  ;;  %v673_v22 = vadd.f32 %v1550_v53, %v653_v54 }
 0x15e   : > { %v502_v42 = vmul.f32 %v1025_v4, %v501_v20  ;;  %v669_v2 = vadd.f32 %v1550_v53, %v649_v5 }
 0x15f   : > { %v546_v1 = vsel %vm545_vm2, %v1023_v12, %v542_v41  ;;  %922 = vmatmul.msk.bf16.gmra.mxu3 %vm283_vm0, %v690_v21 }
 0x160   : > { %v634_v50 = vmul.f32 %v546_v1, %v1432_v55  ;;  %v506_v48 = vsel %vm505_vm4, %v1025_v4, %v502_v42 }
 0x161   : > { %v630_v47 = vmul.f32 %v506_v48, %v1419_v49  ;;  %v1786_v49 = vld [vmem:[%s1858_s4] ss:$0 sm:$0xff] }
 0x162   : > { %v654_v13 = vmul.f32 %v1522_v31, %v634_v50 }
 0x163   : > { %v650_v46 = vmul.f32 %v1522_v31, %v630_v47 }
 0x164   : > { %v674_v59 = vadd.f32 %v1550_v53, %v654_v13 }
 0x165   : > { %v670_v18 = vadd.f32 %v1550_v53, %v650_v46 }
 0x166   : > { %v686_v55 = vpack.c.bf16 %v674_v59, %v673_v22 }
 0x167   : > { %v684_v56 = vpack.c.bf16 %v670_v18, %v669_v2 }
 0x168   : > { %918 = vmatmul.msk.bf16.gmra.mxu1 %vm283_vm0, %v686_v55 }
 0x169   : > { %916 = vmatmul.msk.bf16.gmra.mxu0 %vm283_vm0, %v684_v56  ;;  %vm800_vm0 = vcmask 519168  }
 0x1cb   : > { %v764_v31 = vpop.f32.mrf.mxu2 }
 0x1cc   : > { %v765_v11 = vadd.f32 %v1786_v49, %v764_v31 }
 0x1ce   : > { %v792_v53 = vpack.c.bf16 %v765_v11, %v765_v11  ;;  %v774_v32 = vpop.f32.mrf.mxu3 }
 0x1cf   : > { %v775_v40 = vadd.f32 %v1786_v49, %v774_v32 }
 0x1d0   : > { %809 = vst.msk [vmem:[%s1792_s10 + $0x20] sm:$0xf] %vm800_vm0, %v792_v53 }
 0x1d1   : > { %v796_v10 = vpack.c.bf16 %v775_v40, %v775_v40 }
 0x1d3   : > { %813 = vst.msk [vmem:[%s1792_s10 + $0x30] sm:$0xf] %vm800_vm0, %v796_v10  ;;  %v744_v37 = vpop.f32.mrf.mxu0  ;;  %v766_v15 = vpop.f32.mrf.mxu2 }
 0x1d4   : > { %v745_v43 = vadd.f32 %v1786_v49, %v744_v37  ;;  %v767_v24 = vadd.f32 %v1786_v49, %v766_v15  ;;  %v754_v26 = vpop.f32.mrf.mxu1 }
 0x1d5   : > { %v755_v16 = vadd.f32 %v1786_v49, %v754_v26 }
 0x1d6   : > { %v784_v57 = vpack.c.bf16 %v745_v43, %v745_v43  ;;  %v793_v52 = vpack.c.bf16 %v767_v24, %v767_v24  ;;  %v776_v25 = vpop.f32.mrf.mxu3 }
 0x1d7   : > { %v777_v58 = vadd.f32 %v1786_v49, %v776_v25  ;;  %v788_v60 = vpack.c.bf16 %v755_v16, %v755_v16 }
 0x1d8   : > { %801 = vst.msk [vmem:[%s1792_s10] sm:$0xf] %vm800_vm0, %v784_v57 }
 0x1d9   : > { %810 = vst.msk [vmem:[%s1792_s10 + $0x24] sm:$0xf] %vm800_vm0, %v793_v52  ;;  %v797_v61 = vpack.c.bf16 %v777_v58, %v777_v58 }
 0x1da   : > { %805 = vst.msk [vmem:[%s1792_s10 + $0x10] sm:$0xf] %vm800_vm0, %v788_v60 }
 0x1db   : > { %814 = vst.msk [vmem:[%s1792_s10 + $0x34] sm:$0xf] %vm800_vm0, %v797_v61  ;;  %v746_v12 = vpop.f32.mrf.mxu0 }
 0x1dc   : > { %v747_v51 = vadd.f32 %v1786_v49, %v746_v12  ;;  %v769_v0 = vpop.f32.mrf.mxu2  ;;  %v756_v3 = vpop.f32.mrf.mxu1 }
 0x1dd   : > { %v770_v4 = vadd.f32 %v1786_v49, %v769_v0  ;;  %v757_v45 = vadd.f32 %v1786_v49, %v756_v3 }
 0x1de   : > { %v785_v33 = vpack.c.bf16 %v747_v51, %v747_v51 }
 0x1df   : > { %v794_v30 = vpack.c.bf16 %v770_v4, %v770_v4  ;;  %v789_v36 = vpack.c.bf16 %v757_v45, %v757_v45 }
 0x1e0   : > { %802 = vst.msk [vmem:[%s1792_s10 + $0x4] sm:$0xf] %vm800_vm0, %v785_v33 }
 0x1e1   : > { %811 = vst.msk [vmem:[%s1792_s10 + $0x28] sm:$0xf] %vm800_vm0, %v794_v30 }
 0x1e2   : > { %806 = vst.msk [vmem:[%s1792_s10 + $0x14] sm:$0xf] %vm800_vm0, %v789_v36  ;;  %v779_v19 = vpop.f32.mrf.mxu3 }
 0x1e3   : > { %v780_v6 = vadd.f32 %v1786_v49, %v779_v19 }
 0x1e4   : > { %v771_v7 = vpop.f32.mrf.mxu2 }
 0x1e5   : > { %v772_v35 = vadd.f32 %v1786_v49, %v771_v7  ;;  %v798_v62 = vpack.c.bf16 %v780_v6, %v780_v6  ;;  %v759_v8 = vpop.f32.mrf.mxu1 }
 0x1e6   : > { %v749_v9 = vpop.f32.mrf.mxu0  ;;  %v760_v63 = vadd.f32 %v1786_v49, %v759_v8 }
 0x1e7   : > { %v795_v14 = vpack.c.bf16 %v772_v35, %v772_v35  ;;  %815 = vst.msk [vmem:[%s1792_s10 + $0x38] sm:$0xf] %vm800_vm0, %v798_v62  ;;  %v750_v38 = vadd.f32 %v1786_v49, %v749_v9 }
 0x1e8   : > { %v790_v34 = vpack.c.bf16 %v760_v63, %v760_v63 }
 0x1e9   : > { %812 = vst.msk [vmem:[%s1792_s10 + $0x2c] sm:$0xf] %vm800_vm0, %v795_v14  ;;  %v786_v28 = vpack.c.bf16 %v750_v38, %v750_v38 }
 0x1ea   : > { %807 = vst.msk [vmem:[%s1792_s10 + $0x18] sm:$0xf] %vm800_vm0, %v790_v34  ;;  %v781_v39 = vpop.f32.mrf.mxu3 }
 0x1eb   : > { %803 = vst.msk [vmem:[%s1792_s10 + $0x8] sm:$0xf] %vm800_vm0, %v786_v28  ;;  %v782_v44 = vadd.f32 %v1786_v49, %v781_v39 }
 0x1ed   : > { %v799_v27 = vpack.c.bf16 %v782_v44, %v782_v44  ;;  %v761_v29 = vpop.f32.mrf.mxu1 }
 0x1ee   : > { %v751_v23 = vpop.f32.mrf.mxu0  ;;  %v762_v20 = vadd.f32 %v1786_v49, %v761_v29 }
 0x1ef   : > { %816 = vst.msk [vmem:[%s1792_s10 + $0x3c] sm:$0xf] %vm800_vm0, %v799_v27  ;;  %v752_v17 = vadd.f32 %v1786_v49, %v751_v23 }
 0x1f0   : > { %v791_v41 = vpack.c.bf16 %v762_v20, %v762_v20 }
 0x1f1   : > { %v787_v21 = vpack.c.bf16 %v752_v17, %v752_v17 }
 0x1f2   : > { %808 = vst.msk [vmem:[%s1792_s10 + $0x1c] sm:$0xf] %vm800_vm0, %v791_v41 }
 0x1f3   : > { %804 = vst.msk [vmem:[%s1792_s10 + $0xc] sm:$0xf] %vm800_vm0, %v787_v21 }
 0x1f4 PF: > { %p16_p4 = scmp.ge.s32.totalorder %s1208_s6, 4   ;;  %s1882_s18 = smov %s1116_s19 }
 0x1f5   : > { %s1883_s19 = smov %s1120_s20  ;;  %s1884_s20 = smov %s1218_s11 }
 0x1f6   : > { %s1885_s21 = smov %s1208_s6  ;;  %18 = sbr.rel (!%p16_p4) target bundleno = 4 (0x4), region = 84 }
 0x1fb   :  { %839 = vsyncpa [#allocation3], 1 }
 0x1fc   :  { %841 = vsyncpa [#allocation3 + $0x1], 1 }
 0x1fd   :  { %842 = vsyncpa [#allocation5], 1 }

// kernel: _lambda_.4
= control target key start
LH: loop header
LB: loop body
LE: loop exit
PB: predicated region body
PF: predicated region fallthrough
CT: control target
= control target key end

     0   :  { %s1396_s18 = smov 0   ;;  %s1398_s19 = smov 0   ;;  %s1713_s0 = inlined_call_operand.vmem [shape: bf16[4,256,12], index: 0, kind: input, shape index: {}]   ;;  %s1714_s1 = inlined_call_operand.vmem [shape: bf16[4,12,36], index: 1, kind: input, shape index: {}]   ;;  %s1715_s2 = inlined_call_operand.vmem [shape: f32[4,1,36], index: 2, kind: input, shape index: {}]   ;;  %s1716_s3 = inlined_call_operand.vmem [shape: f32[4,1,128,128], index: 3, kind: input, shape index: {}]   ;;  %s1717_s4 = inlined_call_operand.vmem [shape: bf16[4,12,32], index: 4, kind: input, shape index: {}]   ;;  %s1718_s5 = inlined_call_operand.vmem [shape: bf16[4,256,32], index: 5, kind: output, shape index: {}]  }
   0x1   :  { %s1400_s20 = smov 0   ;;  %s1402_s21 = smov 0  }
   0x2   :  { %s1404_s22 = smov 0  }
   0x3 LB: > { %s24_s23 = sadd.s32 1, %s1354_s20  ;;  %s27_s24 = sadd.s32 1, %s1358_s21  ;;  %s1362_s22 = sphi %s1404_s22, %s15_s22   ;;  %s1358_s21 = sphi %s1402_s21, %s1722_s21   ;;  %s1354_s20 = sphi %s1400_s20, %s1721_s20   ;;  %s1350_s19 = sphi %s1398_s19, %s1720_s19   ;;  %s1346_s18 = sphi %s1396_s18, %s1719_s18  }
   0x4   : > { %p25_p0 = scmp.ge.s32.totalorder %s24_s23, 2  ;;  %p1117_p1 = scmp.ge.s32.totalorder %s1362_s22, 1 }
   0x5   : > { %p246_p2 = scmp.lt.s32.totalorder %s1362_s22, 9 }
   0x6   : > { %s1724_s23 = smov (%p25_p0, %s24_s23), 0  ;;  %s1726_s24 = smov (!%p25_p0, %s27_s24), %s1358_s21 }
   0x7   : > { %p247_p3 = pnand %p1117_p1, %p246_p2  ;;  %p29_p4 = scmp.ge.s32.totalorder %s1726_s24, 4 }
   0x8   : > { %s1118_s25 = sshll.u32 (!%p247_p3), %s1346_s18, 4  ;;  %p301_p5 = scmp.lt.s32.totalorder (!%p247_p3), %s1350_s19, 3 }
   0x9   : > { %s1728_s24 = smov (%p29_p4, %s1726_s24), 0  ;;  %250 = sbr.rel (%p247_p3) target bundleno = 1365 (0x555), region = 40 }
   0xa   : > { %p303_p6 = scmp.lt.s32.totalorder (!%p247_p3), %s1118_s25, 31  ;;  %s1364_s14 = smov (!%p247_p3), 116  }
   0xb   : > { %s1365_s15 = smov (!%p247_p3), 104  }
   0xe   : > { %s1730_s19 = smov (!%p301_p5, %s1350_s19), 3  ;;  %s1732_s25 = smov (!%p303_p6, %s1118_s25), 31  ;;  %vm431_vm0 = vcmask 1045504   ;;  %vm406_vm1 = vcmask 97280   ;;  %vm961_vm2 = vcmask 257024  }
   0xf   : > { %s1119_s26 = sshll.u32 %s1730_s19, 5  ;;  %s1196_s27 = sshll.u32 %s1730_s19, 3 }
  0x10   : > { %s1430_s28 = sadd.s32 %s1119_s26, %s1732_s25  ;;  %s314_s6 = scalar_lea.vmem %s1714_s1, %s1196_s27 }
  0x11   : > { %s1120_s7 = sshll.u32 %s1430_s28, 2  ;;  %s317_s10 = scalar_lea.vmem %s1715_s2, %s1730_s19  ;;  %v1164_v0 = vld [vmem:[%s314_s6] sm:$0xf]  ;;  %v1207_v1 = vld [vmem:[%s314_s6] sm:$0x30] }
  0x12   : > { %s308_s13 = scalar_lea.vmem %s1713_s0, %s1120_s7  ;;  %v1165_v2 = vor.u32 %v1207_v1, %v1164_v0  ;;  %v1259_v13 = vld [vmem:[%s317_s10] ss:$0 sm:$0xff]  ;;  %s1197_s16 = sshll.u32 %s1730_s19, 7 }
  0x13   : > { %v1199_v4 = vld [vmem:[%s308_s13] sm:$0xff]  ;;  %v1200_v5 = vld [vmem:[%s308_s13 + $0x8] sm:$0xff]  ;;  %v1201_v6 = vld [vmem:[%s308_s13 + $0x10] sm:$0xff]  ;;  %s1521_s25 = scalar_lea.vmem %s1716_s3, %s1197_s16  ;;  %s327_s30 = scalar_lea.vmem %s1717_s4, %s1196_s27 }
  0x14   : > { %v433_v3 = vsel %vm431_vm0, %v1165_v2, 0  ;;  %v1202_v7 = vld [vmem:[%s308_s13 + $0x18] sm:$0xff]  ;;  %v1203_v8 = vld [vmem:[%s308_s13 + $0x20] sm:$0xff]  ;;  %v1204_v9 = vld [vmem:[%s308_s13 + $0x28] sm:$0xff]  ;;  %s1660_s6 = scalar_lea.vmem %s1718_s5, %s1120_s7 }
  0x15   : > { %442 = vmatpush.bf16.msra.mxu0 %v433_v3  ;;  %v1205_v10 = vld [vmem:[%s308_s13 + $0x30] sm:$0xff]  ;;  %v1206_v11 = vld [vmem:[%s308_s13 + $0x38] sm:$0xff] }
  0x18   : > { %1166 = vmatmul.msk.bf16.vlgmr.msra.gmra.mxu0 %vm406_vm1, %v1199_v4 }
  0x28   : > { %1167 = vmatmul.msk.bf16.gmra.mxu0 %vm406_vm1, %v1200_v5 }
  0x38   : > { %1168 = vmatmul.msk.bf16.gmra.mxu0 %vm406_vm1, %v1201_v6 }
  0x48   : > { %1169 = vmatmul.msk.bf16.gmra.mxu0 %vm406_vm1, %v1202_v7 }
  0x58   : > { %1170 = vmatmul.msk.bf16.gmra.mxu0 %vm406_vm1, %v1203_v8 }
  0x68   : > { %1171 = vmatmul.msk.bf16.gmra.mxu0 %vm406_vm1, %v1204_v9 }
  0x78   : > { %1172 = vmatmul.msk.bf16.gmra.mxu0 %vm406_vm1, %v1205_v10  ;;  %v492_v10 = vld [vmem:[%s1521_s25] sm:$0xff] }
  0x88   : > { %1173 = vmatmul.msk.bf16.gmra.mxu0 %vm406_vm1, %v1206_v11 }
  0x95   : > { %v444_v12 = vpop.f32.mrf.mxu0 }
  0x96   : > { %v445_v15 = vadd.f32 %v1259_v13, %v444_v12 }
  0x9d   : > { %v446_v14 = vpop.f32.mrf.mxu0 }
  0x9e   : > { %v447_v16 = vadd.f32 %v1259_v13, %v446_v14  ;;  %v496_v14 = vld [vmem:[%s1521_s25 + $0x20] sm:$0xff] }
  0xa0   : > { %v1456_v17 = vpack.c.bf16 %v447_v16, %v445_v15  ;;  %v493_v15 = vld [vmem:[%s1521_s25 + $0x8] sm:$0xff] }
  0xa5   : > { %v449_v18 = vpop.f32.mrf.mxu0 }
  0xa6   : > { %v450_v20 = vadd.f32 %v1259_v13, %v449_v18 }
  0xad   : > { %v451_v19 = vpop.f32.mrf.mxu0 }
  0xae   : > { %v452_v21 = vadd.f32 %v1259_v13, %v451_v19 }
  0xb0   : > { %v1458_v22 = vpack.c.bf16 %v452_v21, %v450_v20  ;;  %v497_v21 = vld [vmem:[%s1521_s25 + $0x28] sm:$0xff] }
  0xb5   : > { %v454_v23 = vpop.f32.mrf.mxu0 }
  0xb6   : > { %v455_v32 = vadd.f32 %v1259_v13, %v454_v23  ;;  %v494_v23 = vld [vmem:[%s1521_s25 + $0x10] sm:$0xff] }
  0xbd   : > { %v456_v24 = vpop.f32.mrf.mxu0 }
  0xbe   : > { %v457_v30 = vadd.f32 %v1259_v13, %v456_v24 }
  0xc0   : > { %v1464_v33 = vpack.c.bf16 %v457_v30, %v455_v32 }
  0xc5   : > { %v459_v25 = vpop.f32.mrf.mxu0 }
  0xc6   : > { %v460_v27 = vadd.f32 %v1259_v13, %v459_v25 }
  0xcd   : > { %v461_v26 = vpop.f32.mrf.mxu0 }
  0xce   : > { %v462_v28 = vadd.f32 %v1259_v13, %v461_v26 }
  0xd0   : > { %v1460_v29 = vpack.c.bf16 %v462_v28, %v460_v27  ;;  %v498_v28 = vld [vmem:[%s1521_s25 + $0x30] sm:$0xff] }
  0xd2   : > { %522 = vrot.lane.b32.xlu2 %v1460_v29, %s1364_s14 }
  0xd5   : > { %v464_v31 = vpop.f32.mrf.mxu0 }
  0xd6   : > { %v465_v42 = vadd.f32 %v1259_v13, %v464_v31 }
  0xda   : > { %520 = vrot.lane.b32.xlu2 %v1464_v33, %s1364_s14 }
  0xdd   : > { %v466_v34 = vpop.f32.mrf.mxu0 }
  0xde   : > { %v467_v40 = vadd.f32 %v1259_v13, %v466_v34  ;;  %v499_v34 = vld [vmem:[%s1521_s25 + $0x38] sm:$0xff] }
  0xe0   : > { %v1472_v43 = vpack.c.bf16 %v467_v40, %v465_v42 }
  0xe5   : > { %v469_v35 = vpop.f32.mrf.mxu0 }
  0xe6   : > { %v470_v37 = vadd.f32 %v1259_v13, %v469_v35 }
  0xed   : > { %v471_v36 = vpop.f32.mrf.mxu0 }
  0xee   : > { %v472_v38 = vadd.f32 %v1259_v13, %v471_v36 }
  0xf0   : > { %v1468_v39 = vpack.c.bf16 %v472_v38, %v470_v37  ;;  %v500_v37 = vld [vmem:[%s1521_s25 + $0x40] sm:$0xff] }
  0xf2   : > { %526 = vrot.lane.b32.xlu1 %v1468_v39, %s1364_s14 }
  0xf5   : > { %v474_v41 = vpop.f32.mrf.mxu0 }
  0xf6   : > { %v475_v45 = vadd.f32 %v1259_v13, %v474_v41 }
  0xfa   : > { %524 = vrot.lane.b32.xlu1 %v1472_v43, %s1364_s14 }
  0xfd   : > { %v476_v44 = vpop.f32.mrf.mxu0 }
  0xfe   : > { %v477_v46 = vadd.f32 %v1259_v13, %v476_v44 }
 0x100   : > { %v1476_v47 = vpack.c.bf16 %v477_v46, %v475_v45 }
 0x102   : > { %793 = vrot.lane.b32.xlu2 %v1476_v47, %s1365_s15  ;;  %516 = vrot.lane.b32.xlu1 %v1456_v17, %s1364_s14 }
 0x105   : > { %v479_v48 = vpop.f32.mrf.mxu0 }
 0x106   : > { %v480_v50 = vadd.f32 %v1259_v13, %v479_v48 }
 0x10a   : > { %789 = vrot.lane.b32.xlu1 %v1472_v43, %s1365_s15 }
 0x10d   : > { %v481_v49 = vpop.f32.mrf.mxu0 }
 0x10e   : > { %v482_v51 = vadd.f32 %v1259_v13, %v481_v49 }
 0x110   : > { %v491_v52 = vpack.c.bf16 %v482_v51, %v480_v50 }
 0x112   : > { %530 = vrot.lane.b32.xlu0 %v491_v52, %s1364_s14  ;;  %787 = vrot.lane.b32.xlu1 %v1460_v29, %s1365_s15 }
 0x11a   : > { %528 = vrot.lane.b32.xlu0 %v1476_v47, %s1364_s14  ;;  %795 = vrot.lane.b32.xlu1 %v491_v52, %s1365_s15 }
 0x122   : > { %518 = vrot.lane.b32.xlu0 %v1458_v22, %s1364_s14 }
 0x12a   : > { %791 = vrot.lane.b32.xlu0 %v1468_v39, %s1365_s15 }
 0x12c   : > { %v523_v57 = vpop.permute.xlu2 %522 }
 0x12d   : > { %v566_v6 = vsel %vm406_vm1, %v523_v57, 0 }
 0x134   : > { %v521_v61 = vpop.permute.xlu2 %520 }
 0x135   : > { %v563_v7 = vsel %vm406_vm1, %v521_v61, 0 }
 0x15c   : > { %v794_v1 = vpop.permute.xlu2 %793 }
 0x164   : > { %v527_v53 = vpop.permute.xlu1 %526 }
 0x165   : > { %v572_v3 = vsel %vm406_vm1, %v527_v53, 0 }
 0x16c   : > { %v525_v54 = vpop.permute.xlu1 %524 }
 0x16d   : > { %v569_v5 = vsel %vm406_vm1, %v525_v54, 0 }
 0x174   : > { %v517_v55 = vpop.permute.xlu1 %516 }
 0x175   : > { %v557_v9 = vsel %vm406_vm1, %v517_v55, 0 }
 0x17c   : > { %v790_v56 = vpop.permute.xlu1 %789 }
 0x184   : > { %v531_v58 = vpop.permute.xlu0 %530  ;;  %v788_v59 = vpop.permute.xlu1 %787 }
 0x185   : > { %v578_v60 = vsel %vm406_vm1, %v531_v58, 0 }
 0x186   : > { %580 = vmatpush.bf16.xpose.msrb.mxu0 %v578_v60  ;;  %1209 = vmatpush.bf16.xpose.msra.mxu1 %v578_v60  ;;  %v504_v60 = vld [vmem:[%s1521_s25 + $0x60] sm:$0xff] }
 0x18c   : > { %v529_v62 = vpop.permute.xlu0 %528  ;;  %v796_v63 = vpop.permute.xlu1 %795 }
 0x18d   : > { %805 = vmatpush.bf16.msra.mxu2 %v796_v63  ;;  %v575_v0 = vsel %vm406_vm1, %v529_v62, 0 }
 0x18e   : > { %581 = vmatpush.bf16.xpose.msrb.mxu0 %v575_v0  ;;  %1210 = vmatpush.bf16.xpose.msra.mxu1 %v575_v0 }
 0x191   : > { %806 = vmatpush.bf16.msra.mxu2 %v794_v1 }
 0x194   : > { %v519_v2 = vpop.permute.xlu0 %518 }
 0x195   : > { %v560_v8 = vsel %vm406_vm1, %v519_v2, 0 }
 0x196   : > { %582 = vmatpush.bf16.xpose.msrb.mxu0 %v572_v3  ;;  %1211 = vmatpush.bf16.xpose.msra.mxu1 %v572_v3 }
 0x19c   : > { %v792_v4 = vpop.permute.xlu0 %791 }
 0x19d   : > { %807 = vmatpush.bf16.msra.mxu2 %v792_v4 }
 0x19e   : > { %583 = vmatpush.bf16.xpose.msrb.mxu0 %v569_v5  ;;  %1212 = vmatpush.bf16.xpose.msra.mxu1 %v569_v5  ;;  %v501_v5 = vld [vmem:[%s1521_s25 + $0x48] sm:$0xff] }
 0x1a1   : > { %808 = vmatpush.bf16.msra.mxu2 %v790_v56  ;;  %v503_v56 = vld [vmem:[%s1521_s25 + $0x58] sm:$0xff] }
 0x1a5   : > { %809 = vmatpush.bf16.msra.mxu2 %v788_v59 }
 0x1a6   : > { %584 = vmatpush.bf16.xpose.msrb.mxu0 %v566_v6  ;;  %1213 = vmatpush.bf16.xpose.msra.mxu1 %v566_v6 }
 0x1ae   : > { %585 = vmatpush.bf16.xpose.msrb.mxu0 %v563_v7  ;;  %1214 = vmatpush.bf16.xpose.msra.mxu1 %v563_v7 }
 0x1b6   : > { %586 = vmatpush.bf16.xpose.msrb.mxu0 %v560_v8  ;;  %1215 = vmatpush.bf16.xpose.msra.mxu1 %v560_v8 }
 0x1be   : > { %587 = vmatpush.bf16.xpose.msrb.mxu0 %v557_v9  ;;  %1216 = vmatpush.bf16.xpose.msra.mxu1 %v557_v9 }
 0x1c5   : > { %1174 = vmatmul.msk.bf16.vlgmr.msrb.gmra.mxu0 %vm406_vm1, %v1456_v17  ;;  %1176 = vmatmul.msk.bf16.vlgmr.msra.gmra.mxu1 %vm406_vm1, %v1464_v33 }
 0x1d5   : > { %1175 = vmatmul.msk.bf16.gmra.mxu0 %vm406_vm1, %v1458_v22  ;;  %1177 = vmatmul.msk.bf16.gmra.mxu1 %vm406_vm1, %v1460_v29  ;;  %v495_v29 = vld [vmem:[%s1521_s25 + $0x18] sm:$0xff] }
 0x1e5   : > { %1178 = vmatmul.msk.bf16.gmra.mxu1 %vm406_vm1, %v1472_v43 }
 0x1f5   : > { %1179 = vmatmul.msk.bf16.gmra.mxu1 %vm406_vm1, %v1468_v39 }
 0x205   : > { %1180 = vmatmul.msk.bf16.gmra.mxu1 %vm406_vm1, %v1476_v47 }
 0x215   : > { %1181 = vmatmul.msk.bf16.gmra.mxu1 %vm406_vm1, %v491_v52 }
 0x242   : > { %v589_v11 = vpop.f32.mrf.mxu0  ;;  %v599_v12 = vpop.f32.mrf.mxu1 }
 0x243   : > { %v590_v13 = vadd.f32 %v589_v11, %v492_v10  ;;  %v1526_v18 = vadd.f32 %v599_v12, %v496_v14 }
 0x245   : > { %629 = vmax.xlane.f32.xlu2 %v590_v13 }
 0x24a   : > { %v591_v16 = vpop.f32.mrf.mxu0  ;;  %v601_v20 = vpop.f32.mrf.mxu1 }
 0x24b   : > { %v592_v19 = vadd.f32 %v591_v16, %v493_v15  ;;  %v1531_v25 = vadd.f32 %v601_v20, %v497_v21 }
 0x24d   : > { %631 = vmax.xlane.f32.xlu0 %v592_v19  ;;  %637 = vmax.xlane.f32.xlu2 %v1526_v18 }
 0x252   : > { %v594_v24 = vpop.f32.mrf.mxu0  ;;  %v604_v27 = vpop.f32.mrf.mxu1 }
 0x253   : > { %v595_v26 = vadd.f32 %v594_v24, %v494_v23  ;;  %v1536_v31 = vadd.f32 %v604_v27, %v498_v28  ;;  %v507_v23 = vld [vmem:[%s1521_s25 + $0x78] sm:$0xff]  ;;  %v505_v27 = vld [vmem:[%s1521_s25 + $0x68] sm:$0xff] }
 0x255   : > { %633 = vmax.xlane.f32.xlu1 %v595_v26  ;;  %639 = vmax.xlane.f32.xlu0 %v1531_v25 }
 0x25a   : > { %v596_v30 = vpop.f32.mrf.mxu0  ;;  %v606_v35 = vpop.f32.mrf.mxu1 }
 0x25b   : > { %v597_v32 = vadd.f32 %v596_v30, %v495_v29  ;;  %v607_v36 = vadd.f32 %v606_v35, %v499_v34 }
 0x25d   : > { %641 = vmax.xlane.f32.xlu0 %v1536_v31  ;;  %635 = vmax.xlane.f32.xlu2 %v597_v32 }
 0x262   : > { %v609_v38 = vpop.f32.mrf.mxu1 }
 0x263   : > { %v1543_v39 = vadd.f32 %v609_v38, %v500_v37 }
 0x265   : > { %643 = vmax.xlane.f32.xlu2 %v607_v36 }
 0x26a   : > { %v611_v47 = vpop.f32.mrf.mxu1 }
 0x26b   : > { %v1575_v9 = vadd.f32 %v611_v47, %v501_v5 }
 0x272   : > { %v614_v52 = vpop.f32.mrf.mxu1 }
 0x27a   : > { %v616_v55 = vpop.f32.mrf.mxu1 }
 0x27b   : > { %v1560_v58 = vadd.f32 %v616_v55, %v503_v56 }
 0x27d   : > { %785 = vrot.lane.b32.xlu2 %v1464_v33, %s1365_s15 }
 0x282   : > { %v619_v61 = vpop.f32.mrf.mxu1 }
 0x283   : > { %v1564_v63 = vadd.f32 %v619_v61, %v504_v60 }
 0x28a   : > { %v621_v8 = vpop.f32.mrf.mxu1 }
 0x28b   : > { %v1599_v29 = vadd.f32 %v621_v8, %v505_v27 }
 0x2a6   : > { %645 = vmax.xlane.f32.xlu2 %v1543_v39 }
 0x2b8   : > { %v630_v40 = vpop.xlane.xlu2 %629 }
 0x2b9   : > { %v661_v41 = vsub.f32 %v590_v13, %v630_v40  ;;  %v502_v13 = vld [vmem:[%s1521_s25 + $0x50] sm:$0xff] }
 0x2ba   : > { %v1584_v16 = vadd.f32 %v614_v52, %v502_v13 }
 0x2bb   : > { %v677_v42 = vmul.f32 1.442695, %v661_v41 }
 0x2bd   : > { %1260 = vpow2.f32 %v677_v42 }
 0x2c0   : > { %v632_v43 = vpop.xlane.xlu0 %631  ;;  %v638_v33 = vpop.xlane.xlu2 %637 }
 0x2c1   : > { %v662_v44 = vsub.f32 %v592_v19, %v632_v43  ;;  %v665_v11 = vsub.f32 %v1526_v18, %v638_v33  ;;  %v624_v19 = vpop.f32.mrf.mxu1 }
 0x2c3   : > { %v1546_v45 = vpop.eup %1260  ;;  %v679_v46 = vmul.f32 1.442695, %v662_v44  ;;  %v685_v15 = vmul.f32 1.442695, %v665_v11 }
 0x2c4   : > { %709 = vadd.xlane.f32.xlu1 %v1546_v45 }
 0x2c5   : > { %1262 = vpow2.f32 %v679_v46 }
 0x2c8   : > { %v634_v0 = vpop.xlane.xlu1 %633  ;;  %v640_v1 = vpop.xlane.xlu0 %639 }
 0x2c9   : > { %v666_v3 = vsub.f32 %v1531_v25, %v640_v1  ;;  %v626_v24 = vpop.f32.mrf.mxu1 }
 0x2ca   : > { %v1596_v28 = vadd.f32 %v626_v24, %v507_v23 }
 0x2cb   : > { %v1549_v48 = vpop.eup %1262  ;;  %v687_v4 = vmul.f32 1.442695, %v666_v3 }
 0x2cc   : > { %711 = vadd.xlane.f32.xlu0 %v1549_v48 }
 0x2d0   : > { %v636_v49 = vpop.xlane.xlu2 %635  ;;  %v642_v6 = vpop.xlane.xlu0 %641 }
 0x2d1   : > { %v664_v50 = vsub.f32 %v597_v32, %v636_v49  ;;  %v667_v10 = vsub.f32 %v1536_v31, %v642_v6  ;;  %v506_v31 = vld [vmem:[%s1521_s25 + $0x70] sm:$0xff] }
 0x2d2   : > { %v1606_v32 = vadd.f32 %v624_v19, %v506_v31  ;;  %v1208_v31 = vld [vmem:[%s327_s30] sm:$0x30] }
 0x2d3   : > { %v683_v51 = vmul.f32 1.442695, %v664_v50  ;;  %v689_v12 = vmul.f32 1.442695, %v667_v10 }
 0x2d5   : > { %1264 = vpow2.f32 %v683_v51 }
 0x2d8   : > { %v644_v53 = vpop.xlane.xlu2 %643 }
 0x2d9   : > { %v668_v59 = vsub.f32 %v607_v36, %v644_v53 }
 0x2db   : > { %v1552_v54 = vpop.eup %1264  ;;  %v691_v62 = vmul.f32 1.442695, %v668_v59 }
 0x2dc   : > { %715 = vadd.xlane.f32.xlu2 %v1552_v54 }
 0x2dd   : > { %781 = vrot.lane.b32.xlu1 %v1456_v17, %s1365_s15  ;;  %1266 = vpow2.f32 %v691_v62 }
 0x2e0   : > { %783 = vrot.lane.b32.xlu0 %v1458_v22, %s1365_s15  ;;  %v786_v57 = vpop.permute.xlu2 %785  ;;  %v663_v22 = vsub.f32 %v595_v26, %v634_v0 }
 0x2e1   : > { %810 = vmatpush.bf16.msra.mxu2 %v786_v57 }
 0x2e2   : > { %v681_v2 = vmul.f32 1.442695, %v663_v22 }
 0x2e3   : > { %v1567_v17 = vpop.eup %1266 }
 0x2e4   : > { %651 = vmax.xlane.f32.xlu2 %v1560_v58  ;;  %1268 = vpow2.f32 %v681_v2 }
 0x2e5   : > { %1270 = vpow2.f32 %v687_v4 }
 0x2e6   : > { %1272 = vpow2.f32 %v689_v12 }
 0x2e7   : > { %1274 = vpow2.f32 %v685_v15 }
 0x2ea   : > { %v1572_v7 = vpop.eup %1268 }
 0x2eb   : > { %v1581_v14 = vpop.eup %1270 }
 0x2ec   : > { %653 = vmax.xlane.f32.xlu2 %v1564_v63  ;;  %v1587_v20 = vpop.eup %1272 }
 0x2ed   : > { %v1590_v18 = vpop.eup %1274 }
 0x2f4   : > { %723 = vadd.xlane.f32.xlu2 %v1567_v17 }
 0x307   : > { %713 = vadd.xlane.f32.xlu1 %v1572_v7 }
 0x30a   : > { %647 = vmax.xlane.f32.xlu0 %v1575_v9 }
 0x30f   : > { %719 = vadd.xlane.f32.xlu1 %v1581_v14 }
 0x312   : > { %649 = vmax.xlane.f32.xlu0 %v1584_v16 }
 0x317   : > { %721 = vadd.xlane.f32.xlu1 %v1587_v20 }
 0x319   : > { %v646_v21 = vpop.xlane.xlu2 %645 }
 0x31a   : > { %v669_v25 = vsub.f32 %v1543_v39, %v646_v21  ;;  %717 = vadd.xlane.f32.xlu0 %v1590_v18 }
 0x31c   : > { %v693_v26 = vmul.f32 1.442695, %v669_v25 }
 0x31e   : > { %1276 = vpow2.f32 %v693_v26 }
 0x31f   : > { %659 = vmax.xlane.f32.xlu1 %v1596_v28 }
 0x322   : > { %655 = vmax.xlane.f32.xlu0 %v1599_v29 }
 0x324   : > { %v1602_v30 = vpop.eup %1276 }
 0x325   : > { %725 = vadd.xlane.f32.xlu2 %v1602_v30 }
 0x32a   : > { %657 = vmax.xlane.f32.xlu0 %v1606_v32 }
 0x337   : > { %v710_v35 = vpop.xlane.xlu1 %709 }
 0x33f   : > { %v712_v34 = vpop.xlane.xlu0 %711 }
 0x340   : > { %1278 = vrcp.f32 %v712_v34 }
 0x341   : > { %1280 = vrcp.f32 %v710_v35 }
 0x346   : > { %v1279_v37 = vpop.eup %1278 }
 0x347   : > { %v1281_v39 = vpop.eup %1280  ;;  %v758_v40 = vmul.f32 %v1279_v37, %v1549_v48 }
 0x348   : > { %v757_v42 = vmul.f32 %v1281_v39, %v1546_v45 }
 0x34a   : > { %v773_v44 = vpack.c.bf16 %v758_v40, %v757_v42 }
 0x34f   : > { %v716_v36 = vpop.xlane.xlu2 %715  ;;  %v782_v41 = vpop.permute.xlu1 %781 }
 0x352   : > { %v784_v38 = vpop.permute.xlu0 %783 }
 0x353   : > { %811 = vmatpush.bf16.msra.mxu2 %v784_v38 }
 0x357   : > { %812 = vmatpush.bf16.msra.mxu2 %v782_v41  ;;  %v652_v43 = vpop.xlane.xlu2 %651 }
 0x358   : > { %v672_v46 = vsub.f32 %v1560_v58, %v652_v43 }
 0x35a   : > { %813 = vmatmul.bf16.vlgmr.msra.gmra.mxu2 %v773_v44  ;;  %v699_v33 = vmul.f32 1.442695, %v672_v46 }
 0x35c   : > { %1282 = vpow2.f32 %v699_v33 }
 0x35d   : > { %1284 = vrcp.f32 %v716_v36 }
 0x35f   : > { %v654_v48 = vpop.xlane.xlu2 %653 }
 0x360   : > { %v673_v55 = vsub.f32 %v1564_v63, %v654_v48 }
 0x362   : > { %v1612_v47 = vpop.eup %1282  ;;  %v701_v60 = vmul.f32 1.442695, %v673_v55 }
 0x363   : > { %731 = vadd.xlane.f32.xlu2 %v1612_v47  ;;  %v1285_v45 = vpop.eup %1284 }
 0x364   : > { %v760_v58 = vmul.f32 %v1285_v45, %v1552_v54 }
 0x367   : > { %v724_v15 = vpop.xlane.xlu2 %723 }
 0x37a   : > { %v714_v49 = vpop.xlane.xlu1 %713 }
 0x37b   : > { %1286 = vrcp.f32 %v714_v49 }
 0x37d   : > { %v648_v50 = vpop.xlane.xlu0 %647 }
 0x37e   : > { %v670_v51 = vsub.f32 %v1575_v9, %v648_v50 }
 0x380   : > { %v695_v52 = vmul.f32 1.442695, %v670_v51 }
 0x381   : > { %v1287_v53 = vpop.eup %1286 }
 0x382   : > { %1288 = vpow2.f32 %v695_v52  ;;  %v720_v56 = vpop.xlane.xlu1 %719  ;;  %v759_v57 = vmul.f32 %v1287_v53, %v1572_v7 }
 0x383   : > { %1290 = vpow2.f32 %v701_v60 }
 0x384   : > { %v774_v59 = vpack.c.bf16 %v760_v58, %v759_v57 }
 0x385   : > { %v650_v61 = vpop.xlane.xlu0 %649 }
 0x386   : > { %v671_v62 = vsub.f32 %v1584_v16, %v650_v61  ;;  %818 = vmatmul.bf16.gmra.mxu2 %v774_v59 }
 0x388   : > { %v1620_v0 = vpop.eup %1288  ;;  %v697_v22 = vmul.f32 1.442695, %v671_v62 }
 0x389   : > { %727 = vadd.xlane.f32.xlu0 %v1620_v0  ;;  %v1623_v2 = vpop.eup %1290 }
 0x38a   : > { %1292 = vpow2.f32 %v697_v22  ;;  %v722_v63 = vpop.xlane.xlu1 %721 }
 0x38b   : > { %1294 = vrcp.f32 %v720_v56 }
 0x38d   : > { %v718_v1 = vpop.xlane.xlu0 %717 }
 0x38e   : > { %1296 = vrcp.f32 %v718_v1 }
 0x390   : > { %v1625_v54 = vpop.eup %1292 }
 0x391   : > { %733 = vadd.xlane.f32.xlu0 %v1623_v2  ;;  %729 = vadd.xlane.f32.xlu1 %v1625_v54  ;;  %v1295_v3 = vpop.eup %1294 }
 0x392   : > { %v660_v4 = vpop.xlane.xlu1 %659  ;;  %v762_v10 = vmul.f32 %v1295_v3, %v1581_v14 }
 0x393   : > { %v676_v5 = vsub.f32 %v1596_v28, %v660_v4 }
 0x394   : > { %v1297_v6 = vpop.eup %1296 }
 0x395   : > { %v707_v7 = vmul.f32 1.442695, %v676_v5  ;;  %v656_v8 = vpop.xlane.xlu0 %655  ;;  %v761_v9 = vmul.f32 %v1297_v6, %v1590_v18 }
 0x396   : > { %v674_v11 = vsub.f32 %v1599_v29, %v656_v8  ;;  %v1184_v29 = vld [vmem:[%s327_s30] sm:$0xf] }
 0x397   : > { %1298 = vpow2.f32 %v707_v7  ;;  %v775_v12 = vpack.c.bf16 %v762_v10, %v761_v9 }
 0x398   : > { %v703_v13 = vmul.f32 1.442695, %v674_v11  ;;  %1300 = vrcp.f32 %v722_v63 }
 0x399   : > { %823 = vmatmul.bf16.gmra.mxu2 %v775_v12 }
 0x39a   : > { %1302 = vpow2.f32 %v703_v13 }
 0x39b   : > { %1304 = vrcp.f32 %v724_v15 }
 0x39d   : > { %v1633_v16 = vpop.eup %1298  ;;  %v658_v19 = vpop.xlane.xlu0 %657 }
 0x39e   : > { %v675_v21 = vsub.f32 %v1606_v32, %v658_v19  ;;  %739 = vadd.xlane.f32.xlu0 %v1633_v16  ;;  %v1301_v18 = vpop.eup %1300  ;;  %v1185_v32 = vor.u32 %v1208_v31, %v1184_v29 }
 0x39f   : > { %v763_v25 = vmul.f32 %v1301_v18, %v1587_v20 }
 0x3a0   : > { %v1303_v14 = vpop.eup %1302  ;;  %v705_v23 = vmul.f32 1.442695, %v675_v21  ;;  %v894_v34 = vsel %vm431_vm0, %v1185_v32, 0 }
 0x3a1   : > { %735 = vadd.xlane.f32.xlu1 %v1303_v14  ;;  %v1305_v24 = vpop.eup %1304  ;;  %903 = vmatpush.bf16.msra.mxu3 %v894_v34 }
 0x3a2   : > { %1306 = vpow2.f32 %v705_v23  ;;  %v764_v26 = vmul.f32 %v1305_v24, %v1567_v17  ;;  %v726_v17 = vpop.xlane.xlu2 %725 }
 0x3a3   : > { %1308 = vrcp.f32 %v726_v17 }
 0x3a4   : > { %v776_v27 = vpack.c.bf16 %v764_v26, %v763_v25 }
 0x3a8   : > { %v1307_v28 = vpop.eup %1306 }
 0x3a9   : > { %737 = vadd.xlane.f32.xlu2 %v1307_v28  ;;  %828 = vmatmul.bf16.gmra.mxu2 %v776_v27  ;;  %v1309_v38 = vpop.eup %1308 }
 0x3aa   : > { %v765_v40 = vmul.f32 %v1309_v38, %v1602_v30 }
 0x3d6   : > { %v732_v44 = vpop.xlane.xlu2 %731 }
 0x3dd   : > { %v814_v35 = vpop.f32.mrf.mxu2 }
 0x3e5   : > { %v816_v36 = vpop.f32.mrf.mxu2 }
 0x3e6   : > { %v854_v20 = vpack.c.bf16 %v816_v36, %v814_v35 }
 0x3e8   : > { %1186 = vmatmul.msk.bf16.vlgmr.msra.gmra.mxu3 %vm406_vm1, %v854_v20 }
 0x3fc   : > { %v728_v37 = vpop.xlane.xlu0 %727 }
 0x3fd   : > { %1310 = vrcp.f32 %v728_v37 }
 0x403   : > { %v1311_v39 = vpop.eup %1310 }
 0x404   : > { %v766_v41 = vmul.f32 %v1311_v39, %v1620_v0  ;;  %v730_v42 = vpop.xlane.xlu1 %729  ;;  %v734_v53 = vpop.xlane.xlu0 %733 }
 0x405   : > { %1312 = vrcp.f32 %v730_v42 }
 0x406   : > { %v777_v43 = vpack.c.bf16 %v766_v41, %v765_v40  ;;  %1314 = vrcp.f32 %v732_v44 }
 0x408   : > { %833 = vmatmul.bf16.gmra.mxu2 %v777_v43 }
 0x409   : > { %v819_v46 = vpop.f32.mrf.mxu2 }
 0x40b   : > { %v1313_v33 = vpop.eup %1312 }
 0x40c   : > { %v1315_v49 = vpop.eup %1314  ;;  %v767_v51 = vmul.f32 %v1313_v33, %v1625_v54 }
 0x40d   : > { %v768_v45 = vmul.f32 %v1315_v49, %v1612_v47 }
 0x40f   : > { %v778_v52 = vpack.c.bf16 %v768_v45, %v767_v51 }
 0x411   : > { %v821_v50 = vpop.f32.mrf.mxu2  ;;  %v740_v47 = vpop.xlane.xlu0 %739 }
 0x412   : > { %v855_v48 = vpack.c.bf16 %v821_v50, %v819_v46 }
 0x414   : > { %1187 = vmatmul.msk.bf16.gmra.mxu3 %vm406_vm1, %v855_v48  ;;  %v736_v30 = vpop.xlane.xlu1 %735 }
 0x415   : > { %1316 = vrcp.f32 %v736_v30 }
 0x416   : > { %1318 = vrcp.f32 %v734_v53 }
 0x418   : > { %838 = vmatmul.bf16.gmra.mxu2 %v778_v52 }
 0x41b   : > { %v1317_v56 = vpop.eup %1316 }
 0x41c   : > { %v824_v55 = vpop.f32.mrf.mxu2  ;;  %v1319_v57 = vpop.eup %1318  ;;  %v770_v58 = vmul.f32 %v1317_v56, %v1303_v14 }
 0x41d   : > { %v769_v60 = vmul.f32 %v1319_v57, %v1623_v2  ;;  %v738_v62 = vpop.xlane.xlu2 %737 }
 0x41e   : > { %1320 = vrcp.f32 %v738_v62 }
 0x41f   : > { %v779_v0 = vpack.c.bf16 %v770_v58, %v769_v60  ;;  %1322 = vrcp.f32 %v740_v47 }
 0x424   : > { %v826_v59 = vpop.f32.mrf.mxu2  ;;  %v1321_v63 = vpop.eup %1320 }
 0x425   : > { %v856_v61 = vpack.c.bf16 %v826_v59, %v824_v55  ;;  %v1323_v1 = vpop.eup %1322  ;;  %v771_v54 = vmul.f32 %v1321_v63, %v1307_v28 }
 0x426   : > { %v772_v4 = vmul.f32 %v1323_v1, %v1633_v16 }
 0x427   : > { %1188 = vmatmul.msk.bf16.gmra.mxu3 %vm406_vm1, %v856_v61 }
 0x428   : > { %843 = vmatmul.bf16.gmra.mxu2 %v779_v0  ;;  %v780_v6 = vpack.c.bf16 %v772_v4, %v771_v54 }
 0x42c   : > { %v829_v22 = vpop.f32.mrf.mxu2 }
 0x434   : > { %v831_v3 = vpop.f32.mrf.mxu2 }
 0x435   : > { %v857_v5 = vpack.c.bf16 %v831_v3, %v829_v22 }
 0x437   : > { %1189 = vmatmul.msk.bf16.gmra.mxu3 %vm406_vm1, %v857_v5 }
 0x438   : > { %848 = vmatmul.bf16.gmra.mxu2 %v780_v6 }
 0x46b   : > { %v905_v2 = vpop.f32.mrf.mxu3 }
 0x46c   : > { %v945_v7 = vpack.c.bf16 %v905_v2, %v905_v2 }
 0x46e   : > { %962 = vst.msk [vmem:[%s1660_s6] sm:$0xf] %vm961_vm2, %v945_v7 }
 0x473   : > { %v907_v8 = vpop.f32.mrf.mxu3 }
 0x474   : > { %v946_v9 = vpack.c.bf16 %v907_v8, %v907_v8 }
 0x476   : > { %963 = vst.msk [vmem:[%s1660_s6 + $0x4] sm:$0xf] %vm961_vm2, %v946_v9 }
 0x48b   : > { %v834_v10 = vpop.f32.mrf.mxu2 }
 0x493   : > { %v836_v11 = vpop.f32.mrf.mxu2 }
 0x494   : > { %v858_v12 = vpack.c.bf16 %v836_v11, %v834_v10 }
 0x496   : > { %1190 = vmatmul.msk.bf16.gmra.mxu3 %vm406_vm1, %v858_v12 }
 0x497   : > { %v910_v13 = vpop.f32.mrf.mxu3 }
 0x498   : > { %v947_v15 = vpack.c.bf16 %v910_v13, %v910_v13 }
 0x49a   : > { %964 = vst.msk [vmem:[%s1660_s6 + $0x8] sm:$0xf] %vm961_vm2, %v947_v15 }
 0x49b   : > { %v839_v16 = vpop.f32.mrf.mxu2 }
 0x49f   : > { %v912_v19 = vpop.f32.mrf.mxu3 }
 0x4a0   : > { %v948_v21 = vpack.c.bf16 %v912_v19, %v912_v19 }
 0x4a2   : > { %965 = vst.msk [vmem:[%s1660_s6 + $0xc] sm:$0xf] %vm961_vm2, %v948_v21 }
 0x4a3   : > { %v841_v18 = vpop.f32.mrf.mxu2 }
 0x4a4   : > { %v859_v14 = vpack.c.bf16 %v841_v18, %v839_v16 }
 0x4a6   : > { %1191 = vmatmul.msk.bf16.gmra.mxu3 %vm406_vm1, %v859_v14 }
 0x4aa   : > { %v915_v23 = vpop.f32.mrf.mxu3 }
 0x4ab   : > { %v949_v24 = vpack.c.bf16 %v915_v23, %v915_v23  ;;  %v844_v25 = vpop.f32.mrf.mxu2 }
 0x4ad   : > { %966 = vst.msk [vmem:[%s1660_s6 + $0x10] sm:$0xf] %vm961_vm2, %v949_v24 }
 0x4b2   : > { %v917_v26 = vpop.f32.mrf.mxu3 }
 0x4b3   : > { %v950_v27 = vpack.c.bf16 %v917_v26, %v917_v26  ;;  %v846_v28 = vpop.f32.mrf.mxu2 }
 0x4b4   : > { %v860_v29 = vpack.c.bf16 %v846_v28, %v844_v25 }
 0x4b5   : > { %967 = vst.msk [vmem:[%s1660_s6 + $0x14] sm:$0xf] %vm961_vm2, %v950_v27 }
 0x4b6   : > { %1192 = vmatmul.msk.bf16.gmra.mxu3 %vm406_vm1, %v860_v29 }
 0x4ba   : > { %v920_v31 = vpop.f32.mrf.mxu3 }
 0x4bb   : > { %v951_v32 = vpack.c.bf16 %v920_v31, %v920_v31  ;;  %v849_v34 = vpop.f32.mrf.mxu2 }
 0x4bd   : > { %968 = vst.msk [vmem:[%s1660_s6 + $0x18] sm:$0xf] %vm961_vm2, %v951_v32 }
 0x4c2   : > { %v922_v35 = vpop.f32.mrf.mxu3 }
 0x4c3   : > { %v952_v36 = vpack.c.bf16 %v922_v35, %v922_v35  ;;  %v851_v20 = vpop.f32.mrf.mxu2 }
 0x4c4   : > { %v861_v17 = vpack.c.bf16 %v851_v20, %v849_v34 }
 0x4c5   : > { %969 = vst.msk [vmem:[%s1660_s6 + $0x1c] sm:$0xf] %vm961_vm2, %v952_v36 }
 0x4c6   : > { %1193 = vmatmul.msk.bf16.gmra.mxu3 %vm406_vm1, %v861_v17 }
 0x519   : > { %v925_v37 = vpop.f32.mrf.mxu3 }
 0x51a   : > { %v953_v38 = vpack.c.bf16 %v925_v37, %v925_v37 }
 0x51c   : > { %970 = vst.msk [vmem:[%s1660_s6 + $0x20] sm:$0xf] %vm961_vm2, %v953_v38 }
 0x521   : > { %v927_v39 = vpop.f32.mrf.mxu3 }
 0x522   : > { %v954_v40 = vpack.c.bf16 %v927_v39, %v927_v39 }
 0x524   : > { %971 = vst.msk [vmem:[%s1660_s6 + $0x24] sm:$0xf] %vm961_vm2, %v954_v40 }
 0x529   : > { %v930_v41 = vpop.f32.mrf.mxu3 }
 0x52a   : > { %v955_v42 = vpack.c.bf16 %v930_v41, %v930_v41 }
 0x52c   : > { %972 = vst.msk [vmem:[%s1660_s6 + $0x28] sm:$0xf] %vm961_vm2, %v955_v42 }
 0x531   : > { %v932_v43 = vpop.f32.mrf.mxu3 }
 0x532   : > { %v956_v44 = vpack.c.bf16 %v932_v43, %v932_v43 }
 0x534   : > { %973 = vst.msk [vmem:[%s1660_s6 + $0x2c] sm:$0xf] %vm961_vm2, %v956_v44 }
 0x539   : > { %v935_v46 = vpop.f32.mrf.mxu3 }
 0x53a   : > { %v957_v33 = vpack.c.bf16 %v935_v46, %v935_v46 }
 0x53c   : > { %974 = vst.msk [vmem:[%s1660_s6 + $0x30] sm:$0xf] %vm961_vm2, %v957_v33 }
 0x541   : > { %v937_v49 = vpop.f32.mrf.mxu3 }
 0x542   : > { %v958_v50 = vpack.c.bf16 %v937_v49, %v937_v49 }
 0x544   : > { %975 = vst.msk [vmem:[%s1660_s6 + $0x34] sm:$0xf] %vm961_vm2, %v958_v50 }
 0x549   : > { %v940_v48 = vpop.f32.mrf.mxu3 }
 0x54a   : > { %v959_v51 = vpack.c.bf16 %v940_v48, %v940_v48 }
 0x54c   : > { %976 = vst.msk [vmem:[%s1660_s6 + $0x38] sm:$0xf] %vm961_vm2, %v959_v51 }
 0x551   : > { %v942_v45 = vpop.f32.mrf.mxu3 }
 0x552   : > { %v960_v30 = vpack.c.bf16 %v942_v45, %v942_v45 }
 0x554   : > { %977 = vst.msk [vmem:[%s1660_s6 + $0x3c] sm:$0xf] %vm961_vm2, %v960_v30 }
 0x555 PF: > { %s15_s22 = sadd.s32 1, %s1362_s22   ;;  %s1719_s18 = smov %s1354_s20 }
 0x556   : > { %p12_p7 = scmp.ge.s32.totalorder %s15_s22, 10   ;;  %s1720_s19 = smov %s1358_s21 }
 0x557   : > { %s1721_s20 = smov %s1724_s23  ;;  %s1722_s21 = smov %s1728_s24 }
 0x558   :  { %14 = sbr.rel (!%p12_p7) target bundleno = 3 (0x3), region = 82 }

// kernel: _lambda_.5
= control target key start
LH: loop header
LB: loop body
LE: loop exit
PB: predicated region body
PF: predicated region fallthrough
CT: control target
= control target key end

     0   :  { %s3464_s0 = inlined_call_operand.vmem [shape: f32[256,32], index: 0, kind: input, shape index: {}]   ;;  %s3465_s1 = inlined_call_operand.vmem [shape: bf16[256,32], index: 1, kind: input, shape index: {}]   ;;  %s3466_s2 = inlined_call_operand.vmem [shape: bf16[256,32], index: 2, kind: input, shape index: {}]   ;;  %s3467_s3 = inlined_call_operand.vmem [shape: bf16[256,32], index: 3, kind: input, shape index: {}]   ;;  %s3468_s4 = inlined_call_operand.vmem [shape: bf16[256,32], index: 4, kind: input, shape index: {}]   ;;  %s3469_s5 = inlined_call_operand.vmem [shape: bf16[256,8], index: 5, kind: input, shape index: {}]   ;;  %s3470_s6 = inlined_call_operand.vmem [shape: bf16[256,56], index: 6, kind: input, shape index: {}]   ;;  %s3471_s7 = inlined_call_operand.vmem [shape: bf16[8,32], index: 7, kind: input, shape index: {}]   ;;  %s3472_s8 = inlined_call_operand.vmem [shape: bf16[56,32], index: 8, kind: input, shape index: {}]   ;;  %s3473_s9 = inlined_call_operand.vmem [shape: f32[1,32], index: 9, kind: input, shape index: {}]   ;;  %s3474_s10 = inlined_call_operand.vmem [shape: f32[1,32], index: 10, kind: input, shape index: {}]   ;;  %s3475_s11 = inlined_call_operand.vmem [shape: f32[1,32], index: 11, kind: input, shape index: {}]   ;;  %s3476_s12 = inlined_call_operand.vmem [shape: bf16[32,128], index: 12, kind: input, shape index: {}]   ;;  %s3477_s13 = inlined_call_operand.vmem [shape: f32[1,128], index: 13, kind: input, shape index: {}]   ;;  %s3478_s14 = inlined_call_operand.vmem [shape: bf16[128,32], index: 14, kind: input, shape index: {}]   ;;  %s3479_s15 = inlined_call_operand.vmem [shape: f32[1,32], index: 15, kind: input, shape index: {}]   ;;  %s3480_s16 = inlined_call_operand.hbm [shape: f32[256,32], index: 16, kind: output, shape index: {}]  }
   0x1   :  { %3486 = sst [smem:[#allocation10_spill]] %s3464_s0 }
   0x2   :  { %3487 = sst [smem:[#allocation11_spill]] %s3469_s5 }
   0x3   :  { %3488 = sst [smem:[#allocation12_spill]] %s3470_s6 }
   0x4   :  { %3489 = sst [smem:[#allocation13_spill]] %s3471_s7 }
   0x5   :  { %3490 = sst [smem:[#allocation14_spill]] %s3472_s8 }
   0x6   :  { %21 = vsyncpa [#allocation3], 0 }
   0x7   :  { %23 = vsyncpa [#allocation3 + $0x1], 0  ;;  %s2787_s21 = smov 0   ;;  %s2789_s22 = smov 0  }
   0x8   :  { %s2791_s23 = smov 0   ;;  %s2793_s24 = smov 0  }
   0x9 LB: > { %3491 = sst [smem:[#allocation5_spill]] %s2685_s21  ;;  %s2808_s25 = sadd.s32 4294967295, %s2697_s24   ;;  %s2697_s24 = sphi %s2793_s24, %s3505_s24   ;;  %s2693_s23 = sphi %s2791_s23, %s3507_s23   ;;  %s2689_s22 = sphi %s2789_s22, %s3509_s22   ;;  %s2685_s21 = sphi %s2787_s21, %s3508_s21  }
   0xa   : > { %3492 = sst [smem:[#allocation6_spill]] %s2693_s23  ;;  %s2164_s26 = sadd.s32 4294967294, %s2697_s24  }
   0xb   : > { %s2812_s27 = sadd.s32 1, %s2697_s24   ;;  %s407_s28 = sadd.s32 1, %s2693_s23 }
   0xc   : > { %3493 = sst [smem:[#allocation7_spill]] %s2812_s27  ;;  %s404_s29 = ssub.s32 %s2697_s24, %s2812_s27 }
   0xd   : > { %p417_p0 = scmp.ne.s32.totalorder %s2693_s23, %s2689_s22  ;;  %p405_p1 = scmp.eq.s32.totalorder %s404_s29, 0 }
   0xe   : > { %p418_p2 = scmp.eq.s32.totalorder %s2808_s25, 1  ;;  %p423_p3 = scmp.ne.s32.totalorder %s2689_s22, %s2685_s21 }
   0xf   : > { %p424_p4 = scmp.eq.s32.totalorder %s2164_s26, 1  ;;  %p2167_p7 = scmp.ge.s32.totalorder %s2697_s24, 1 }
  0x10   : > { %s2823_s30 = scalar_select %p405_p1, %s2693_s23, %s407_s28  }
  0x11   : > { %p2825_p5 = por %p418_p2, %p417_p0  ;;  %p2829_p6 = por %p424_p4, %p423_p3 }
  0x12   : > { %3494 = sst [smem:[#allocation8_spill]] %s2823_s30  ;;  %p532_p8 = scmp.lt.s32.totalorder %s2697_s24, 3 }
  0x13   : > { %s3496_s17 = scalar_select %p2829_p6, 1, 0 }
  0x14   : > { %p533_p9 = pnand %p2167_p7, %p532_p8 }
  0x15   : > { %3497 = sst [smem:[#allocation9_spill]] %s3496_s17  ;;  %s2169_s28 = sshll.u32 (!%p533_p9), %s2808_s25, 4 }
  0x16   : > { %536 = sbr.rel (%p533_p9) target bundleno = 1032 (0x408), region = 84  ;;  %s3498_s8 = sld [smem:[#allocation14_spill]] (!%p533_p9) }
  0x17   : > { %s3499_s7 = sld [smem:[#allocation13_spill]] (!%p533_p9)  ;;  %p613_p10 = scmp.lt.s32.totalorder (!%p533_p9), %s2169_s28, 31 }
  0x18   : > { %s3500_s5 = sld [smem:[#allocation11_spill]] (!%p533_p9)  ;;  %s609_s17 = sand.u32 (!%p533_p9), 1, %s2689_s22  }
  0x19   : > { %s3501_s6 = sld [smem:[#allocation12_spill]] (!%p533_p9)  ;;  %s2168_s19 = sshll.u32 (!%p533_p9), %s609_s17, 7 }
  0x1b   : > { %vm966_vm0 = vcmask 1043456   ;;  %s3511_s28 = smov (!%p613_p10, %s2169_s28), 31  ;;  %vm941_vm1 = vcmask 64512   ;;  %vm1119_vm2 = vcmask 457728   ;;  %v2928_v38 = vld [vmem:[%s3473_s9] ss:$0 sm:$0xff] }
  0x1c   : > { %v1057_v0 = vld [vmem:[%s3498_s8 + $0x18] sm:$0xf]  ;;  %v2346_v6 = vld [vmem:[%s3498_s8 + $0x10] sm:$0xff]  ;;  %s2848_s18 = sshll.u32 %s3511_s28, 2  ;;  %v2345_v8 = vld [vmem:[%s3498_s8 + $0x8] sm:$0xff]  ;;  %s2170_s29 = sshll.u32 %s3511_s28, 3 }
  0x1d   : > { %v900_v1 = vld [vmem:[%s3499_s7] sm:$0xf]  ;;  %v1111_v2 = vunpack.c.l.b16 %v1057_v0  ;;  %s2888_s30 = scalar_lea.vmem %s3465_s1, %s2848_s18  ;;  %s2902_s21 = scalar_lea.vmem %s3466_s2, %s2848_s18  ;;  %vm1212_vm3 = vcmask 261120  }
  0x1e   : > { %v968_v3 = vsel %vm966_vm0, %v900_v1, 0  ;;  %s2854_s26 = scalar_lea.vmem %s3500_s5, %s2848_s18  ;;  %v2344_v9 = vld [vmem:[%s3498_s8] sm:$0xff]  ;;  %s2913_s7 = scalar_lea.vmem %s3467_s3, %s2848_s18  ;;  %v2486_v33 = vld [vmem:[%s2888_s30 + $0x8] sm:$0xff]  }
  0x1f   : > { %977 = vmatpush.bf16.msra.mxu0 %v968_v3  ;;  %v1115_v4 = vpack.c.b16 %v1111_v2, %v1111_v2  ;;  %v2328_v7 = vld [vmem:[%s2854_s26] sm:$0xff]  ;;  %s2868_s5 = scalar_lea.vmem %s3501_s6, %s2848_s18  ;;  %v2329_v11 = vld [vmem:[%s2854_s26 + $0x8] sm:$0xff]  ;;  %v2330_v13 = vld [vmem:[%s2854_s26 + $0x10] sm:$0xff]  ;;  %s3502_s6 = sld [smem:[#allocation10_spill]]  ;;  %v2364_v36 = vunpack.c.l.bf16 %v2486_v33  ;;  %v2365_v56 = vunpack.c.h.bf16 %v2486_v33 }
  0x20   : > { %v2336_v10 = vld [vmem:[%s2868_s5] sm:$0xff]  ;;  %v2337_v12 = vld [vmem:[%s2868_s5 + $0x8] sm:$0xff]  ;;  %v2338_v14 = vld [vmem:[%s2868_s5 + $0x10] sm:$0xff]  ;;  %s2920_s23 = scalar_lea.vmem %s3468_s4, %s2848_s18 }
  0x21   : > { %v1145_v5 = vsel %vm966_vm0, %v1115_v4, 0  ;;  %v2331_v15 = vld [vmem:[%s2854_s26 + $0x18] sm:$0xff]  ;;  %v2332_v17 = vld [vmem:[%s2854_s26 + $0x20] sm:$0xff]  ;;  %v2493_v41 = vld [vmem:[%s2902_s21 + $0x8] sm:$0xff]  }
  0x22   : > { %1151 = vmatpush.bf16.msra.mxu1 %v1145_v5  ;;  %2215 = vmatmul.msk.bf16.vlgmr.msra.gmra.mxu0 %vm941_vm1, %v2328_v7  ;;  %v2339_v16 = vld [vmem:[%s2868_s5 + $0x18] sm:$0xff]  ;;  %v2359_v18 = vld [vmem:[%s2888_s30] sm:$0xff]   ;;  %v2396_v45 = vunpack.c.l.bf16 %v2493_v41  ;;  %v2500_v47 = vld [vmem:[%s2913_s7 + $0x8] sm:$0xff]   ;;  %v2397_v1 = vunpack.c.h.bf16 %v2493_v41 }
  0x23   : > { %v2340_v19 = vld [vmem:[%s2868_s5 + $0x20] sm:$0xff]  ;;  %v2360_v20 = vunpack.c.l.bf16 %v2359_v18  ;;  %v2361_v29 = vunpack.c.h.bf16 %v2359_v18  ;;  %v2333_v48 = vld [vmem:[%s2854_s26 + $0x28] sm:$0xff]  ;;  %v2428_v52 = vunpack.c.l.bf16 %v2500_v47  ;;  %v2487_v2 = vld [vmem:[%s2888_s30 + $0x10] sm:$0xff]  }
  0x24   : > { %v2391_v22 = vld [vmem:[%s2902_s21] sm:$0xff]   ;;  %v2341_v53 = vld [vmem:[%s2868_s5 + $0x28] sm:$0xff]  ;;  %v2368_v5 = vunpack.c.l.bf16 %v2487_v2 }
  0x25   : > { %s2896_s8 = scalar_lea.vmem %s3502_s6, %s2170_s29  ;;  %v2392_v24 = vunpack.c.l.bf16 %v2391_v22  ;;  %v2423_v25 = vld [vmem:[%s2913_s7] sm:$0xff]   ;;  %v2393_v35 = vunpack.c.h.bf16 %v2391_v22  ;;  %v2507_v57 = vld [vmem:[%s2920_s23 + $0x8] sm:$0xff]  }
  0x26   : > { %1152 = vmatpush.bf16.msra.mxu1 %v2346_v6  ;;  %v656_v21 = vld [vmem:[%s2896_s8] sm:$0xff]  ;;  %v2424_v27 = vunpack.c.l.bf16 %v2423_v25  ;;  %v657_v30 = vld [vmem:[%s2896_s8 + $0x8] sm:$0xff]  ;;  %v658_v40 = vld [vmem:[%s2896_s8 + $0x10] sm:$0xff]  ;;  %v2425_v43 = vunpack.c.h.bf16 %v2423_v25  ;;  %v2460_v63 = vunpack.c.l.bf16 %v2507_v57  ;;  %v2369_v25 = vunpack.c.h.bf16 %v2487_v2 }
  0x27   : > { %v704_v23 = vadd.f32 %v2360_v20, %v656_v21  ;;  %v2455_v28 = vld [vmem:[%s2920_s23] sm:$0xff]   ;;  %v705_v34 = vadd.f32 %v2361_v29, %v657_v30  ;;  %v706_v44 = vadd.f32 %v2364_v36, %v658_v40  ;;  %v659_v58 = vld [vmem:[%s2896_s8 + $0x18] sm:$0xff]  ;;  %v2501_v20 = vld [vmem:[%s2913_s7 + $0x10] sm:$0xff]  }
  0x28   : > { %v2456_v32 = vunpack.c.l.bf16 %v2455_v28  ;;  %v2457_v50 = vunpack.c.h.bf16 %v2455_v28  ;;  %v707_v0 = vadd.f32 %v2365_v56, %v659_v58  ;;  %v2334_v21 = vld [vmem:[%s2854_s26 + $0x30] sm:$0xff]  ;;  %v2488_v40 = vld [vmem:[%s2888_s30 + $0x18] sm:$0xff]  }
  0x29   : > { %v752_v26 = vadd.f32 %v2392_v24, %v704_v23  ;;  %v753_v42 = vadd.f32 %v2393_v35, %v705_v34  ;;  %v754_v51 = vadd.f32 %v2396_v45, %v706_v44  ;;  %v2432_v24 = vunpack.c.l.bf16 %v2501_v20  ;;  %v2508_v30 = vld [vmem:[%s2920_s23 + $0x10] sm:$0xff]   ;;  %v2502_v58 = vld [vmem:[%s2913_s7 + $0x18] sm:$0xff]  }
  0x2a   : > { %1153 = vmatpush.bf16.msra.mxu1 %v2345_v8  ;;  %v755_v8 = vadd.f32 %v2397_v1, %v707_v0  ;;  %v2464_v34 = vunpack.c.l.bf16 %v2508_v30  ;;  %v2433_v44 = vunpack.c.h.bf16 %v2501_v20  ;;  %v2436_v1 = vunpack.c.l.bf16 %v2502_v58  ;;  %v2509_v2 = vld [vmem:[%s2920_s23 + $0x18] sm:$0xff]  }
  0x2b   : > { %v800_v31 = vadd.f32 %v2424_v27, %v752_v26  ;;  %v801_v49 = vadd.f32 %v2425_v43, %v753_v42  ;;  %v802_v61 = vadd.f32 %v2428_v52, %v754_v51  ;;  %v2342_v26 = vld [vmem:[%s2868_s5 + $0x30] sm:$0xff] }
  0x2d   : > { %v848_v37 = vadd.f32 %v2456_v32, %v800_v31  ;;  %v849_v59 = vadd.f32 %v2457_v50, %v801_v49  ;;  %v850_v6 = vadd.f32 %v2460_v63, %v802_v61  ;;  %v661_v31 = vld [vmem:[%s2896_s8 + $0x28] sm:$0xff]  ;;  %v2495_v49 = vld [vmem:[%s2902_s21 + $0x18] sm:$0xff]  }
  0x2e   : > { %1154 = vmatpush.bf16.msra.mxu1 %v2344_v9  ;;  %v2429_v9 = vunpack.c.h.bf16 %v2500_v47  ;;  %v709_v35 = vadd.f32 %v2369_v25, %v661_v31  ;;  %v2335_v50 = vld [vmem:[%s2854_s26 + $0x38] sm:$0xff]  ;;  %v2373_v25 = vunpack.c.h.bf16 %v2488_v40 }
  0x2f   : > { %v868_v46 = vadd.f32 %v2928_v38, %v848_v37  ;;  %v869_v3 = vadd.f32 %v2928_v38, %v849_v59  ;;  %v2343_v59 = vld [vmem:[%s2868_s5 + $0x38] sm:$0xff]  ;;  %s3361_s5 = scalar_lea.vmem [#allocation2], %s2168_s19 }
  0x30   : > { %v803_v18 = vadd.f32 %v2429_v9, %v755_v8  ;;  %v2468_v8 = vunpack.c.l.bf16 %v2509_v2 }
  0x31   : > { %2267 = vmatmul.msk.bf16.vlgmr.msra.gmra.mxu1 %vm1119_vm2, %v2336_v10  ;;  %v660_v10 = vld [vmem:[%s2896_s8 + $0x20] sm:$0xff] }
  0x32   : > { %2216 = vmatmul.msk.bf16.gmra.mxu0 %vm941_vm1, %v2329_v11  ;;  %v2494_v11 = vld [vmem:[%s2902_s21 + $0x10] sm:$0xff]  }
  0x33   : > { %v2401_v36 = vunpack.c.h.bf16 %v2494_v11 }
  0x35   : > { %v757_v43 = vadd.f32 %v2401_v36, %v709_v35  ;;  %v664_v36 = vld [vmem:[%s2896_s8 + $0x40] sm:$0xff] }
  0x41   : > { %2268 = vmatmul.msk.bf16.gmra.mxu1 %vm1119_vm2, %v2337_v12 }
  0x42   : > { %2217 = vmatmul.msk.bf16.gmra.mxu0 %vm941_vm1, %v2330_v13 }
  0x51   : > { %2269 = vmatmul.msk.bf16.gmra.mxu1 %vm1119_vm2, %v2338_v14  ;;  %v708_v14 = vadd.f32 %v2368_v5, %v660_v10 }
  0x52   : > { %2218 = vmatmul.msk.bf16.gmra.mxu0 %vm941_vm1, %v2331_v15  ;;  %v2400_v15 = vunpack.c.l.bf16 %v2494_v11 }
  0x54   : > { %v756_v23 = vadd.f32 %v2400_v15, %v708_v14 }
  0x56   : > { %v804_v33 = vadd.f32 %v2432_v24, %v756_v23 }
  0x58   : > { %v852_v42 = vadd.f32 %v2464_v34, %v804_v33  ;;  %v2437_v34 = vunpack.c.h.bf16 %v2502_v58 }
  0x5a   : > { %v872_v52 = vadd.f32 %v2928_v38, %v852_v42 }
  0x61   : > { %2270 = vmatmul.msk.bf16.gmra.mxu1 %vm1119_vm2, %v2339_v16 }
  0x62   : > { %2219 = vmatmul.msk.bf16.gmra.mxu0 %vm941_vm1, %v2332_v17  ;;  %v870_v17 = vadd.f32 %v2928_v38, %v850_v6 }
  0x71   : > { %2271 = vmatmul.msk.bf16.gmra.mxu1 %vm1119_vm2, %v2340_v19  ;;  %v2461_v19 = vunpack.c.h.bf16 %v2507_v57  ;;  %v2404_v57 = vunpack.c.l.bf16 %v2495_v49 }
  0x72   : > { %2220 = vmatmul.msk.bf16.gmra.mxu0 %vm941_vm1, %v2333_v48  ;;  %v662_v48 = vld [vmem:[%s2896_s8 + $0x30] sm:$0xff] }
  0x73   : > { %v851_v28 = vadd.f32 %v2461_v19, %v803_v18 }
  0x81   : > { %2272 = vmatmul.msk.bf16.gmra.mxu1 %vm1119_vm2, %v2341_v53  ;;  %v805_v53 = vadd.f32 %v2433_v44, %v757_v43 }
  0x82   : > { %2221 = vmatmul.msk.bf16.gmra.mxu0 %vm941_vm1, %v2334_v21 }
  0x91   : > { %2273 = vmatmul.msk.bf16.gmra.mxu1 %vm1119_vm2, %v2342_v26  ;;  %v663_v26 = vld [vmem:[%s2896_s8 + $0x38] sm:$0xff] }
  0x92   : > { %2222 = vmatmul.msk.bf16.gmra.mxu0 %vm941_vm1, %v2335_v50 }
  0x9f   : > { %v979_v39 = vpop.f32.mrf.mxu0 }
  0xa0   : > { %v1019_v54 = vadd.f32 %v979_v39, %v868_v46  ;;  %v871_v39 = vadd.f32 %v2928_v38, %v851_v28  ;;  %v2372_v46 = vunpack.c.l.bf16 %v2488_v40  ;;  %v711_v28 = vadd.f32 %v2373_v25, %v663_v26 }
  0xa1   : > { %2274 = vmatmul.msk.bf16.gmra.mxu1 %vm1119_vm2, %v2343_v59  ;;  %v2469_v40 = vunpack.c.h.bf16 %v2509_v2 }
  0xa2   : > { %v710_v56 = vadd.f32 %v2372_v46, %v662_v48  ;;  %v2503_v46 = vld [vmem:[%s2913_s7 + $0x20] sm:$0xff]  }
  0xa3   : > { %v2440_v48 = vunpack.c.l.bf16 %v2503_v46 }
  0xa4   : > { %v758_v0 = vadd.f32 %v2404_v57, %v710_v56  ;;  %v665_v56 = vld [vmem:[%s2896_s8 + $0x48] sm:$0xff] }
  0xa7   : > { %v981_v55 = vpop.f32.mrf.mxu0 }
  0xa8   : > { %v1020_v12 = vadd.f32 %v981_v55, %v869_v3  ;;  %v2465_v55 = vunpack.c.h.bf16 %v2508_v30  ;;  %v2489_v30 = vld [vmem:[%s2888_s30 + $0x20] sm:$0xff]  }
  0xa9   : > { %v2376_v31 = vunpack.c.l.bf16 %v2489_v30 }
  0xaa   : > { %v853_v63 = vadd.f32 %v2465_v55, %v805_v53 }
  0xac   : > { %v873_v6 = vadd.f32 %v2928_v38, %v853_v63 }
  0xae   : > { %v1156_v60 = vpop.f32.mrf.mxu1 }
  0xaf   : > { %v2940_v62 = vadd.f32 %v1156_v60, %v1019_v54  ;;  %v984_v7 = vpop.f32.mrf.mxu0 }
  0xb0   : > { %v1021_v27 = vadd.f32 %v984_v7, %v870_v17  ;;  %v806_v7 = vadd.f32 %v2436_v1, %v758_v0 }
  0xb1   : > { %v1213_v4 = vsel %vm1212_vm3, %v2940_v62, 0.0 }
  0xb2   : > { %1214 = vadd.xlane.f32.xlu0 %v1213_v4  ;;  %v854_v11 = vadd.f32 %v2468_v8, %v806_v7  ;;  %v666_v8 = vld [vmem:[%s2896_s8 + $0x50] sm:$0xff] }
  0xb4   : > { %v874_v14 = vadd.f32 %v2928_v38, %v854_v11 }
  0xb6   : > { %v1158_v13 = vpop.f32.mrf.mxu1 }
  0xb7   : > { %v2948_v16 = vadd.f32 %v1158_v13, %v1020_v12  ;;  %v986_v29 = vpop.f32.mrf.mxu0 }
  0xb8   : > { %v1022_v45 = vadd.f32 %v986_v29, %v871_v39  ;;  %v2405_v29 = vunpack.c.h.bf16 %v2495_v49  ;;  %v2496_v39 = vld [vmem:[%s2902_s21 + $0x20] sm:$0xff]  }
  0xb9   : > { %v1216_v22 = vsel %vm1212_vm3, %v2948_v16, 0.0  ;;  %v2408_v42 = vunpack.c.l.bf16 %v2496_v39  ;;  %v2409_v1 = vunpack.c.h.bf16 %v2496_v39 }
  0xba   : > { %1217 = vadd.xlane.f32.xlu0 %v1216_v22  ;;  %v2699_v22 = vmov 32.0   ;;  %v759_v33 = vadd.f32 %v2405_v29, %v711_v28  ;;  %v667_v28 = vld [vmem:[%s2896_s8 + $0x58] sm:$0xff] }
  0xbb   : > { %2569 = vrcp.f32 %v2699_v22 }
  0xbc   : > { %v807_v44 = vadd.f32 %v2437_v34, %v759_v33 }
  0xbe   : > { %v1161_v32 = vpop.f32.mrf.mxu1  ;;  %v855_v50 = vadd.f32 %v2469_v40, %v807_v44 }
  0xbf   : > { %v2960_v37 = vadd.f32 %v1161_v32, %v1021_v27  ;;  %v989_v47 = vpop.f32.mrf.mxu0 }
  0xc0   : > { %v1023_v61 = vadd.f32 %v989_v47, %v872_v52  ;;  %v2377_v52 = vunpack.c.h.bf16 %v2489_v30 }
  0xc1   : > { %v1219_v41 = vsel %vm1212_vm3, %v2960_v37, 0.0  ;;  %v2570_v23 = vpop.eup %2569 }
  0xc2   : > { %1220 = vadd.xlane.f32.xlu1 %v1219_v41  ;;  %v1262_v24 = vmul.f32 32.0, %v2570_v23  ;;  %v712_v41 = vadd.f32 %v2376_v31, %v664_v36  ;;  %vm1266_vm4 = vweird.f32 %v2570_v23  ;;  %v713_v0 = vadd.f32 %v2377_v52, %v665_v56 }
  0xc4   : > { %v1263_v27 = vsub.f32 1.0, %v1262_v24  ;;  %v760_v47 = vadd.f32 %v2408_v42, %v712_v41  ;;  %v761_v11 = vadd.f32 %v2409_v1, %v713_v0 }
  0xc6   : > { %v1163_v51 = vpop.f32.mrf.mxu1  ;;  %v1264_v32 = vmul.f32 %v2570_v23, %v1263_v27  ;;  %v808_v58 = vadd.f32 %v2440_v48, %v760_v47  ;;  %v2491_v47 = vld [vmem:[%s2888_s30 + $0x30] sm:$0xff]  }
  0xc7   : > { %v2970_v54 = vadd.f32 %v1163_v51, %v1022_v45  ;;  %v991_v4 = vpop.f32.mrf.mxu0  ;;  %v2510_v51 = vld [vmem:[%s2920_s23 + $0x20] sm:$0xff]  }
  0xc8   : > { %v1024_v10 = vadd.f32 %v991_v4, %v873_v6  ;;  %v1265_v43 = vadd.f32 %v2570_v23, %v1264_v32  ;;  %v2472_v59 = vunpack.c.l.bf16 %v2510_v51  ;;  %v2473_v26 = vunpack.c.h.bf16 %v2510_v51 }
  0xc9   : > { %v1222_v60 = vsel %vm1212_vm3, %v2970_v54, 0.0 }
  0xca   : > { %1223 = vadd.xlane.f32.xlu1 %v1222_v60  ;;  %v2998_v49 = vsel %vm1266_vm4, %v2570_v23, %v1265_v43  ;;  %v875_v60 = vadd.f32 %v2928_v38, %v855_v50  ;;  %v856_v4 = vadd.f32 %v2472_v59, %v808_v58  ;;  %v2504_v23 = vld [vmem:[%s2913_s7 + $0x28] sm:$0xff]   ;;  %v668_v59 = vld [vmem:[%s2896_s8 + $0x60] sm:$0xff] }
  0xcb   : > { %v2444_v32 = vunpack.c.l.bf16 %v2504_v23 }
  0xce   : > { %v1166_v3 = vpop.f32.mrf.mxu1 }
  0xcf   : > { %v2979_v5 = vadd.f32 %v1166_v3, %v1023_v61  ;;  %v994_v15 = vpop.f32.mrf.mxu0  ;;  %v2490_v61 = vld [vmem:[%s2888_s30 + $0x28] sm:$0xff]  }
  0xd0   : > { %v1025_v18 = vadd.f32 %v994_v15, %v874_v14  ;;  %v2380_v6 = vunpack.c.l.bf16 %v2490_v61  ;;  %v2381_v27 = vunpack.c.h.bf16 %v2490_v61 }
  0xd1   : > { %v1225_v9 = vsel %vm1212_vm3, %v2979_v5, 0.0 }
  0xd2   : > { %1226 = vadd.xlane.f32.xlu2 %v1225_v9  ;;  %v2497_v9 = vld [vmem:[%s2902_s21 + $0x28] sm:$0xff]   ;;  %v715_v41 = vadd.f32 %v2381_v27, %v667_v28 }
  0xd3   : > { %v2413_v42 = vunpack.c.h.bf16 %v2497_v9 }
  0xd5   : > { %v763_v52 = vadd.f32 %v2413_v42, %v715_v41  ;;  %v3063_v41 = vld [vmem:[%s2888_s30 + $0x38] sm:$0xff]   ;;  %s2027_s30 = sshll.u32 %s3361_s5, 4  ;;  %s2028_s30 = int_to_ptr.vmem [resolvable:$true] %s2027_s30 }
  0xd6   : > { %v1168_v12 = vpop.f32.mrf.mxu1 }
  0xd7   : > { %v2984_v13 = vadd.f32 %v1168_v12, %v1024_v10  ;;  %v996_v35 = vpop.f32.mrf.mxu0  ;;  %v2441_v12 = vunpack.c.h.bf16 %v2503_v46 }
  0xd8   : > { %v1026_v7 = vadd.f32 %v996_v35, %v875_v60  ;;  %v2511_v35 = vld [vmem:[%s2920_s23 + $0x28] sm:$0xff]   ;;  %v2498_v60 = vld [vmem:[%s2902_s21 + $0x30] sm:$0xff]  }
  0xd9   : > { %v1228_v17 = vsel %vm1212_vm3, %v2984_v13, 0.0  ;;  %v809_v25 = vadd.f32 %v2441_v12, %v761_v11  ;;  %v2476_v46 = vunpack.c.l.bf16 %v2511_v35 }
  0xda   : > { %1229 = vadd.xlane.f32.xlu2 %v1228_v17  ;;  %v876_v17 = vadd.f32 %v2928_v38, %v856_v4 }
  0xdb   : > { %v857_v39 = vadd.f32 %v2473_v26, %v809_v25  ;;  %v2512_v25 = vld [vmem:[%s2920_s23 + $0x30] sm:$0xff]   ;;  %v669_v26 = vld [vmem:[%s2896_s8 + $0x68] sm:$0xff] }
  0xdd   : > { %v877_v51 = vadd.f32 %v2928_v38, %v857_v39 }
  0xde   : > { %v1171_v19 = vpop.f32.mrf.mxu1 }
  0xdf   : > { %v2989_v20 = vadd.f32 %v1171_v19, %v1025_v18  ;;  %v999_v55 = vpop.f32.mrf.mxu0  ;;  %v714_v18 = vadd.f32 %v2380_v6, %v666_v8  ;;  %v2412_v19 = vunpack.c.l.bf16 %v2497_v9 }
  0xe0   : > { %v1027_v29 = vadd.f32 %v999_v55, %v876_v17  ;;  %v2384_v55 = vunpack.c.l.bf16 %v2491_v47 }
  0xe1   : > { %v1231_v21 = vsel %vm1212_vm3, %v2989_v20, 0.0  ;;  %v762_v31 = vadd.f32 %v2412_v19, %v714_v18  ;;  %v2385_v19 = vunpack.c.h.bf16 %v2491_v47 }
  0xe2   : > { %1232 = vadd.xlane.f32.xlu2 %v1231_v21  ;;  %v716_v6 = vadd.f32 %v2384_v55, %v668_v59  ;;  %v3075_v55 = vld [vmem:[%s2902_s21 + $0x38] sm:$0xff]   ;;  %s2357_s21 = sshll.u32 %s2808_s25, 7  ;;  %s2015_s25 = scalar_lea.sflag [#allocation3], %s609_s17 }
  0xe6   : > { %v1173_v45 = vpop.f32.mrf.mxu1 }
  0xe7   : > { %v3015_v21 = vadd.f32 %v1173_v45, %v1026_v7  ;;  %v1001_v22 = vpop.f32.mrf.mxu0  ;;  %v810_v45 = vadd.f32 %v2444_v32, %v762_v31  ;;  %v2416_v7 = vunpack.c.l.bf16 %v2498_v60 }
  0xe8   : > { %v1028_v0 = vadd.f32 %v1001_v22, %v877_v51  ;;  %v2388_v51 = vunpack.c.l.bf16 %v3063_v41 }
  0xe9   : > { %v1234_v33 = vsel %vm1212_vm3, %v3015_v21, 0.0  ;;  %v858_v58 = vadd.f32 %v2476_v46, %v810_v45  ;;  %v764_v17 = vadd.f32 %v2416_v7, %v716_v6 }
  0xeb   : > { %v878_v9 = vadd.f32 %v2928_v38, %v858_v58 }
  0xee   : > { %v1176_v2 = vpop.f32.mrf.mxu1 }
  0xef   : > { %v3028_v44 = vadd.f32 %v1176_v2, %v1027_v29  ;;  %v1004_v48 = vpop.f32.mrf.mxu0 }
  0xf1   : > { %v1237_v56 = vsel %vm1212_vm3, %v3028_v44, 0.0 }
  0xf6   : > { %v1178_v34 = vpop.f32.mrf.mxu1 }
  0xf7   : > { %v3046_v11 = vadd.f32 %v1178_v34, %v1028_v0  ;;  %v717_v34 = vadd.f32 %v2385_v19, %v669_v26  ;;  %v2481_v0 = vunpack.c.h.bf16 %v2512_v25 }
  0xf9   : > { %v1240_v28 = vsel %vm1212_vm3, %v3046_v11, 0.0 }
  0xfe   : > { %v1181_v61 = vpop.f32.mrf.mxu1 }
 0x106   : > { %v1183_v31 = vpop.f32.mrf.mxu1 }
 0x125   : > { %v1215_v53 = vpop.xlane.xlu0 %1214 }
 0x126   : > { %v1268_v57 = vmul.f32 %v2998_v49, %v1215_v53  ;;  %v2445_v53 = vunpack.c.h.bf16 %v2504_v23  ;;  %v1029_v23 = vadd.f32 %v1004_v48, %v878_v9 }
 0x128   : > { %v3006_v63 = vsub.f32 %v2940_v62, %v1268_v57  ;;  %v811_v2 = vadd.f32 %v2445_v53, %v763_v52  ;;  %v3060_v39 = vadd.f32 %v1181_v61, %v1029_v23  ;;  %v670_v53 = vld [vmem:[%s2896_s8 + $0x70] sm:$0xff] }
 0x12a   : > { %v1300_v3 = vmul.f32 %v3006_v63, %v3006_v63  ;;  %v1243_v48 = vsel %vm1212_vm3, %v3060_v39, 0.0 }
 0x12c   : > { %v1316_v10 = vsel %vm1212_vm3, %v1300_v3, 0.0  ;;  %v2477_v3 = vunpack.c.h.bf16 %v2511_v35  ;;  %v2417_v35 = vunpack.c.h.bf16 %v2498_v60 }
 0x12d   : > { %1317 = vadd.xlane.f32.xlu0 %v1316_v10  ;;  %v1218_v14 = vpop.xlane.xlu0 %1217  ;;  %v2505_v10 = vld [vmem:[%s2913_s7 + $0x30] sm:$0xff]  }
 0x12e   : > { %v1269_v15 = vmul.f32 %v2998_v49, %v1218_v14  ;;  %v859_v14 = vadd.f32 %v2477_v3, %v811_v2  ;;  %v2448_v18 = vunpack.c.l.bf16 %v2505_v10  ;;  %v765_v45 = vadd.f32 %v2417_v35, %v717_v34  ;;  %v1186_v3 = vpop.f32.mrf.mxu1 }
 0x12f   : > { %v2449_v46 = vunpack.c.h.bf16 %v2505_v10  ;;  %v2420_v2 = vunpack.c.l.bf16 %v3075_v55 }
 0x130   : > { %v3019_v24 = vsub.f32 %v2948_v16, %v1269_v15  ;;  %v1006_v15 = vpop.f32.mrf.mxu0  ;;  %v879_v29 = vadd.f32 %v2928_v38, %v859_v14  ;;  %v812_v32 = vadd.f32 %v2448_v18, %v764_v17  ;;  %v2513_v17 = vld [vmem:[%s2920_s23 + $0x38] sm:$0xff]   ;;  %s2655_s23 = scalar_lea.hbm %s3480_s16, 256 }
 0x131   : > { %v813_v60 = vadd.f32 %v2449_v46, %v765_v45 }
 0x132   : > { %v1301_v30 = vmul.f32 %v3019_v24, %v3019_v24 }
 0x133   : > { %v861_v10 = vadd.f32 %v2481_v0, %v813_v60  ;;  %v2347_v60 = vld [vmem:[%s3476_s12] sm:$0xff] }
 0x134   : > { %v1319_v36 = vsel %vm1212_vm3, %v1301_v30, 0.0 }
 0x135   : > { %v1221_v43 = vpop.xlane.xlu1 %1220  ;;  %1235 = vadd.xlane.f32.xlu0 %v1234_v33  ;;  %1320 = vadd.xlane.f32.xlu1 %v1319_v36  ;;  %v2480_v33 = vunpack.c.l.bf16 %v2512_v25  ;;  %v881_v26 = vadd.f32 %v2928_v38, %v861_v10 }
 0x136   : > { %v1270_v40 = vmul.f32 %v2998_v49, %v1221_v43  ;;  %v1030_v43 = vadd.f32 %v1006_v15, %v879_v29 }
 0x138   : > { %v3033_v50 = vsub.f32 %v2960_v37, %v1270_v40  ;;  %v860_v40 = vadd.f32 %v2480_v33, %v812_v32  ;;  %v1009_v52 = vpop.f32.mrf.mxu0  ;;  %v3078_v58 = vadd.f32 %v1183_v31, %v1030_v43 }
 0x13a   : > { %v1302_v57 = vmul.f32 %v3033_v50, %v3033_v50  ;;  %v880_v59 = vadd.f32 %v2928_v38, %v860_v40  ;;  %v1246_v7 = vsel %vm1212_vm3, %v3078_v58, 0.0 }
 0x13c   : > { %v1322_v1 = vsel %vm1212_vm3, %v1302_v57, 0.0 }
 0x13d   : > { %v1224_v4 = vpop.xlane.xlu1 %1223  ;;  %1238 = vadd.xlane.f32.xlu0 %v1237_v56  ;;  %1323 = vadd.xlane.f32.xlu1 %v1322_v1  ;;  %v718_v1 = vadd.f32 %v2388_v51, %v670_v53  ;;  %v2389_v53 = vunpack.c.h.bf16 %v3063_v41 }
 0x13e   : > { %v1271_v8 = vmul.f32 %v2998_v49, %v1224_v4  ;;  %v2506_v4 = vld [vmem:[%s2913_s7 + $0x38] sm:$0xff]  }
 0x13f   : > { %v766_v14 = vadd.f32 %v2420_v2, %v718_v1  ;;  %v2452_v15 = vunpack.c.l.bf16 %v2506_v4  ;;  %v2421_v1 = vunpack.c.h.bf16 %v3075_v55 }
 0x140   : > { %v3049_v12 = vsub.f32 %v2970_v54, %v1271_v8  ;;  %v1031_v8 = vadd.f32 %v1009_v52, %v880_v59  ;;  %v1011_v23 = vpop.f32.mrf.mxu0  ;;  %v2348_v52 = vld [vmem:[%s3476_s12 + $0x8] sm:$0xff] }
 0x141   : > { %v1032_v33 = vadd.f32 %v1011_v23, %v881_v26  ;;  %1670 = vmatpush.bf16.msra.mxu2 %v2348_v52 }
 0x142   : > { %v1303_v22 = vmul.f32 %v3049_v12, %v3049_v12 }
 0x144   : > { %v1325_v27 = vsel %vm1212_vm3, %v1303_v22, 0.0  ;;  %v3093_v22 = vadd.f32 %v1186_v3, %v1031_v8  ;;  %v2453_v3 = vunpack.c.h.bf16 %v2506_v4 }
 0x145   : > { %v1227_v30 = vpop.xlane.xlu2 %1226  ;;  %1326 = vadd.xlane.f32.xlu2 %v1325_v27  ;;  %1241 = vadd.xlane.f32.xlu1 %v1240_v28  ;;  %v814_v27 = vadd.f32 %v2452_v15, %v766_v14  ;;  %v2484_v28 = vunpack.c.l.bf16 %v2513_v17 }
 0x146   : > { %v1272_v36 = vmul.f32 %v2998_v49, %v1227_v30  ;;  %v1188_v30 = vpop.f32.mrf.mxu1  ;;  %v1249_v31 = vsel %vm1212_vm3, %v3093_v22, 0.0  ;;  %1671 = vmatpush.bf16.msra.mxu2 %v2347_v60 }
 0x147   : > { %v862_v34 = vadd.f32 %v2484_v28, %v814_v27 }
 0x148   : > { %v3066_v42 = vsub.f32 %v2979_v5, %v1272_v36  ;;  %v3105_v36 = vadd.f32 %v1188_v30, %v1032_v33  ;;  %v1014_v40 = vpop.f32.mrf.mxu0 }
 0x149   : > { %v882_v43 = vadd.f32 %v2928_v38, %v862_v34 }
 0x14a   : > { %v1304_v47 = vmul.f32 %v3066_v42, %v3066_v42  ;;  %v1252_v45 = vsel %vm1212_vm3, %v3105_v36, 0.0 }
 0x14b   : > { %v1033_v46 = vadd.f32 %v1014_v40, %v882_v43 }
 0x14c   : > { %v1328_v56 = vsel %vm1212_vm3, %v1304_v47, 0.0 }
 0x14d   : > { %v1230_v57 = vpop.xlane.xlu2 %1229  ;;  %1329 = vadd.xlane.f32.xlu2 %v1328_v56  ;;  %1244 = vadd.xlane.f32.xlu1 %v1243_v48 }
 0x14e   : > { %v1273_v61 = vmul.f32 %v2998_v49, %v1230_v57  ;;  %v1191_v47 = vpop.f32.mrf.mxu1  ;;  %v671_v57 = vld [vmem:[%s2896_s8 + $0x78] sm:$0xff]  ;;  %s2026_s8 = scalar_lea.hbm %s3480_s16, %s2357_s21 }
 0x14f   : > { %v3110_v48 = vadd.f32 %v1191_v47, %v1033_v46  ;;  %v719_v0 = vadd.f32 %v2389_v53, %v671_v57  ;;  %s2029_s20 = sshll.u32 %s2026_s8, 4  ;;  %s2030_s20 = int_to_ptr.hbm [resolvable:$true] %s2029_s20 }
 0x150   : > { %v3085_v6 = vsub.f32 %v2984_v13, %v1273_v61  ;;  %v1016_v46 = vpop.f32.mrf.mxu0  ;;  %s2649_s28 = sshra.s32 %s2030_s20, 4  ;;  %s2650_s28 = int_to_ptr.hbm [resolvable:$true] %s2649_s28 }
 0x151   : > { %v1255_v51 = vsel %vm1212_vm3, %v3110_v48, 0.0  ;;  %v767_v2 = vadd.f32 %v2421_v1, %v719_v0  ;;  %s2651_s6 = scalar_lea.hbm %s2650_s28, 128  ;;  %p2656_p0 = scmp.lt.s32.totalorder %s2650_s28, %s3480_s16 }
 0x152   : > { %v1305_v9 = vmul.f32 %v3085_v6, %v3085_v6  ;;  %p2652_p11 = scmp.ne.s32.totalorder %s2650_s28, %s2651_s6  ;;  %p2657_p1 = scmp.lt.s32.totalorder %s2655_s23, %s2651_s6 }
 0x154   : > { %v1331_v18 = vsel %vm1212_vm3, %v1305_v9, 0.0  ;;  %p2653_p12 = pnand %p2652_p11, %p2825_p5  ;;  %p2658_p2 = por %p2657_p1, %p2656_p0 }
 0x155   : > { %v1233_v19 = vpop.xlane.xlu2 %1232  ;;  %1247 = vadd.xlane.f32.xlu2 %v1246_v7  ;;  %1332 = vadd.xlane.f32.xlu0 %v1331_v18  ;;  %v815_v18 = vadd.f32 %v2453_v3, %v767_v2 }
 0x156   : > { %v1274_v25 = vmul.f32 %v2998_v49, %v1233_v19  ;;  %v2485_v19 = vunpack.c.h.bf16 %v2513_v17  ;;  %v1193_v53 = vpop.f32.mrf.mxu1  ;;  %p2654_p13 = pneg %p2653_p12 }
 0x158   : > { %v3098_v29 = vsub.f32 %v2989_v20, %v1274_v25  ;;  %v863_v26 = vadd.f32 %v2485_v19, %v815_v18  ;;  %p2659_p3 = pnand %p2658_p2, %p2654_p13 }
 0x15a   : > { %v1306_v32 = vmul.f32 %v3098_v29, %v3098_v29  ;;  %v883_v43 = vadd.f32 %v2928_v38, %v863_v26 }
 0x15c   : > { %v1334_v35 = vsel %vm1212_vm3, %v1306_v32, 0.0  ;;  %v1034_v52 = vadd.f32 %v1016_v46, %v883_v43 }
 0x15d   : > { %1250 = vadd.xlane.f32.xlu2 %v1249_v31  ;;  %1335 = vadd.xlane.f32.xlu0 %v1334_v35 }
 0x165   : > { %1253 = vadd.xlane.f32.xlu0 %v1252_v45 }
 0x16d   : > { %1256 = vadd.xlane.f32.xlu0 %v1255_v51 }
 0x1a0   : > { %v1318_v56 = vpop.xlane.xlu0 %1317 }
 0x1a1   : > { %v1364_v59 = vmul.f32 %v1318_v56, %v2998_v49 }
 0x1a3   : > { %v1380_v61 = vadd.f32 1e-05, %v1364_v59 }
 0x1a5   : > { %2571 = vrsqrt.f32 %v1380_v61  ;;  %vm1402_vm6 = vweird.f32 %v1380_v61 }
 0x1a8   : > { %v1321_v7 = vpop.xlane.xlu1 %1320  ;;  %v1236_v8 = vpop.xlane.xlu0 %1235 }
 0x1a9   : > { %v1365_v41 = vmul.f32 %v1321_v7, %v2998_v49  ;;  %v1275_v9 = vmul.f32 %v2998_v49, %v1236_v8  ;;  %v3147_v7 = vadd.f32 %v1193_v53, %v1034_v52 }
 0x1ab   : > { %v2572_v10 = vpop.eup %2571  ;;  %v1381_v14 = vadd.f32 1e-05, %v1365_v41  ;;  %v3127_v15 = vsub.f32 %v3015_v21, %v1275_v9  ;;  %v3155_v9 = vld [vmem:[%s3474_s10] ss:$0 sm:$0xff] }
 0x1ac   : > { %v1397_v23 = vmul.f32 %v2572_v10, %v1380_v61  ;;  %vm1403_vm5 = vweird.f32 %v2572_v10 }
 0x1ad   : > { %2573 = vrsqrt.f32 %v1381_v14  ;;  %v1307_v55 = vmul.f32 %v3127_v15, %v3127_v15  ;;  %vm1404_vm7 = vmor %vm1402_vm6, %vm1403_vm5  ;;  %vm1412_vm9 = vweird.f32 %v1381_v14 }
 0x1ae   : > { %v1398_v25 = vmul.f32 %v2572_v10, %v1397_v23 }
 0x1af   : > { %v1337_v4 = vsel %vm1212_vm3, %v1307_v55, 0.0 }
 0x1b0   : > { %v1399_v27 = vmul.f32 0.5, %v1398_v25  ;;  %v1324_v28 = vpop.xlane.xlu1 %1323  ;;  %1338 = vadd.xlane.f32.xlu1 %v1337_v4  ;;  %v1239_v30 = vpop.xlane.xlu0 %1238  ;;  %v1258_v4 = vsel %vm1212_vm3, %v3147_v7, 0.0 }
 0x1b1   : > { %v1366_v31 = vmul.f32 %v1324_v28, %v2998_v49  ;;  %v1276_v32 = vmul.f32 %v2998_v49, %v1239_v30 }
 0x1b2   : > { %v1400_v33 = vsub.f32 1.5, %v1399_v27 }
 0x1b3   : > { %v2574_v34 = vpop.eup %2573  ;;  %v3134_v17 = vadd.f32 1e-05, %v1366_v31  ;;  %v3137_v35 = vsub.f32 %v3028_v44, %v1276_v32 }
 0x1b4   : > { %v1401_v40 = vmul.f32 %v2572_v10, %v1400_v33  ;;  %v1407_v45 = vmul.f32 %v2574_v34, %v1381_v14  ;;  %vm1413_vm8 = vweird.f32 %v2574_v34  ;;  %v3168_v14 = vld [vmem:[%s3475_s11] ss:$0 sm:$0xff] }
 0x1b5   : > { %2575 = vrsqrt.f32 %v3134_v17  ;;  %v1308_v47 = vmul.f32 %v3137_v35, %v3137_v35  ;;  %vm1414_vm10 = vmor %vm1412_vm9, %vm1413_vm8  ;;  %vm1422_vm12 = vweird.f32 %v3134_v17 }
 0x1b6   : > { %v1408_v51 = vmul.f32 %v2574_v34, %v1407_v45  ;;  %v1405_v57 = vsel %vm1404_vm7, %v2572_v10, %v1401_v40 }
 0x1b7   : > { %v1340_v56 = vsel %vm1212_vm3, %v1308_v47, 0.0  ;;  %v1556_v61 = vmul.f32 %v1405_v57, %v3006_v63 }
 0x1b8   : > { %v1409_v59 = vmul.f32 0.5, %v1408_v51  ;;  %v1327_v60 = vpop.xlane.xlu2 %1326  ;;  %v1242_v38 = vpop.xlane.xlu1 %1241  ;;  %1341 = vadd.xlane.f32.xlu1 %v1340_v56 }
 0x1b9   : > { %v1367_v0 = vmul.f32 %v1327_v60, %v2998_v49  ;;  %v1277_v1 = vmul.f32 %v2998_v49, %v1242_v38  ;;  %v1576_v26 = vmul.f32 %v3155_v9, %v1556_v61 }
 0x1ba   : > { %v1410_v2 = vsub.f32 1.5, %v1409_v59 }
 0x1bb   : > { %v2576_v3 = vpop.eup %2575  ;;  %v1383_v8 = vadd.f32 1e-05, %v1367_v0  ;;  %v3150_v41 = vsub.f32 %v3046_v11, %v1277_v1  ;;  %v1596_v45 = vadd.f32 %v3168_v14, %v1576_v26 }
 0x1bc   : > { %v1411_v10 = vmul.f32 %v2574_v34, %v1410_v2  ;;  %v1417_v18 = vmul.f32 %v2576_v3, %v3134_v17  ;;  %vm1423_vm11 = vweird.f32 %v2576_v3 }
 0x1bd   : > { %2577 = vrsqrt.f32 %v1383_v8  ;;  %v1309_v63 = vmul.f32 %v3150_v41, %v3150_v41  ;;  %vm1424_vm13 = vmor %vm1422_vm12, %vm1423_vm11  ;;  %vm1432_vm15 = vweird.f32 %v1383_v8 }
 0x1be   : > { %v1415_v19 = vsel %vm1414_vm10, %v2574_v34, %v1411_v10  ;;  %v1418_v23 = vmul.f32 %v2576_v3, %v1417_v18 }
 0x1bf   : > { %v1557_v55 = vmul.f32 %v1415_v19, %v3019_v24  ;;  %v1343_v25 = vsel %vm1212_vm3, %v1309_v63, 0.0 }
 0x1c0   : > { %v1419_v27 = vmul.f32 0.5, %v1418_v23  ;;  %v1330_v28 = vpop.xlane.xlu2 %1329  ;;  %1344 = vadd.xlane.f32.xlu2 %v1343_v25  ;;  %v1245_v30 = vpop.xlane.xlu1 %1244  ;;  %1259 = vadd.xlane.f32.xlu1 %v1258_v4 }
 0x1c1   : > { %v1368_v31 = vmul.f32 %v1330_v28, %v2998_v49  ;;  %v1278_v24 = vmul.f32 %v2998_v49, %v1245_v30  ;;  %v1577_v32 = vmul.f32 %v3155_v9, %v1557_v55 }
 0x1c2   : > { %v1420_v33 = vsub.f32 1.5, %v1419_v27 }
 0x1c3   : > { %v2578_v34 = vpop.eup %2577  ;;  %v1384_v43 = vadd.f32 1e-05, %v1368_v31  ;;  %v3174_v40 = vsub.f32 %v3060_v39, %v1278_v24  ;;  %v1597_v46 = vadd.f32 %v3168_v14, %v1577_v32 }
 0x1c4   : > { %v1421_v47 = vmul.f32 %v2576_v3, %v1420_v33  ;;  %v1427_v51 = vmul.f32 %v2578_v34, %v1383_v8  ;;  %vm1433_vm14 = vweird.f32 %v2578_v34 }
 0x1c5   : > { %2579 = vrsqrt.f32 %v1384_v43  ;;  %v1612_v52 = vpack.c.bf16 %v1597_v46, %v1596_v45  ;;  %v1310_v53 = vmul.f32 %v3174_v40, %v3174_v40  ;;  %vm1434_vm0 = vmor %vm1432_vm15, %vm1433_vm14  ;;  %vm1442_vm2 = vweird.f32 %v1384_v43 }
 0x1c6   : > { %v1428_v56 = vmul.f32 %v2578_v34, %v1427_v51  ;;  %v1425_v59 = vsel %vm1424_vm13, %v2576_v3, %v1421_v47 }
 0x1c7   : > { %2283 = vmatmul.msk.bf16.vlgmr.msra.gmra.mxu2 %vm1212_vm3, %v1612_v52  ;;  %v1346_v57 = vsel %vm1212_vm3, %v1310_v53, 0.0  ;;  %v1558_v17 = vmul.f32 %v1425_v59, %v3033_v50 }
 0x1c8   : > { %v1429_v60 = vmul.f32 0.5, %v1428_v56  ;;  %v1248_v38 = vpop.xlane.xlu2 %1247  ;;  %1347 = vadd.xlane.f32.xlu2 %v1346_v57  ;;  %v1333_v0 = vpop.xlane.xlu0 %1332 }
 0x1c9   : > { %v1279_v1 = vmul.f32 %v2998_v49, %v1248_v38  ;;  %v1369_v2 = vmul.f32 %v1333_v0, %v2998_v49  ;;  %v1578_v50 = vmul.f32 %v3155_v9, %v1558_v17 }
 0x1ca   : > { %v1430_v61 = vsub.f32 1.5, %v1429_v60 }
 0x1cb   : > { %v2580_v10 = vpop.eup %2579  ;;  %v3187_v18 = vsub.f32 %v3078_v58, %v1279_v1  ;;  %v1385_v63 = vadd.f32 1e-05, %v1369_v2 }
 0x1cc   : > { %v1431_v19 = vmul.f32 %v2578_v34, %v1430_v61  ;;  %v1437_v3 = vmul.f32 %v2580_v10, %v1384_v43  ;;  %vm1443_vm1 = vweird.f32 %v2580_v10 }
 0x1cd   : > { %2581 = vrsqrt.f32 %v1385_v63  ;;  %v1311_v23 = vmul.f32 %v3187_v18, %v3187_v18  ;;  %vm1444_vm4 = vmor %vm1442_vm2, %vm1443_vm1  ;;  %vm1452_vm6 = vweird.f32 %v1385_v63 }
 0x1ce   : > { %v1435_v55 = vsel %vm1434_vm0, %v2578_v34, %v1431_v19  ;;  %v1438_v25 = vmul.f32 %v2580_v10, %v1437_v3  ;;  %v1598_v34 = vadd.f32 %v3168_v14, %v1578_v50 }
 0x1cf   : > { %v1559_v4 = vmul.f32 %v1435_v55, %v3049_v12  ;;  %v1349_v26 = vsel %vm1212_vm3, %v1311_v23, 0.0 }
 0x1d0   : > { %v1439_v27 = vmul.f32 0.5, %v1438_v25  ;;  %v1251_v28 = vpop.xlane.xlu2 %1250  ;;  %1350 = vadd.xlane.f32.xlu0 %v1349_v26  ;;  %v1336_v30 = vpop.xlane.xlu0 %1335 }
 0x1d1   : > { %v1280_v8 = vmul.f32 %v2998_v49, %v1251_v28  ;;  %v1579_v31 = vmul.f32 %v3155_v9, %v1559_v4  ;;  %v1370_v50 = vmul.f32 %v1336_v30, %v2998_v49 }
 0x1d2   : > { %v1440_v24 = vsub.f32 1.5, %v1439_v27 }
 0x1d3   : > { %v2582_v32 = vpop.eup %2581  ;;  %v3197_v33 = vsub.f32 %v3093_v22, %v1280_v8  ;;  %v1599_v12 = vadd.f32 %v3168_v14, %v1579_v31  ;;  %v1386_v27 = vadd.f32 1e-05, %v1370_v50 }
 0x1d4   : > { %v1441_v45 = vmul.f32 %v2580_v10, %v1440_v24  ;;  %v1447_v46 = vmul.f32 %v2582_v32, %v1385_v63  ;;  %vm1453_vm5 = vweird.f32 %v2582_v32 }
 0x1d5   : > { %v1613_v47 = vpack.c.bf16 %v1599_v12, %v1598_v34  ;;  %v1312_v51 = vmul.f32 %v3197_v33, %v3197_v33  ;;  %vm1454_vm7 = vmor %vm1452_vm6, %vm1453_vm5  ;;  %2583 = vrsqrt.f32 %v1386_v27  ;;  %vm1462_vm9 = vweird.f32 %v1386_v27 }
 0x1d6   : > { %v1448_v52 = vmul.f32 %v2582_v32, %v1447_v46  ;;  %v1445_v56 = vsel %vm1444_vm4, %v2580_v10, %v1441_v45 }
 0x1d7   : > { %2284 = vmatmul.msk.bf16.gmra.mxu2 %vm1212_vm3, %v1613_v47  ;;  %v1352_v53 = vsel %vm1212_vm3, %v1312_v51, 0.0  ;;  %v1560_v0 = vmul.f32 %v1445_v56, %v3066_v42  ;;  %v2356_v51 = vld [vmem:[%s3478_s14 + $0x38] sm:$0xff] }
 0x1d8   : > { %v1449_v57 = vmul.f32 0.5, %v1448_v52  ;;  %1353 = vadd.xlane.f32.xlu1 %v1352_v53  ;;  %v1254_v59 = vpop.xlane.xlu0 %1253  ;;  %1933 = vmatpush.bf16.msrb.mxu0 %v2356_v51 }
 0x1d9   : > { %v1281_v60 = vmul.f32 %v2998_v49, %v1254_v59  ;;  %v1580_v19 = vmul.f32 %v3155_v9, %v1560_v0  ;;  %2514 = vmatpush.bf16.msra.mxu3 %v2356_v51  ;;  %v2355_v59 = vld [vmem:[%s3478_s14 + $0x30] sm:$0xff] }
 0x1da   : > { %v1450_v38 = vsub.f32 1.5, %v1449_v57 }
 0x1db   : > { %v3208_v1 = vsub.f32 %v3105_v36, %v1281_v60  ;;  %v1600_v63 = vadd.f32 %v3168_v14, %v1580_v19  ;;  %v2584_v28 = vpop.eup %2583 }
 0x1dc   : > { %v1451_v43 = vmul.f32 %v2582_v32, %v1450_v38  ;;  %v1457_v8 = vmul.f32 %v2584_v28, %v1386_v27  ;;  %vm1463_vm8 = vweird.f32 %v2584_v28  ;;  %1934 = vmatpush.bf16.msrb.mxu0 %v2355_v59 }
 0x1dd   : > { %v1313_v2 = vmul.f32 %v3208_v1, %v3208_v1  ;;  %vm1464_vm10 = vmor %vm1462_vm9, %vm1463_vm8  ;;  %2515 = vmatpush.bf16.msra.mxu3 %v2355_v59 }
 0x1de   : > { %v1455_v61 = vsel %vm1454_vm7, %v2582_v32, %v1451_v43  ;;  %v1458_v31 = vmul.f32 %v2584_v28, %v1457_v8 }
 0x1df   : > { %v1561_v10 = vmul.f32 %v1455_v61, %v3085_v6  ;;  %v1355_v17 = vsel %vm1212_vm3, %v1313_v2, 0.0 }
 0x1e0   : > { %1356 = vadd.xlane.f32.xlu2 %v1355_v17  ;;  %v1257_v3 = vpop.xlane.xlu0 %1256  ;;  %v1459_v12 = vmul.f32 0.5, %v1458_v31 }
 0x1e1   : > { %v1282_v42 = vmul.f32 %v2998_v49, %v1257_v3  ;;  %v1581_v23 = vmul.f32 %v3155_v9, %v1561_v10 }
 0x1e2   : > { %v1460_v45 = vsub.f32 1.5, %v1459_v12 }
 0x1e3   : > { %v3218_v55 = vsub.f32 %v3110_v48, %v1282_v42  ;;  %v1601_v25 = vadd.f32 %v3168_v14, %v1581_v23  ;;  %v2354_v23 = vld [vmem:[%s3478_s14 + $0x28] sm:$0xff] }
 0x1e4   : > { %v1461_v53 = vmul.f32 %v2584_v28, %v1460_v45  ;;  %1935 = vmatpush.bf16.msrb.mxu0 %v2354_v23  ;;  %2516 = vmatpush.bf16.msra.mxu3 %v2354_v23  ;;  %v3275_v23 = vld [vmem:[%s3477_s13] ss:$0 sm:$0xff] }
 0x1e5   : > { %v1614_v4 = vpack.c.bf16 %v1601_v25, %v1600_v63  ;;  %v1314_v6 = vmul.f32 %v3218_v55, %v3218_v55 }
 0x1e6   : > { %v1465_v60 = vsel %vm1464_vm10, %v2584_v28, %v1461_v53  ;;  %v2353_v28 = vld [vmem:[%s3478_s14 + $0x20] sm:$0xff] }
 0x1e7   : > { %2285 = vmatmul.msk.bf16.gmra.mxu2 %vm1212_vm3, %v1614_v4  ;;  %v1358_v26 = vsel %vm1212_vm3, %v1314_v6, 0.0  ;;  %v1562_v19 = vmul.f32 %v1465_v60, %v3098_v29 }
 0x1e8   : > { %1359 = vadd.xlane.f32.xlu0 %v1358_v26  ;;  %1936 = vmatpush.bf16.msrb.mxu0 %v2353_v28 }
 0x1e9   : > { %v1582_v27 = vmul.f32 %v3155_v9, %v1562_v19  ;;  %2517 = vmatpush.bf16.msra.mxu3 %v2353_v28 }
 0x1eb   : > { %v1602_v45 = vadd.f32 %v3168_v14, %v1582_v27 }
 0x223   : > { %v1339_v24 = vpop.xlane.xlu1 %1338 }
 0x224   : > { %v1371_v32 = vmul.f32 %v1339_v24, %v2998_v49 }
 0x226   : > { %v1387_v34 = vadd.f32 1e-05, %v1371_v32 }
 0x228   : > { %2585 = vrsqrt.f32 %v1387_v34  ;;  %vm1472_vm12 = vweird.f32 %v1387_v34 }
 0x22b   : > { %v1342_v46 = vpop.xlane.xlu1 %1341 }
 0x22c   : > { %v1372_v47 = vmul.f32 %v1342_v46, %v2998_v49 }
 0x22e   : > { %v2586_v30 = vpop.eup %2585  ;;  %v1388_v52 = vadd.f32 1e-05, %v1372_v47  ;;  %v2352_v47 = vld [vmem:[%s3478_s14 + $0x18] sm:$0xff] }
 0x22f   : > { %v1467_v56 = vmul.f32 %v2586_v30, %v1387_v34  ;;  %vm1473_vm11 = vweird.f32 %v2586_v30  ;;  %1937 = vmatpush.bf16.msrb.mxu0 %v2352_v47  ;;  %2518 = vmatpush.bf16.msra.mxu3 %v2352_v47 }
 0x230   : > { %2587 = vrsqrt.f32 %v1388_v52  ;;  %vm1474_vm13 = vmor %vm1472_vm12, %vm1473_vm11  ;;  %vm1482_vm15 = vweird.f32 %v1388_v52 }
 0x231   : > { %v1468_v57 = vmul.f32 %v2586_v30, %v1467_v56 }
 0x233   : > { %v1469_v38 = vmul.f32 0.5, %v1468_v57  ;;  %v1345_v0 = vpop.xlane.xlu2 %1344  ;;  %v1260_v43 = vpop.xlane.xlu1 %1259  ;;  %v2351_v57 = vld [vmem:[%s3478_s14 + $0x10] sm:$0xff] }
 0x234   : > { %v1373_v2 = vmul.f32 %v1345_v0, %v2998_v49  ;;  %v1283_v61 = vmul.f32 %v2998_v49, %v1260_v43  ;;  %1938 = vmatpush.bf16.msrb.mxu0 %v2351_v57  ;;  %2519 = vmatpush.bf16.msra.mxu3 %v2351_v57 }
 0x235   : > { %v1470_v10 = vsub.f32 1.5, %v1469_v38 }
 0x236   : > { %v2588_v17 = vpop.eup %2587  ;;  %v1389_v3 = vadd.f32 1e-05, %v1373_v2  ;;  %v3239_v42 = vsub.f32 %v3147_v7, %v1283_v61 }
 0x237   : > { %v1471_v63 = vmul.f32 %v2586_v30, %v1470_v10  ;;  %v1477_v25 = vmul.f32 %v2588_v17, %v1388_v52  ;;  %vm1483_vm14 = vweird.f32 %v2588_v17  ;;  %v2350_v10 = vld [vmem:[%s3478_s14 + $0x8] sm:$0xff] }
 0x238   : > { %2589 = vrsqrt.f32 %v1389_v3  ;;  %v1315_v4 = vmul.f32 %v3239_v42, %v3239_v42  ;;  %vm1484_vm0 = vmor %vm1482_vm15, %vm1483_vm14  ;;  %vm1492_vm2 = vweird.f32 %v1389_v3  ;;  %1939 = vmatpush.bf16.msrb.mxu0 %v2350_v10  ;;  %2520 = vmatpush.bf16.msra.mxu3 %v2350_v10 }
 0x239   : > { %v1475_v6 = vsel %vm1474_vm13, %v2586_v30, %v1471_v63  ;;  %v1478_v29 = vmul.f32 %v2588_v17, %v1477_v25 }
 0x23a   : > { %v1563_v26 = vmul.f32 %v1475_v6, %v3127_v15  ;;  %v1361_v50 = vsel %vm1212_vm3, %v1315_v4, 0.0 }
 0x23b   : > { %v1479_v8 = vmul.f32 0.5, %v1478_v29  ;;  %v1348_v31 = vpop.xlane.xlu2 %1347  ;;  %1362 = vadd.xlane.f32.xlu1 %v1361_v50 }
 0x23c   : > { %v1374_v24 = vmul.f32 %v1348_v31, %v2998_v49  ;;  %v1583_v32 = vmul.f32 %v3155_v9, %v1563_v26 }
 0x23d   : > { %v1480_v34 = vsub.f32 1.5, %v1479_v8 }
 0x23e   : > { %v2590_v12 = vpop.eup %2589  ;;  %v3254_v15 = vadd.f32 1e-05, %v1374_v24  ;;  %v1603_v46 = vadd.f32 %v3168_v14, %v1583_v32 }
 0x23f   : > { %v1481_v51 = vmul.f32 %v2588_v17, %v1480_v34  ;;  %v1487_v30 = vmul.f32 %v2590_v12, %v1389_v3  ;;  %vm1493_vm1 = vweird.f32 %v2590_v12  ;;  %v2349_v3 = vld [vmem:[%s3478_s14] sm:$0xff] }
 0x240   : > { %2591 = vrsqrt.f32 %v3254_v15  ;;  %v1615_v53 = vpack.c.bf16 %v1603_v46, %v1602_v45  ;;  %vm1494_vm4 = vmor %vm1492_vm2, %vm1493_vm1  ;;  %1940 = vmatpush.bf16.msrb.mxu0 %v2349_v3  ;;  %2521 = vmatpush.bf16.msra.mxu3 %v2349_v3  ;;  %vm1502_vm6 = vweird.f32 %v3254_v15 }
 0x241   : > { %v1488_v56 = vmul.f32 %v2590_v12, %v1487_v30  ;;  %v1485_v59 = vsel %vm1484_vm0, %v2588_v17, %v1481_v51 }
 0x242   : > { %2286 = vmatmul.msk.bf16.gmra.mxu2 %vm1212_vm3, %v1615_v53  ;;  %v1564_v52 = vmul.f32 %v1485_v59, %v3137_v35 }
 0x243   : > { %v1489_v60 = vmul.f32 0.5, %v1488_v56  ;;  %v1351_v38 = vpop.xlane.xlu0 %1350 }
 0x244   : > { %v1375_v0 = vmul.f32 %v1351_v38, %v2998_v49  ;;  %v1584_v6 = vmul.f32 %v3155_v9, %v1564_v52 }
 0x245   : > { %v1490_v43 = vsub.f32 1.5, %v1489_v60 }
 0x246   : > { %v2592_v2 = vpop.eup %2591  ;;  %v1391_v61 = vadd.f32 1e-05, %v1375_v0  ;;  %v1604_v32 = vadd.f32 %v3168_v14, %v1584_v6 }
 0x247   : > { %v1491_v19 = vmul.f32 %v2590_v12, %v1490_v43  ;;  %v1497_v17 = vmul.f32 %v2592_v2, %v3254_v15  ;;  %vm1503_vm5 = vweird.f32 %v2592_v2 }
 0x248   : > { %2593 = vrsqrt.f32 %v1391_v61  ;;  %vm1504_vm7 = vmor %vm1502_vm6, %vm1503_vm5  ;;  %vm1512_vm9 = vweird.f32 %v1391_v61 }
 0x249   : > { %v1495_v63 = vsel %vm1494_vm4, %v2590_v12, %v1491_v19  ;;  %v1498_v35 = vmul.f32 %v2592_v2, %v1497_v17 }
 0x24a   : > { %v1565_v25 = vmul.f32 %v1495_v63, %v3150_v41  ;;  %v1673_v4 = vpop.f32.mrf.mxu2 }
 0x24b   : > { %v1499_v29 = vmul.f32 0.5, %v1498_v35  ;;  %v3283_v26 = vadd.f32 %v3275_v23, %v1673_v4  ;;  %v1354_v50 = vpop.xlane.xlu1 %1353 }
 0x24c   : > { %v1376_v27 = vmul.f32 %v1354_v50, %v2998_v49  ;;  %v1585_v28 = vmul.f32 %v3155_v9, %v1565_v25 }
 0x24d   : > { %v1500_v8 = vsub.f32 1.5, %v1499_v29  ;;  %v1713_v41 = vmul.f32 %v3283_v26, %v3283_v26 }
 0x24e   : > { %v2594_v31 = vpop.eup %2593  ;;  %v1392_v24 = vadd.f32 1e-05, %v1376_v27  ;;  %v1605_v34 = vadd.f32 %v3168_v14, %v1585_v28 }
 0x24f   : > { %v1501_v12 = vmul.f32 %v2592_v2, %v1500_v8  ;;  %v1507_v45 = vmul.f32 %v2594_v31, %v1391_v61  ;;  %v1729_v46 = vmul.f32 %v1713_v41, %v3283_v26  ;;  %vm1513_vm8 = vweird.f32 %v2594_v31 }
 0x250   : > { %2595 = vrsqrt.f32 %v1392_v24  ;;  %v1616_v47 = vpack.c.bf16 %v1605_v34, %v1604_v32  ;;  %vm1514_vm10 = vmor %vm1512_vm9, %vm1513_vm8  ;;  %vm1522_vm12 = vweird.f32 %v1392_v24 }
 0x251   : > { %v1508_v51 = vmul.f32 %v2594_v31, %v1507_v45  ;;  %v1745_v30 = vmul.f32 0.044715, %v1729_v46  ;;  %v1505_v56 = vsel %vm1504_vm7, %v2592_v2, %v1501_v12 }
 0x252   : > { %v1675_v53 = vpop.f32.mrf.mxu2  ;;  %2287 = vmatmul.msk.bf16.gmra.mxu2 %vm1212_vm3, %v1616_v47  ;;  %v1566_v19 = vmul.f32 %v1505_v56, %v3174_v40 }
 0x253   : > { %v1509_v57 = vmul.f32 0.5, %v1508_v51  ;;  %v1761_v59 = vadd.f32 %v1745_v30, %v3283_v26  ;;  %v3296_v60 = vadd.f32 %v3275_v23, %v1675_v53  ;;  %v1357_v38 = vpop.xlane.xlu2 %1356 }
 0x254   : > { %v1377_v0 = vmul.f32 %v1357_v38, %v2998_v49  ;;  %v1586_v50 = vmul.f32 %v3155_v9, %v1566_v19 }
 0x255   : > { %v1510_v43 = vsub.f32 1.5, %v1509_v57  ;;  %v1777_v52 = vmul.f32 0.7978846, %v1761_v59  ;;  %v1714_v15 = vmul.f32 %v3296_v60, %v3296_v60 }
 0x256   : > { %v2596_v10 = vpop.eup %2595  ;;  %v1393_v17 = vadd.f32 1e-05, %v1377_v0 }
 0x257   : > { %v1511_v2 = vmul.f32 %v2594_v31, %v1510_v43  ;;  %v1517_v63 = vmul.f32 %v2596_v10, %v1392_v24  ;;  %v1730_v35 = vmul.f32 %v1714_v15, %v3296_v60  ;;  %vm1523_vm11 = vweird.f32 %v2596_v10 }
 0x258   : > { %2597 = vrsqrt.f32 %v1393_v17  ;;  %vm1524_vm13 = vmor %vm1522_vm12, %vm1523_vm11  ;;  %vm1532_vm15 = vweird.f32 %v1393_v17 }
 0x259   : > { %v1515_v25 = vsel %vm1514_vm10, %v2594_v31, %v1511_v2  ;;  %2599 = vtanh.f32 %v1777_v52  ;;  %v1518_v4 = vmul.f32 %v2596_v10, %v1517_v63  ;;  %v1746_v3 = vmul.f32 0.044715, %v1730_v35 }
 0x25a   : > { %v1567_v6 = vmul.f32 %v1515_v25, %v3187_v18  ;;  %v1678_v29 = vpop.f32.mrf.mxu2  ;;  %v1606_v18 = vadd.f32 %v3168_v14, %v1586_v50 }
 0x25b   : > { %v1519_v27 = vmul.f32 0.5, %v1518_v4  ;;  %v3306_v40 = vadd.f32 %v3275_v23, %v1678_v29  ;;  %v1762_v61 = vadd.f32 %v1746_v3, %v3296_v60 }
 0x25c   : > { %v1587_v28 = vmul.f32 %v3155_v9, %v1567_v6 }
 0x25d   : > { %v1520_v8 = vsub.f32 1.5, %v1519_v27  ;;  %v1715_v41 = vmul.f32 %v3306_v40, %v3306_v40  ;;  %v1778_v32 = vmul.f32 0.7978846, %v1762_v61 }
 0x25e   : > { %v2598_v31 = vpop.eup %2597  ;;  %v1607_v34 = vadd.f32 %v3168_v14, %v1587_v28 }
 0x25f   : > { %v2600_v12 = vpop.eup %2599  ;;  %v1521_v45 = vmul.f32 %v2596_v10, %v1520_v8  ;;  %v1527_v46 = vmul.f32 %v2598_v31, %v1393_v17  ;;  %v1731_v47 = vmul.f32 %v1715_v41, %v3306_v40  ;;  %2601 = vtanh.f32 %v1778_v32 }
 0x260   : > { %v1617_v51 = vpack.c.bf16 %v1607_v34, %v1606_v18  ;;  %v1809_v57 = vadd.f32 1.0, %v2600_v12  ;;  %vm1533_vm14 = vweird.f32 %v2598_v31 }
 0x261   : > { %v1528_v30 = vmul.f32 %v2598_v31, %v1527_v46  ;;  %v1747_v53 = vmul.f32 0.044715, %v1731_v47  ;;  %v1525_v59 = vsel %vm1524_vm13, %v2596_v10, %v1521_v45  ;;  %vm1534_vm0 = vmor %vm1532_vm15, %vm1533_vm14 }
 0x262   : > { %v1680_v56 = vpop.f32.mrf.mxu2  ;;  %2288 = vmatmul.msk.bf16.gmra.mxu2 %vm1212_vm3, %v1617_v51  ;;  %v1568_v24 = vmul.f32 %v1525_v59, %v3197_v33  ;;  %v1825_v4 = vmul.f32 0.5, %v1809_v57 }
 0x263   : > { %v1529_v38 = vmul.f32 0.5, %v1528_v30  ;;  %v1763_v0 = vadd.f32 %v1747_v53, %v3306_v40  ;;  %v1681_v43 = vadd.f32 %v3275_v23, %v1680_v56 }
 0x264   : > { %v1588_v27 = vmul.f32 %v3155_v9, %v1568_v24  ;;  %v1841_v33 = vmul.f32 %v1825_v4, %v3283_v26 }
 0x265   : > { %v1530_v52 = vsub.f32 1.5, %v1529_v38  ;;  %v1716_v15 = vmul.f32 %v1681_v43, %v1681_v43  ;;  %v1779_v19 = vmul.f32 0.7978846, %v1763_v0  ;;  %v2602_v2 = vpop.eup %2601 }
 0x266   : > { %v1810_v25 = vadd.f32 1.0, %v2602_v2  ;;  %v1608_v18 = vadd.f32 %v3168_v14, %v1588_v27 }
 0x267   : > { %v1531_v63 = vmul.f32 %v2598_v31, %v1530_v52  ;;  %v1732_v35 = vmul.f32 %v1716_v15, %v1681_v43  ;;  %2603 = vtanh.f32 %v1779_v19 }
 0x268   : > { %v1826_v3 = vmul.f32 0.5, %v1810_v25 }
 0x269   : > { %v1535_v6 = vsel %vm1534_vm0, %v2598_v31, %v1531_v63  ;;  %v1748_v10 = vmul.f32 0.044715, %v1732_v35 }
 0x26a   : > { %v1569_v29 = vmul.f32 %v1535_v6, %v3208_v1  ;;  %v1683_v50 = vpop.f32.mrf.mxu2  ;;  %v1842_v17 = vmul.f32 %v1826_v3, %v3296_v60 }
 0x26b   : > { %v1764_v61 = vadd.f32 %v1748_v10, %v1681_v43  ;;  %v1684_v28 = vadd.f32 %v3275_v23, %v1683_v50 }
 0x26c   : > { %v1589_v8 = vmul.f32 %v3155_v9, %v1569_v29  ;;  %v1857_v32 = vpack.c.bf16 %v1842_v17, %v1841_v33 }
 0x26d   : > { %v1717_v41 = vmul.f32 %v1684_v28, %v1684_v28  ;;  %v1780_v31 = vmul.f32 0.7978846, %v1764_v61  ;;  %v2604_v1 = vpop.eup %2603  ;;  %v1360_v61 = vpop.xlane.xlu0 %1359 }
 0x26e   : > { %v1609_v34 = vadd.f32 %v3168_v14, %v1589_v8  ;;  %1941 = vmatmul.bf16.vlgmr.msrb.gmra.mxu0 %v1857_v32  ;;  %v1811_v26 = vadd.f32 1.0, %v2604_v1  ;;  %v1378_v33 = vmul.f32 %v1360_v61, %v2998_v49 }
 0x26f   : > { %v1733_v12 = vmul.f32 %v1717_v41, %v1684_v28  ;;  %2605 = vtanh.f32 %v1780_v31 }
 0x270   : > { %v1618_v45 = vpack.c.bf16 %v1609_v34, %v1608_v18  ;;  %v1827_v59 = vmul.f32 0.5, %v1811_v26 }
 0x271   : > { %v1749_v46 = vmul.f32 0.044715, %v1733_v12 }
 0x272   : > { %v1685_v47 = vpop.f32.mrf.mxu2  ;;  %2289 = vmatmul.msk.bf16.gmra.mxu2 %vm1212_vm3, %v1618_v45  ;;  %v1843_v15 = vmul.f32 %v1827_v59, %v3306_v40  ;;  %v1394_v40 = vadd.f32 1e-05, %v1378_v33 }
 0x273   : > { %v1765_v60 = vadd.f32 %v1749_v46, %v1684_v28  ;;  %v1686_v51 = vadd.f32 %v3275_v23, %v1685_v47 }
 0x274   : > { %vm1542_vm2 = vweird.f32 %v1394_v40 }
 0x275   : > { %v2606_v30 = vpop.eup %2605  ;;  %v1718_v53 = vmul.f32 %v1686_v51, %v1686_v51  ;;  %v1781_v56 = vmul.f32 0.7978846, %v1765_v60 }
 0x276   : > { %v1812_v57 = vadd.f32 1.0, %v2606_v30 }
 0x277   : > { %v1734_v38 = vmul.f32 %v1718_v53, %v1686_v51  ;;  %2607 = vtanh.f32 %v1781_v56 }
 0x278   : > { %v1828_v0 = vmul.f32 0.5, %v1812_v57 }
 0x279   : > { %v1750_v52 = vmul.f32 0.044715, %v1734_v38 }
 0x27a   : > { %v1844_v19 = vmul.f32 %v1828_v0, %v1681_v43 }
 0x27b   : > { %v1766_v2 = vadd.f32 %v1750_v52, %v1686_v51 }
 0x27c   : > { %v1858_v24 = vpack.c.bf16 %v1844_v19, %v1843_v15 }
 0x27d   : > { %v1782_v63 = vmul.f32 0.7978846, %v1766_v2  ;;  %v2608_v35 = vpop.eup %2607 }
 0x27e   : > { %1946 = vmatmul.bf16.vlgmr.msra.gmra.mxu3 %v1858_v24  ;;  %v1813_v25 = vadd.f32 1.0, %v2608_v35 }
 0x27f   : > { %2609 = vtanh.f32 %v1782_v63 }
 0x280   : > { %v1829_v10 = vmul.f32 0.5, %v1813_v25  ;;  %2611 = vrsqrt.f32 %v1394_v40 }
 0x282   : > { %v1845_v29 = vmul.f32 %v1829_v10, %v1684_v28 }
 0x285   : > { %v2610_v4 = vpop.eup %2609 }
 0x286   : > { %v1814_v6 = vadd.f32 1.0, %v2610_v4  ;;  %v2612_v43 = vpop.eup %2611 }
 0x287   : > { %v1537_v17 = vmul.f32 %v2612_v43, %v1394_v40  ;;  %vm1543_vm1 = vweird.f32 %v2612_v43 }
 0x288   : > { %v1830_v3 = vmul.f32 0.5, %v1814_v6  ;;  %vm1544_vm4 = vmor %vm1542_vm2, %vm1543_vm1 }
 0x289   : > { %v1538_v8 = vmul.f32 %v2612_v43, %v1537_v17 }
 0x28a   : > { %v1846_v50 = vmul.f32 %v1830_v3, %v1686_v51 }
 0x28b   : > { %v1539_v18 = vmul.f32 0.5, %v1538_v8 }
 0x28c   : > { %v1859_v27 = vpack.c.bf16 %v1846_v50, %v1845_v29 }
 0x28d   : > { %v1540_v34 = vsub.f32 1.5, %v1539_v18 }
 0x28e   : > { %1951 = vmatmul.bf16.gmra.mxu3 %v1859_v27 }
 0x28f   : > { %v1541_v28 = vmul.f32 %v2612_v43, %v1540_v34 }
 0x291   : > { %v1545_v46 = vsel %vm1544_vm4, %v2612_v43, %v1541_v28 }
 0x292   : > { %v1570_v60 = vmul.f32 %v1545_v46, %v3218_v55 }
 0x294   : > { %v1590_v56 = vmul.f32 %v3155_v9, %v1570_v60 }
 0x296   : > { %v1610_v0 = vadd.f32 %v3168_v14, %v1590_v56 }
 0x2ae   : > { %v1363_v41 = vpop.xlane.xlu1 %1362 }
 0x2af   : > { %v1379_v32 = vmul.f32 %v1363_v41, %v2998_v49 }
 0x2b1   : > { %v1395_v31 = vadd.f32 1e-05, %v1379_v32 }
 0x2b3   : > { %2613 = vrsqrt.f32 %v1395_v31  ;;  %vm1552_vm6 = vweird.f32 %v1395_v31 }
 0x2b9   : > { %v2614_v1 = vpop.eup %2613 }
 0x2ba   : > { %v1547_v12 = vmul.f32 %v2614_v1, %v1395_v31  ;;  %vm1553_vm5 = vweird.f32 %v2614_v1 }
 0x2bb   : > { %vm1554_vm7 = vmor %vm1552_vm6, %vm1553_vm5 }
 0x2bc   : > { %v1548_v45 = vmul.f32 %v2614_v1, %v1547_v12 }
 0x2be   : > { %v1549_v47 = vmul.f32 0.5, %v1548_v45 }
 0x2c0   : > { %v1550_v26 = vsub.f32 1.5, %v1549_v47 }
 0x2c2   : > { %v1551_v51 = vmul.f32 %v2614_v1, %v1550_v26 }
 0x2c4   : > { %v1555_v49 = vsel %vm1554_vm7, %v2614_v1, %v1551_v51 }
 0x2c5   : > { %v1571_v30 = vmul.f32 %v1555_v49, %v3239_v42  ;;  %v1688_v53 = vpop.f32.mrf.mxu2  ;;  %v3352_v49 = vld [vmem:[%s3479_s15] ss:$0 sm:$0xff] }
 0x2c6   : > { %v1689_v57 = vadd.f32 %v3275_v23, %v1688_v53 }
 0x2c7   : > { %v1591_v59 = vmul.f32 %v3155_v9, %v1571_v30 }
 0x2c8   : > { %v1719_v38 = vmul.f32 %v1689_v57, %v1689_v57 }
 0x2c9   : > { %v1611_v52 = vadd.f32 %v3168_v14, %v1591_v59 }
 0x2ca   : > { %v1735_v15 = vmul.f32 %v1719_v38, %v1689_v57 }
 0x2cb   : > { %v1619_v55 = vpack.c.bf16 %v1611_v52, %v1610_v0 }
 0x2cc   : > { %v1751_v19 = vmul.f32 0.044715, %v1735_v15 }
 0x2cd   : > { %v1690_v2 = vpop.f32.mrf.mxu2  ;;  %2290 = vmatmul.msk.bf16.gmra.mxu2 %vm1212_vm3, %v1619_v55 }
 0x2ce   : > { %v1767_v24 = vadd.f32 %v1751_v19, %v1689_v57  ;;  %v1691_v42 = vadd.f32 %v3275_v23, %v1690_v2 }
 0x2d0   : > { %v1720_v63 = vmul.f32 %v1691_v42, %v1691_v42  ;;  %v1783_v35 = vmul.f32 0.7978846, %v1767_v24 }
 0x2d2   : > { %v1736_v25 = vmul.f32 %v1720_v63, %v1691_v42  ;;  %2615 = vtanh.f32 %v1783_v35 }
 0x2d4   : > { %v1752_v4 = vmul.f32 0.044715, %v1736_v25 }
 0x2d5   : > { %v1693_v9 = vpop.f32.mrf.mxu2 }
 0x2d6   : > { %v1768_v6 = vadd.f32 %v1752_v4, %v1691_v42  ;;  %v1694_v10 = vadd.f32 %v3275_v23, %v1693_v9 }
 0x2d8   : > { %v1721_v3 = vmul.f32 %v1694_v10, %v1694_v10  ;;  %v1784_v14 = vmul.f32 0.7978846, %v1768_v6  ;;  %v2616_v29 = vpop.eup %2615 }
 0x2d9   : > { %v1815_v33 = vadd.f32 1.0, %v2616_v29 }
 0x2da   : > { %v1737_v50 = vmul.f32 %v1721_v3, %v1694_v10  ;;  %2617 = vtanh.f32 %v1784_v14 }
 0x2db   : > { %v1831_v31 = vmul.f32 0.5, %v1815_v33 }
 0x2dc   : > { %v1753_v27 = vmul.f32 0.044715, %v1737_v50 }
 0x2dd   : > { %v1695_v61 = vpop.f32.mrf.mxu2  ;;  %v1847_v12 = vmul.f32 %v1831_v31, %v1689_v57 }
 0x2de   : > { %v1769_v40 = vadd.f32 %v1753_v27, %v1694_v10  ;;  %v1696_v43 = vadd.f32 %v3275_v23, %v1695_v61 }
 0x2e0   : > { %v2618_v17 = vpop.eup %2617  ;;  %v1722_v8 = vmul.f32 %v1696_v43, %v1696_v43  ;;  %v1785_v41 = vmul.f32 0.7978846, %v1769_v40 }
 0x2e1   : > { %v1816_v32 = vadd.f32 1.0, %v2618_v17 }
 0x2e2   : > { %v1738_v18 = vmul.f32 %v1722_v8, %v1696_v43  ;;  %2619 = vtanh.f32 %v1785_v41 }
 0x2e3   : > { %v1832_v34 = vmul.f32 0.5, %v1816_v32 }
 0x2e4   : > { %v1754_v1 = vmul.f32 0.044715, %v1738_v18 }
 0x2e5   : > { %v1698_v28 = vpop.f32.mrf.mxu2  ;;  %v1848_v45 = vmul.f32 %v1832_v34, %v1691_v42 }
 0x2e6   : > { %v1770_v46 = vadd.f32 %v1754_v1, %v1696_v43  ;;  %v3344_v47 = vadd.f32 %v3275_v23, %v1698_v28 }
 0x2e7   : > { %v1860_v26 = vpack.c.bf16 %v1848_v45, %v1847_v12 }
 0x2e8   : > { %v1723_v60 = vmul.f32 %v3344_v47, %v3344_v47  ;;  %v1786_v51 = vmul.f32 0.7978846, %v1770_v46  ;;  %v2620_v30 = vpop.eup %2619 }
 0x2e9   : > { %1956 = vmatmul.bf16.gmra.mxu3 %v1860_v26  ;;  %v1817_v0 = vadd.f32 1.0, %v2620_v30 }
 0x2ea   : > { %v1739_v53 = vmul.f32 %v1723_v60, %v3344_v47  ;;  %2621 = vtanh.f32 %v1786_v51 }
 0x2eb   : > { %v1942_v57 = vpop.f32.mrf.mxu0  ;;  %v1833_v63 = vmul.f32 0.5, %v1817_v0 }
 0x2ec   : > { %v1755_v56 = vmul.f32 0.044715, %v1739_v53  ;;  %v1943_v59 = vadd.f32 %v3352_v49, %v1942_v57 }
 0x2ed   : > { %v1700_v38 = vpop.f32.mrf.mxu2 }
 0x2ee   : > { %v1771_v52 = vadd.f32 %v1755_v56, %v3344_v47  ;;  %v1701_v15 = vadd.f32 %v3275_v23, %v1700_v38  ;;  %v1982_v55 = vadd.f32 %v1943_v59, %v2940_v62  ;;  %v1849_v62 = vmul.f32 %v1833_v63, %v1694_v10 }
 0x2f0   : > { %v2622_v19 = vpop.eup %2621  ;;  %v1724_v2 = vmul.f32 %v1701_v15, %v1701_v15  ;;  %v1787_v24 = vmul.f32 0.7978846, %v1771_v52  ;;  %1998 = vst.msk [vmem:[%s3361_s5] sm:$0xff] %vm1212_vm3, %v1982_v55 }
 0x2f1   : > { %v1818_v42 = vadd.f32 1.0, %v2622_v19 }
 0x2f2   : > { %v1740_v35 = vmul.f32 %v1724_v2, %v1701_v15  ;;  %2623 = vtanh.f32 %v1787_v24 }
 0x2f3   : > { %v1834_v25 = vmul.f32 0.5, %v1818_v42  ;;  %v1944_v9 = vpop.f32.mrf.mxu0 }
 0x2f4   : > { %v1756_v4 = vmul.f32 0.044715, %v1740_v35  ;;  %v1945_v6 = vadd.f32 %v3352_v49, %v1944_v9 }
 0x2f5   : > { %v1703_v3 = vpop.f32.mrf.mxu2  ;;  %v1850_v14 = vmul.f32 %v1834_v25, %v1696_v43 }
 0x2f6   : > { %v1772_v29 = vadd.f32 %v1756_v4, %v1701_v15  ;;  %v1704_v50 = vadd.f32 %v3275_v23, %v1703_v3  ;;  %v1983_v27 = vadd.f32 %v1945_v6, %v2948_v16 }
 0x2f7   : > { %v1861_v61 = vpack.c.bf16 %v1850_v14, %v1849_v62 }
 0x2f8   : > { %v1725_v33 = vmul.f32 %v1704_v50, %v1704_v50  ;;  %v1788_v40 = vmul.f32 0.7978846, %v1772_v29  ;;  %1999 = vst.msk [vmem:[%s3361_s5 + $0x8] sm:$0xff] %vm1212_vm3, %v1983_v27  ;;  %v2624_v17 = vpop.eup %2623 }
 0x2f9   : > { %1961 = vmatmul.bf16.gmra.mxu3 %v1861_v61  ;;  %v1819_v31 = vadd.f32 1.0, %v2624_v17 }
 0x2fa   : > { %v1741_v8 = vmul.f32 %v1725_v33, %v1704_v50  ;;  %2625 = vtanh.f32 %v1788_v40 }
 0x2fb   : > { %v1835_v12 = vmul.f32 0.5, %v1819_v31 }
 0x2fc   : > { %v1757_v41 = vmul.f32 0.044715, %v1741_v8 }
 0x2fd   : > { %v1705_v32 = vpop.f32.mrf.mxu2  ;;  %v1851_v30 = vmul.f32 %v1835_v12, %v3344_v47 }
 0x2fe   : > { %v1773_v18 = vadd.f32 %v1757_v41, %v1704_v50  ;;  %v1706_v10 = vadd.f32 %v3275_v23, %v1705_v32 }
 0x300   : > { %v2626_v43 = vpop.eup %2625  ;;  %v1726_v34 = vmul.f32 %v1706_v10, %v1706_v10  ;;  %v1789_v1 = vmul.f32 0.7978846, %v1773_v18 }
 0x301   : > { %v1947_v16 = vpop.f32.mrf.mxu3  ;;  %v1820_v28 = vadd.f32 1.0, %v2626_v43 }
 0x302   : > { %v1742_v45 = vmul.f32 %v1726_v34, %v1706_v10  ;;  %v1948_v46 = vadd.f32 %v3352_v49, %v1947_v16  ;;  %2627 = vtanh.f32 %v1789_v1 }
 0x303   : > { %v1836_v26 = vmul.f32 0.5, %v1820_v28 }
 0x304   : > { %v1758_v60 = vmul.f32 0.044715, %v1742_v45  ;;  %v1984_v51 = vadd.f32 %v1948_v46, %v2960_v37 }
 0x305   : > { %v1852_v53 = vmul.f32 %v1836_v26, %v1701_v15 }
 0x306   : > { %v1774_v56 = vadd.f32 %v1758_v60, %v1706_v10  ;;  %2000 = vst.msk [vmem:[%s3361_s5 + $0x10] sm:$0xff] %vm1212_vm3, %v1984_v51 }
 0x307   : > { %v1862_v57 = vpack.c.bf16 %v1852_v53, %v1851_v30 }
 0x308   : > { %v1790_v59 = vmul.f32 0.7978846, %v1774_v56  ;;  %v2628_v0 = vpop.eup %2627 }
 0x309   : > { %v1949_v38 = vpop.f32.mrf.mxu3  ;;  %1966 = vmatmul.bf16.gmra.mxu3 %v1862_v57  ;;  %v1821_v19 = vadd.f32 1.0, %v2628_v0 }
 0x30a   : > { %v1950_v52 = vadd.f32 %v3352_v49, %v1949_v38  ;;  %2629 = vtanh.f32 %v1790_v59 }
 0x30b   : > { %v1837_v2 = vmul.f32 0.5, %v1821_v19 }
 0x30c   : > { %v1985_v55 = vadd.f32 %v1950_v52, %v2970_v54 }
 0x30d   : > { %v1853_v35 = vmul.f32 %v1837_v2, %v1704_v50 }
 0x30e   : > { %2001 = vst.msk [vmem:[%s3361_s5 + $0x18] sm:$0xff] %vm1212_vm3, %v1985_v55 }
 0x310   : > { %v2630_v37 = vpop.eup %2629 }
 0x311   : > { %v1952_v47 = vpop.f32.mrf.mxu3  ;;  %v1822_v15 = vadd.f32 1.0, %v2630_v37 }
 0x312   : > { %v1953_v24 = vadd.f32 %v3352_v49, %v1952_v47 }
 0x313   : > { %v1838_v42 = vmul.f32 0.5, %v1822_v15 }
 0x314   : > { %v1986_v63 = vadd.f32 %v1953_v24, %v2979_v5 }
 0x315   : > { %v1854_v25 = vmul.f32 %v1838_v42, %v1706_v10 }
 0x316   : > { %2002 = vst.msk [vmem:[%s3361_s5 + $0x20] sm:$0xff] %vm1212_vm3, %v1986_v63 }
 0x317   : > { %v1863_v4 = vpack.c.bf16 %v1854_v25, %v1853_v35 }
 0x319   : > { %v1954_v9 = vpop.f32.mrf.mxu3  ;;  %1971 = vmatmul.bf16.gmra.mxu3 %v1863_v4 }
 0x31a   : > { %v1955_v54 = vadd.f32 %v3352_v49, %v1954_v9 }
 0x31c   : > { %v1987_v6 = vadd.f32 %v1955_v54, %v2984_v13 }
 0x31e   : > { %2003 = vst.msk [vmem:[%s3361_s5 + $0x28] sm:$0xff] %vm1212_vm3, %v1987_v6 }
 0x350   : > { %v1708_v3 = vpop.f32.mrf.mxu2 }
 0x351   : > { %v1709_v62 = vadd.f32 %v3275_v23, %v1708_v3 }
 0x353   : > { %v1727_v14 = vmul.f32 %v1709_v62, %v1709_v62 }
 0x355   : > { %v1743_v29 = vmul.f32 %v1727_v14, %v1709_v62 }
 0x357   : > { %v1759_v27 = vmul.f32 0.044715, %v1743_v29 }
 0x358   : > { %v1710_v5 = vpop.f32.mrf.mxu2 }
 0x359   : > { %v1775_v50 = vadd.f32 %v1759_v27, %v1709_v62  ;;  %v1711_v61 = vadd.f32 %v3275_v23, %v1710_v5 }
 0x35b   : > { %v1728_v33 = vmul.f32 %v1711_v61, %v1711_v61  ;;  %v1791_v40 = vmul.f32 0.7978846, %v1775_v50 }
 0x35d   : > { %v1744_v17 = vmul.f32 %v1728_v33, %v1711_v61  ;;  %2631 = vtanh.f32 %v1791_v40 }
 0x35f   : > { %v1760_v8 = vmul.f32 0.044715, %v1744_v17 }
 0x361   : > { %v1776_v41 = vadd.f32 %v1760_v8, %v1711_v61 }
 0x363   : > { %v1792_v13 = vmul.f32 0.7978846, %v1776_v41  ;;  %v2632_v32 = vpop.eup %2631 }
 0x364   : > { %v1823_v31 = vadd.f32 1.0, %v2632_v32 }
 0x365   : > { %2633 = vtanh.f32 %v1792_v13 }
 0x366   : > { %v1839_v34 = vmul.f32 0.5, %v1823_v31 }
 0x368   : > { %v1855_v28 = vmul.f32 %v1839_v34, %v1709_v62 }
 0x36b   : > { %v2634_v18 = vpop.eup %2633 }
 0x36c   : > { %v1957_v10 = vpop.f32.mrf.mxu3  ;;  %v1824_v43 = vadd.f32 1.0, %v2634_v18 }
 0x36d   : > { %v1958_v1 = vadd.f32 %v3352_v49, %v1957_v10 }
 0x36e   : > { %v1840_v23 = vmul.f32 0.5, %v1824_v43 }
 0x36f   : > { %v1988_v16 = vadd.f32 %v1958_v1, %v2989_v20 }
 0x370   : > { %v1856_v12 = vmul.f32 %v1840_v23, %v1711_v61 }
 0x371   : > { %2004 = vst.msk [vmem:[%s3361_s5 + $0x30] sm:$0xff] %vm1212_vm3, %v1988_v16 }
 0x372   : > { %v1864_v45 = vpack.c.bf16 %v1856_v12, %v1855_v28 }
 0x374   : > { %v1959_v46 = vpop.f32.mrf.mxu3  ;;  %1976 = vmatmul.bf16.gmra.mxu3 %v1864_v45 }
 0x375   : > { %v1960_v26 = vadd.f32 %v3352_v49, %v1959_v46 }
 0x377   : > { %v1989_v60 = vadd.f32 %v1960_v26, %v3015_v21 }
 0x379   : > { %2005 = vst.msk [vmem:[%s3361_s5 + $0x38] sm:$0xff] %vm1212_vm3, %v1989_v60 }
 0x37c   : > { %v1962_v51 = vpop.f32.mrf.mxu3 }
 0x37d   : > { %v1963_v30 = vadd.f32 %v3352_v49, %v1962_v51 }
 0x37f   : > { %v1990_v20 = vadd.f32 %v1963_v30, %v3028_v44 }
 0x381   : > { %2006 = vst.msk [vmem:[%s3361_s5 + $0x40] sm:$0xff] %vm1212_vm3, %v1990_v20 }
 0x384   : > { %v1964_v53 = vpop.f32.mrf.mxu3 }
 0x385   : > { %v1965_v56 = vadd.f32 %v3352_v49, %v1964_v53 }
 0x387   : > { %v1991_v57 = vadd.f32 %v1965_v56, %v3046_v11 }
 0x389   : > { %2007 = vst.msk [vmem:[%s3361_s5 + $0x48] sm:$0xff] %vm1212_vm3, %v1991_v57 }
 0x38c   : > { %v1967_v21 = vpop.f32.mrf.mxu3 }
 0x38d   : > { %v1968_v59 = vadd.f32 %v3352_v49, %v1967_v21 }
 0x38f   : > { %v1992_v38 = vadd.f32 %v1968_v59, %v3060_v39 }
 0x391   : > { %2008 = vst.msk [vmem:[%s3361_s5 + $0x50] sm:$0xff] %vm1212_vm3, %v1992_v38 }
 0x394   : > { %v1969_v44 = vpop.f32.mrf.mxu3 }
 0x395   : > { %v1970_v0 = vadd.f32 %v3352_v49, %v1969_v44 }
 0x397   : > { %v1993_v52 = vadd.f32 %v1970_v0, %v3078_v58 }
 0x399   : > { %2009 = vst.msk [vmem:[%s3361_s5 + $0x58] sm:$0xff] %vm1212_vm3, %v1993_v52 }
 0x39c   : > { %v1972_v11 = vpop.f32.mrf.mxu3 }
 0x39d   : > { %v1973_v55 = vadd.f32 %v3352_v49, %v1972_v11 }
 0x39f   : > { %v1994_v19 = vadd.f32 %v1973_v55, %v3093_v22 }
 0x3a1   : > { %2010 = vst.msk [vmem:[%s3361_s5 + $0x60] sm:$0xff] %vm1212_vm3, %v1994_v19 }
 0x3a4   : > { %v1974_v39 = vpop.f32.mrf.mxu3 }
 0x3a5   : > { %v1975_v37 = vadd.f32 %v3352_v49, %v1974_v39 }
 0x3a7   : > { %v1995_v47 = vadd.f32 %v1975_v37, %v3105_v36 }
 0x3a9   : > { %2011 = vst.msk [vmem:[%s3361_s5 + $0x68] sm:$0xff] %vm1212_vm3, %v1995_v47 }
 0x3f7   : > { %v1977_v58 = vpop.f32.mrf.mxu3 }
 0x3f8   : > { %v1978_v15 = vadd.f32 %v3352_v49, %v1977_v58 }
 0x3fa   : > { %v1996_v2 = vadd.f32 %v1978_v15, %v3110_v48 }
 0x3fc   : > { %2012 = vst.msk [vmem:[%s3361_s5 + $0x70] sm:$0xff] %vm1212_vm3, %v1996_v2 }
 0x3ff   : > { %v1979_v22 = vpop.f32.mrf.mxu3 }
 0x400   : > { %v1980_v36 = vadd.f32 %v3352_v49, %v1979_v22 }
 0x402   : > { %v1997_v24 = vadd.f32 %v1980_v36, %v3147_v7 }
 0x404   : > { %2013 = vst.msk [vmem:[%s3361_s5 + $0x78] sm:$0xff] %vm1212_vm3, %v1997_v24 }
 0x405   : > { %2662 = shalt.err (!%p2659_p3)
}
 0x406   : > { %s2700_s17 = smov 128   ;;  %s2701_s5 = smov 8  }
 0x407   : > { %2522 = dma.vmem_to_hbm [thread:$0]  (%p2825_p5), %s2028_s30, 2048, %s2030_s20, %s2015_s25, %s2700_s17, %s2700_s17, %s2701_s5  }
 0x408 PF: > { %s3503_s21 = sld [smem:[#allocation5_spill]]  ;;  %p2528_p4 = scmp.ge.s32.totalorder %s2697_s24, 2 }
 0x40a   : > { %p2525_p7 = pnand %p2528_p4, %p2829_p6 }
 0x40c   : > { %p2526_p8 = pneg %p2525_p7 }
 0x40e   : > { %s2044_s26 = sand.u32 1, %s3503_s21  }
 0x40f   : > { %s2045_s8 = scalar_lea.sflag [#allocation3], %s2044_s26 }
 0x410   : > { %2680 = dma.done.wait (%p2526_p8), %s2045_s8, 2048  }
 0x411   : > { %2682 = vsyncadd (%p2526_p8), %s2045_s8, 4294965248  ;;  %s3505_s24 = sld [smem:[#allocation7_spill]]  ;;  %s3508_s21 = smov %s2689_s22 }
 0x412   : > { %s3506_s28 = sld [smem:[#allocation6_spill]] }
 0x413   : > { %s3507_s23 = sld [smem:[#allocation8_spill]] }
 0x417   : > { %p26_p9 = scmp.ge.s32.totalorder %s3505_s24, 4  }
 0x418   : > { %s3509_s22 = smov %s3506_s28 }
 0x419   :  { %28 = sbr.rel (!%p26_p9) target bundleno = 9 (0x9), region = 137 }
 0x41e   :  { %2051 = vsyncpa [#allocation3], 1 }
 0x41f   :  { %2053 = vsyncpa [#allocation3 + $0x1], 1 }

</bundles_post_ra>
